<compile_context>
chip_gen: v7x
topology: tpu7x:2x2x1
jax: 0.10.0
libtpu: 0.0.40
codegen_flags: <defaults>
</compile_context>

<pallas_src>
import functools

import jax
import jax.numpy as jnp
from jax.experimental import pallas as pl
from jax.experimental.pallas import tpu as pltpu

# ---------------- hyperparameters fixed by LSTNet.__init__ --------------------
HID_R = 100    # GRU1 hidden size
HID_C = 100    # conv channels
HID_S = 4      # skip-GRU hidden size
CK = 7         # conv kernel height (time)
SKIP = 10
HW = 21        # highway window

# lane-padded widths (zero padding => results identical, tiles lane-dense)
HC_PAD = 128           # conv channels / GRU input width (100 -> 128)
HR_PAD = 128           # GRU1 hidden width (100 -> 128)
G1 = 3 * HR_PAD        # fused GRU1 gate width  [r|z|n] = 384
GS_PAD = HR_PAD        # skip-GRU gate block, padded 12 -> 128 lanes
GPROJ = G1 + GS_PAD    # fused projection width = 512


def _vmem():
    return pl.BlockSpec(memory_space=pltpu.MemorySpace.VMEM)


def _bf16(x):
    return x.astype(jnp.bfloat16)


# ------------------------------ fused Pallas kernel ---------------------------
def _lstnet_kernel(
    col_ref,     # (T*B, CK*F)  f32   im2col, TIME-major rows (row = t*B + b)
    xhw_ref,     # (HW, B*F)    f32   highway window, row k = x[:, lags-HW+k, :]
    conv_w_ref,  # (CK*F, 128)  bf16
    conv_b_ref,  # (1, 128)     f32
    wproj_ref,   # (128, 512)   bf16  [Wir|Wiz|Win (GRU1) | Wi skip (12->128 pad)]
    bproj_ref,   # (1, 512)     f32   folded b_ih (+ b_hh for r/z)
    wh1_ref,     # (128, 384)   bf16  [Whr|Whz|Whn]
    bhn1_ref,    # (1, 128)     f32   b_hn (stays inside r*(...))
    whs_ref,     # (4, 12)      bf16
    bhns_ref,    # (1, 4)       f32
    l1w_ref,     # (256, F)     bf16  rows 0:128 GRU1 part | rows 128:256 skip part
    l1b_ref,     # (1, F)       f32
    hww_ref,     # (HW, 1)      f32
    hwb_ref,     # (1, 1)       f32
    out_ref,     # (B, F)       f32
    xp_s,        # scratch (T*B, 512) f32 : hoisted, time-major fused input projection
    *, batch, lags, factors,
):
    T = lags - CK + 1                 # conv output length
    pt = (lags - CK) // SKIP
    t0 = T - pt * SKIP                # first conv-time used by the skip GRU

    # -------- batched prologue: ONE conv matmul + ReLU, ONE fused projection --
    c = jnp.dot(_bf16(col_ref[...]), conv_w_ref[...],
                preferred_element_type=jnp.float32) + conv_b_ref[...]
    c = jnp.maximum(c, 0.0)                                    # (T*B, 128)
    # dropout(p=0.2) == identity in inference mode
    xp_s[...] = jnp.dot(_bf16(c), wproj_ref[...],
                        preferred_element_type=jnp.float32) + bproj_ref[...]

    # -------- highway path (one batched VPU reduction over the last HW lags) --
    zsum = jnp.sum(xhw_ref[...] * hww_ref[...], axis=0, keepdims=True)   # (1, B*F)
    z_hw = jnp.concatenate(
        [zsum[:, b * factors:(b + 1) * factors] for b in range(batch)],
        axis=0) + hwb_ref[...]                                           # (B, F)

    # -------- GRU1 recurrence (weights/biases hoisted; one MXU dot per step) --
    wh1 = wh1_ref[...]                                         # hoisted once (~24 vregs)
    bhn1 = jnp.broadcast_to(bhn1_ref[...], (batch, HR_PAD))    # hoisted broadcast
    h1 = jnp.zeros((batch, HR_PAD), jnp.float32)
    for t in range(T):
        xt = xp_s[t * batch:(t + 1) * batch, :][:, :G1]        # contiguous (B, 384)
        hp = jnp.dot(_bf16(h1), wh1, preferred_element_type=jnp.float32)
        r = jax.nn.sigmoid(xt[:, :HR_PAD] + hp[:, :HR_PAD])
        z = jax.nn.sigmoid(xt[:, HR_PAD:2 * HR_PAD] + hp[:, HR_PAD:2 * HR_PAD])
        n = jnp.tanh(xt[:, 2 * HR_PAD:] + r * (hp[:, 2 * HR_PAD:] + bhn1))
        h1 = (1.0 - z) * n + z * h1

    # -------- skip-GRU (pt steps; rows are k-major/b-minor: row = k*B + b) ----
    whs = whs_ref[...]
    bhns = jnp.broadcast_to(bhns_ref[...], (batch * SKIP, HID_S))
    hs = jnp.zeros((batch * SKIP, HID_S), jnp.float32)
    for p in range(pt):
        lo = (t0 + p * SKIP) * batch
        xt = xp_s[lo:lo + SKIP * batch, :][:, G1:]             # contiguous (B*SKIP, 128)
        hp = jnp.dot(_bf16(hs), whs, preferred_element_type=jnp.float32)
        r = jax.nn.sigmoid(xt[:, :HID_S] + hp[:, :HID_S])
        z = jax.nn.sigmoid(xt[:, HID_S:2 * HID_S] + hp[:, HID_S:2 * HID_S])
        n = jnp.tanh(xt[:, 2 * HID_S:3 * HID_S] + r * (hp[:, 2 * HID_S:] + bhns))
        hs = (1.0 - z) * n + z * hs

    # regroup: s_flat[b, k*HID_S + h] = hs[k*B + b, h]  (contiguous slices + 1 concat)
    s_flat = jnp.concatenate(
        [hs[k * batch:(k + 1) * batch, :] for k in range(SKIP)], axis=1)  # (B, 40)

    # -------- fused linear1 + highway add --------------------------------------
    s_pad = jnp.concatenate(
        [s_flat, jnp.zeros((batch, HR_PAD - SKIP * HID_S), jnp.float32)], axis=1)
    lin_in = jnp.concatenate([h1, s_pad], axis=1)              # (B, 256)
    res = jnp.dot(_bf16(lin_in), l1w_ref[...],
                  preferred_element_type=jnp.float32) + l1b_ref[...]      # (B, F)
    out_ref[...] = (res + z_hw).astype(out_ref.dtype)


# ------------------------------ forward wrapper --------------------------------
def lstnet_forward(x, kp, *, lags):
    batch, _, factors = x.shape
    T = lags - CK + 1
    # im2col (TIME-major rows) + highway window: pure layout plumbing, left to XLA.
    col = jnp.stack([x[:, k:k + T, :] for k in range(CK)], axis=2)       # (B, T, CK, F)
    col = col.transpose(1, 0, 2, 3).reshape(T * batch, CK * factors)     # row t*B+b, col k*F+f
    x_hw = x[:, lags - HW:, :].transpose(1, 0, 2).reshape(HW, batch * factors)

    kernel = functools.partial(_lstnet_kernel, batch=batch, lags=lags, factors=factors)
    return pl.pallas_call(
        kernel,
        out_shape=jax.ShapeDtypeStruct((batch, factors), jnp.float32),
        in_specs=[_vmem()] * 14,
        out_specs=_vmem(),
        scratch_shapes=[pltpu.VMEM((T * batch, GPROJ), jnp.float32)],
    )(col, x_hw, kp["conv_w"], kp["conv_b"], kp["w_proj"], kp["b_proj"],
      kp["wh1"], kp["bhn1"], kp["whs"], kp["bhns"],
      kp["l1w"], kp["l1b"], kp["hw_w"], kp["hw_b"])


# ------------------------- deterministic parameter init ------------------------
def init_params(key, factors):
    """Logical (unpadded, per-gate) parameters, mirroring the PyTorch module."""
    def nrm(k, shape, scale=0.1):
        return jax.random.normal(k, shape, dtype=jnp.float32) * scale

    keys = iter(jax.random.split(key, 32))

    def gru_params(in_size, hid):
        return {
            "wir": nrm(next(keys), (in_size, hid)),
            "wiz": nrm(next(keys), (in_size, hid)),
            "win": nrm(next(keys), (in_size, hid)),
            "whr": nrm(next(keys), (hid, hid)),
            "whz": nrm(next(keys), (hid, hid)),
            "whn": nrm(next(keys), (hid, hid)),
            "bir": nrm(next(keys), (1, hid)),
            "biz": nrm(next(keys), (1, hid)),
            "bin": nrm(next(keys), (1, hid)),
            "bhr": nrm(next(keys), (1, hid)),
            "bhz": nrm(next(keys), (1, hid)),
            "bhn": nrm(next(keys), (1, hid)),
        }

    return {
        "conv_w": nrm(next(keys), (CK * factors, HID_C)),   # rows k-major, f-minor
        "conv_b": nrm(next(keys), (1, HID_C)),
        "gru1": gru_params(HID_C, HID_R),
        "gru_skip": gru_params(HID_C, HID_S),
        "lin1_w": nrm(next(keys), (HID_R + SKIP * HID_S, factors)),
        "lin1_b": nrm(next(keys), (1, factors)),
        "hw_w": nrm(next(keys), (HW, 1)),
        "hw_b": nrm(next(keys), (1, 1)),
    }


def pack_params(p, factors):
    """Fuse gates, fold b_ih+b_hh (r/z), zero-pad lanes, cast matmul weights to bf16.

    NOTE: correctness of the 100->128 / 12->128 padding relies on every padded
    weight row/column and every padded bias lane being exactly zero (jnp.pad),
    so padded hidden lanes stay identically zero through the recurrences.
    """
    bf16 = jnp.bfloat16

    def pad_cols(a, n):
        return jnp.pad(a, ((0, 0), (0, n - a.shape[1])))

    def pad_rows(a, n):
        return jnp.pad(a, ((0, n - a.shape[0]), (0, 0)))

    def fuse_i(g, hpad):     # [Wir|Wiz|Win], each gate column-padded to hpad
        return jnp.concatenate([pad_cols(g["wir"], hpad),
                                pad_cols(g["wiz"], hpad),
                                pad_cols(g["win"], hpad)], axis=1)

    def fuse_h(g, hpad):     # [Whr|Whz|Whn]
        return jnp.concatenate([pad_cols(g["whr"], hpad),
                                pad_cols(g["whz"], hpad),
                                pad_cols(g["whn"], hpad)], axis=1)

    def fuse_bi(g, hpad):    # [bir+bhr | biz+bhz | bin]  (b_hn kept separate)
        return jnp.concatenate([pad_cols(g["bir"] + g["bhr"], hpad),
                                pad_cols(g["biz"] + g["bhz"], hpad),
                                pad_cols(g["bin"], hpad)], axis=1)

    g1, gs = p["gru1"], p["gru_skip"]
    wi1 = pad_rows(fuse_i(g1, HR_PAD), HC_PAD)                      # (128, 384)
    wis = pad_cols(pad_rows(fuse_i(gs, HID_S), HC_PAD), GS_PAD)     # (128, 128)
    w_proj = jnp.concatenate([wi1, wis], axis=1).astype(bf16)       # (128, 512)
    b_proj = jnp.concatenate([fuse_bi(g1, HR_PAD),
                              pad_cols(fuse_bi(gs, HID_S), GS_PAD)], axis=1)  # (1, 512)
    l1w = jnp.concatenate([pad_rows(p["lin1_w"][:HID_R, :], HR_PAD),
                           pad_rows(p["lin1_w"][HID_R:, :], HR_PAD)],
                          axis=0).astype(bf16)                      # (256, F)
    return {
        "conv_w": pad_cols(p["conv_w"], HC_PAD).astype(bf16),       # (CK*F, 128)
        "conv_b": pad_cols(p["conv_b"], HC_PAD),                    # (1, 128)
        "w_proj": w_proj,                                           # (128, 512)
        "b_proj": b_proj,                                           # (1, 512)
        "wh1": pad_rows(fuse_h(g1, HR_PAD), HR_PAD).astype(bf16),   # (128, 384)
        "bhn1": pad_cols(g1["bhn"], HR_PAD),                        # (1, 128)
        "whs": fuse_h(gs, HID_S).astype(bf16),                      # (4, 12)
        "bhns": gs["bhn"],                                          # (1, 4)
        "l1w": l1w,                                                 # (256, F)
        "l1b": p["lin1_b"],                                         # (1, F)
        "hw_w": p["hw_w"],                                          # (21, 1)
        "hw_b": p["hw_b"],                                          # (1, 1)
    }


if __name__ == "__main__":
    FACTORS = 8
    LAGS = 27        # pt = (27-7)//10 = 2; conv length 21 >= pt*skip = 20; hw = 21 <= 27
    B = 2

    key = jax.random.PRNGKey(0)
    k_x, k_p = jax.random.split(key)
    lags_vectors = jax.random.normal(k_x, (B, LAGS, FACTORS), dtype=jnp.float32)
    params = init_params(k_p, FACTORS)
    kp = pack_params(params, FACTORS)

    fwd = jax.jit(functools.partial(lstnet_forward, lags=LAGS))
    out = fwd(lags_vectors, kp)
    jax.block_until_ready(out)
    assert out.shape == (B, FACTORS) and out.dtype == jnp.float32
    print("KERNEL_OK")
</pallas_src>

<mosaic_0001>
module attributes {stable_mosaic.version = 11 : i64} {
  func.func @_lstnet_kernel(%arg0: memref<42x56xf32, #tpu.memory_space<vmem>>, %arg1: memref<21x16xf32, #tpu.memory_space<vmem>>, %arg2: memref<56x128xbf16, #tpu.memory_space<vmem>>, %arg3: memref<1x128xf32, #tpu.memory_space<vmem>>, %arg4: memref<128x512xbf16, #tpu.memory_space<vmem>>, %arg5: memref<1x512xf32, #tpu.memory_space<vmem>>, %arg6: memref<128x384xbf16, #tpu.memory_space<vmem>>, %arg7: memref<1x128xf32, #tpu.memory_space<vmem>>, %arg8: memref<4x12xbf16, #tpu.memory_space<vmem>>, %arg9: memref<1x4xf32, #tpu.memory_space<vmem>>, %arg10: memref<256x8xbf16, #tpu.memory_space<vmem>>, %arg11: memref<1x8xf32, #tpu.memory_space<vmem>>, %arg12: memref<21x1xf32, #tpu.memory_space<vmem>>, %arg13: memref<1x1xf32, #tpu.memory_space<vmem>>, %arg14: memref<2x8xf32, #tpu.memory_space<vmem>>, %arg15: memref<42x512xf32, #tpu.memory_space<vmem>>) attributes {dimension_semantics = [], scalar_prefetch = 0 : i64, scratch_operands = 1 : i64, tpu.core_type = #tpu.core_type<tc>} {
    %c0 = arith.constant 0 : index
    %c0_0 = arith.constant 0 : index
    %0 = vector.load %arg0[%c0, %c0_0] : memref<42x56xf32, #tpu.memory_space<vmem>>, vector<42x56xf32>
    %1 = arith.truncf %0 : vector<42x56xf32> to vector<42x56xbf16>
    %c0_1 = arith.constant 0 : index
    %c0_2 = arith.constant 0 : index
    %2 = vector.load %arg2[%c0_1, %c0_2] : memref<56x128xbf16, #tpu.memory_space<vmem>>, vector<56x128xbf16>
    %cst = arith.constant dense<0.000000e+00> : vector<42x128xf32>
    %3 = tpu.matmul %1, %2, %cst {dimension_numbers = #tpu.dot_dimension_numbers<[1], [0], [0], [1], [0, 0, 1, 1], [], []>} : vector<42x56xbf16>, vector<56x128xbf16>, vector<42x128xf32> -> vector<42x128xf32>
    %c0_3 = arith.constant 0 : index
    %c0_4 = arith.constant 0 : index
    %4 = vector.load %arg3[%c0_3, %c0_4] : memref<1x128xf32, #tpu.memory_space<vmem>>, vector<1x128xf32>
    %5 = vector.broadcast %4 : vector<1x128xf32> to vector<42x128xf32>
    %6 = arith.addf %3, %5 : vector<42x128xf32>
    %cst_5 = arith.constant 0.000000e+00 : f32
    %7 = vector.broadcast %cst_5 : f32 to vector<42x128xf32>
    %8 = arith.maximumf %6, %7 : vector<42x128xf32>
    %9 = arith.truncf %8 : vector<42x128xf32> to vector<42x128xbf16>
    %c0_6 = arith.constant 0 : index
    %c0_7 = arith.constant 0 : index
    %10 = vector.load %arg4[%c0_6, %c0_7] : memref<128x512xbf16, #tpu.memory_space<vmem>>, vector<128x512xbf16>
    %cst_8 = arith.constant dense<0.000000e+00> : vector<42x512xf32>
    %11 = tpu.matmul %9, %10, %cst_8 {dimension_numbers = #tpu.dot_dimension_numbers<[1], [0], [0], [1], [0, 0, 1, 1], [], []>} : vector<42x128xbf16>, vector<128x512xbf16>, vector<42x512xf32> -> vector<42x512xf32>
    %c0_9 = arith.constant 0 : index
    %c0_10 = arith.constant 0 : index
    %12 = vector.load %arg5[%c0_9, %c0_10] : memref<1x512xf32, #tpu.memory_space<vmem>>, vector<1x512xf32>
    %13 = vector.broadcast %12 : vector<1x512xf32> to vector<42x512xf32>
    %14 = arith.addf %11, %13 : vector<42x512xf32>
    %c0_11 = arith.constant 0 : index
    %c0_12 = arith.constant 0 : index
    %15 = vector.load %arg15[%c0_11, %c0_12] : memref<42x512xf32, #tpu.memory_space<vmem>>, vector<42x512xf32>
    tpu.vector_store %arg15[%c0_11, %c0_12], %14 {strides = array<i32>} : memref<42x512xf32, #tpu.memory_space<vmem>>, vector<42x512xf32>,
    %c0_13 = arith.constant 0 : index
    %c0_14 = arith.constant 0 : index
    %16 = vector.load %arg1[%c0_13, %c0_14] : memref<21x16xf32, #tpu.memory_space<vmem>>, vector<21x16xf32>
    %c0_15 = arith.constant 0 : index
    %c0_16 = arith.constant 0 : index
    %17 = vector.load %arg12[%c0_15, %c0_16] : memref<21x1xf32, #tpu.memory_space<vmem>>, vector<21x1xf32>
    %18 = vector.broadcast %17 : vector<21x1xf32> to vector<21x16xf32>
    %19 = arith.mulf %16, %18 : vector<21x16xf32>
    %cst_17 = arith.constant dense<0.000000e+00> : vector<16xf32>
    %20 = vector.multi_reduction <add>, %19, %cst_17 [0] : vector<21x16xf32> to vector<16xf32>
    %21 = vector.shape_cast %20 : vector<16xf32> to vector<1x16xf32>
    %22 = vector.extract_strided_slice %21 {offsets = [0, 0], sizes = [1, 8], strides = [1, 1]} : vector<1x16xf32> to vector<1x8xf32>
    %23 = vector.extract_strided_slice %21 {offsets = [0, 8], sizes = [1, 8], strides = [1, 1]} : vector<1x16xf32> to vector<1x8xf32>
    %24 = tpu.concatenate %22, %23 in 0 : vector<1x8xf32>, vector<1x8xf32> -> vector<2x8xf32>
    %c0_18 = arith.constant 0 : index
    %c0_19 = arith.constant 0 : index
    %25 = vector.load %arg13[%c0_18, %c0_19] : memref<1x1xf32, #tpu.memory_space<vmem>>, vector<1x1xf32>
    %26 = vector.broadcast %25 : vector<1x1xf32> to vector<2x8xf32>
    %27 = arith.addf %24, %26 : vector<2x8xf32>
    %c0_20 = arith.constant 0 : index
    %c0_21 = arith.constant 0 : index
    %28 = vector.load %arg6[%c0_20, %c0_21] : memref<128x384xbf16, #tpu.memory_space<vmem>>, vector<128x384xbf16>
    %c0_22 = arith.constant 0 : index
    %c0_23 = arith.constant 0 : index
    %29 = vector.load %arg7[%c0_22, %c0_23] : memref<1x128xf32, #tpu.memory_space<vmem>>, vector<1x128xf32>
    %30 = vector.shape_cast %29 : vector<1x128xf32> to vector<1x128xf32>
    %31 = vector.broadcast %30 : vector<1x128xf32> to vector<2x128xf32>
    %cst_24 = arith.constant 0.000000e+00 : f32
    %32 = vector.broadcast %cst_24 : f32 to vector<2x128xf32>
    %c0_25 = arith.constant 0 : index
    %c0_26 = arith.constant 0 : index
    %33 = vector.load %arg15[%c0_25, %c0_26] : memref<42x512xf32, #tpu.memory_space<vmem>>, vector<2x512xf32>
    %34 = vector.extract_strided_slice %33 {offsets = [0, 0], sizes = [2, 384], strides = [1, 1]} : vector<2x512xf32> to vector<2x384xf32>
    %35 = arith.truncf %32 : vector<2x128xf32> to vector<2x128xbf16>
    %cst_27 = arith.constant dense<0.000000e+00> : vector<2x384xf32>
    %36 = tpu.matmul %35, %28, %cst_27 {dimension_numbers = #tpu.dot_dimension_numbers<[1], [0], [0], [1], [0, 0, 1, 1], [], []>} : vector<2x128xbf16>, vector<128x384xbf16>, vector<2x384xf32> -> vector<2x384xf32>
    %37 = vector.extract_strided_slice %34 {offsets = [0, 0], sizes = [2, 128], strides = [1, 1]} : vector<2x384xf32> to vector<2x128xf32>
    %38 = vector.extract_strided_slice %36 {offsets = [0, 0], sizes = [2, 128], strides = [1, 1]} : vector<2x384xf32> to vector<2x128xf32>
    %39 = arith.addf %37, %38 : vector<2x128xf32>
    %40 = arith.negf %39 : vector<2x128xf32>
    %41 = math.exp %40 : vector<2x128xf32>
    %cst_28 = arith.constant 1.000000e+00 : f32
    %42 = vector.broadcast %cst_28 : f32 to vector<2x128xf32>
    %43 = arith.addf %42, %41 : vector<2x128xf32>
    %44 = arith.divf %42, %43 : vector<2x128xf32>
    %45 = vector.extract_strided_slice %34 {offsets = [0, 128], sizes = [2, 128], strides = [1, 1]} : vector<2x384xf32> to vector<2x128xf32>
    %46 = vector.extract_strided_slice %36 {offsets = [0, 128], sizes = [2, 128], strides = [1, 1]} : vector<2x384xf32> to vector<2x128xf32>
    %47 = arith.addf %45, %46 : vector<2x128xf32>
    %48 = arith.negf %47 : vector<2x128xf32>
    %49 = math.exp %48 : vector<2x128xf32>
    %cst_29 = arith.constant 1.000000e+00 : f32
    %50 = vector.broadcast %cst_29 : f32 to vector<2x128xf32>
    %51 = arith.addf %50, %49 : vector<2x128xf32>
    %52 = arith.divf %50, %51 : vector<2x128xf32>
    %53 = vector.extract_strided_slice %34 {offsets = [0, 256], sizes = [2, 128], strides = [1, 1]} : vector<2x384xf32> to vector<2x128xf32>
    %54 = vector.extract_strided_slice %36 {offsets = [0, 256], sizes = [2, 128], strides = [1, 1]} : vector<2x384xf32> to vector<2x128xf32>
    %55 = arith.addf %54, %31 : vector<2x128xf32>
    %56 = arith.mulf %44, %55 : vector<2x128xf32>
    %57 = arith.addf %53, %56 : vector<2x128xf32>
    %58 = math.tanh %57 : vector<2x128xf32>
    %cst_30 = arith.constant 1.000000e+00 : f32
    %59 = vector.broadcast %cst_30 : f32 to vector<2x128xf32>
    %60 = arith.subf %59, %52 : vector<2x128xf32>
    %61 = arith.mulf %60, %58 : vector<2x128xf32>
    %62 = arith.mulf %52, %32 : vector<2x128xf32>
    %63 = arith.addf %61, %62 : vector<2x128xf32>
    %c2 = arith.constant 2 : index
    %c0_31 = arith.constant 0 : index
    %64 = vector.load %arg15[%c2, %c0_31] : memref<42x512xf32, #tpu.memory_space<vmem>>, vector<2x512xf32>
    %65 = vector.extract_strided_slice %64 {offsets = [0, 0], sizes = [2, 384], strides = [1, 1]} : vector<2x512xf32> to vector<2x384xf32>
    %66 = arith.truncf %63 : vector<2x128xf32> to vector<2x128xbf16>
    %cst_32 = arith.constant dense<0.000000e+00> : vector<2x384xf32>
    %67 = tpu.matmul %66, %28, %cst_32 {dimension_numbers = #tpu.dot_dimension_numbers<[1], [0], [0], [1], [0, 0, 1, 1], [], []>} : vector<2x128xbf16>, vector<128x384xbf16>, vector<2x384xf32> -> vector<2x384xf32>
    %68 = vector.extract_strided_slice %65 {offsets = [0, 0], sizes = [2, 128], strides = [1, 1]} : vector<2x384xf32> to vector<2x128xf32>
    %69 = vector.extract_strided_slice %67 {offsets = [0, 0], sizes = [2, 128], strides = [1, 1]} : vector<2x384xf32> to vector<2x128xf32>
    %70 = arith.addf %68, %69 : vector<2x128xf32>
    %71 = arith.negf %70 : vector<2x128xf32>
    %72 = math.exp %71 : vector<2x128xf32>
    %cst_33 = arith.constant 1.000000e+00 : f32
    %73 = vector.broadcast %cst_33 : f32 to vector<2x128xf32>
    %74 = arith.addf %73, %72 : vector<2x128xf32>
    %75 = arith.divf %73, %74 : vector<2x128xf32>
    %76 = vector.extract_strided_slice %65 {offsets = [0, 128], sizes = [2, 128], strides = [1, 1]} : vector<2x384xf32> to vector<2x128xf32>
    %77 = vector.extract_strided_slice %67 {offsets = [0, 128], sizes = [2, 128], strides = [1, 1]} : vector<2x384xf32> to vector<2x128xf32>
    %78 = arith.addf %76, %77 : vector<2x128xf32>
    %79 = arith.negf %78 : vector<2x128xf32>
    %80 = math.exp %79 : vector<2x128xf32>
    %cst_34 = arith.constant 1.000000e+00 : f32
    %81 = vector.broadcast %cst_34 : f32 to vector<2x128xf32>
    %82 = arith.addf %81, %80 : vector<2x128xf32>
    %83 = arith.divf %81, %82 : vector<2x128xf32>
    %84 = vector.extract_strided_slice %65 {offsets = [0, 256], sizes = [2, 128], strides = [1, 1]} : vector<2x384xf32> to vector<2x128xf32>
    %85 = vector.extract_strided_slice %67 {offsets = [0, 256], sizes = [2, 128], strides = [1, 1]} : vector<2x384xf32> to vector<2x128xf32>
    %86 = arith.addf %85, %31 : vector<2x128xf32>
    %87 = arith.mulf %75, %86 : vector<2x128xf32>
    %88 = arith.addf %84, %87 : vector<2x128xf32>
    %89 = math.tanh %88 : vector<2x128xf32>
    %cst_35 = arith.constant 1.000000e+00 : f32
    %90 = vector.broadcast %cst_35 : f32 to vector<2x128xf32>
    %91 = arith.subf %90, %83 : vector<2x128xf32>
    %92 = arith.mulf %91, %89 : vector<2x128xf32>
    %93 = arith.mulf %83, %63 : vector<2x128xf32>
    %94 = arith.addf %92, %93 : vector<2x128xf32>
    %c4 = arith.constant 4 : index
    %c0_36 = arith.constant 0 : index
    %95 = vector.load %arg15[%c4, %c0_36] : memref<42x512xf32, #tpu.memory_space<vmem>>, vector<2x512xf32>
    %96 = vector.extract_strided_slice %95 {offsets = [0, 0], sizes = [2, 384], strides = [1, 1]} : vector<2x512xf32> to vector<2x384xf32>
    %97 = arith.truncf %94 : vector<2x128xf32> to vector<2x128xbf16>
    %cst_37 = arith.constant dense<0.000000e+00> : vector<2x384xf32>
    %98 = tpu.matmul %97, %28, %cst_37 {dimension_numbers = #tpu.dot_dimension_numbers<[1], [0], [0], [1], [0, 0, 1, 1], [], []>} : vector<2x128xbf16>, vector<128x384xbf16>, vector<2x384xf32> -> vector<2x384xf32>
    %99 = vector.extract_strided_slice %96 {offsets = [0, 0], sizes = [2, 128], strides = [1, 1]} : vector<2x384xf32> to vector<2x128xf32>
    %100 = vector.extract_strided_slice %98 {offsets = [0, 0], sizes = [2, 128], strides = [1, 1]} : vector<2x384xf32> to vector<2x128xf32>
    %101 = arith.addf %99, %100 : vector<2x128xf32>
    %102 = arith.negf %101 : vector<2x128xf32>
    %103 = math.exp %102 : vector<2x128xf32>
    %cst_38 = arith.constant 1.000000e+00 : f32
    %104 = vector.broadcast %cst_38 : f32 to vector<2x128xf32>
    %105 = arith.addf %104, %103 : vector<2x128xf32>
    %106 = arith.divf %104, %105 : vector<2x128xf32>
    %107 = vector.extract_strided_slice %96 {offsets = [0, 128], sizes = [2, 128], strides = [1, 1]} : vector<2x384xf32> to vector<2x128xf32>
    %108 = vector.extract_strided_slice %98 {offsets = [0, 128], sizes = [2, 128], strides = [1, 1]} : vector<2x384xf32> to vector<2x128xf32>
    %109 = arith.addf %107, %108 : vector<2x128xf32>
    %110 = arith.negf %109 : vector<2x128xf32>
    %111 = math.exp %110 : vector<2x128xf32>
    %cst_39 = arith.constant 1.000000e+00 : f32
    %112 = vector.broadcast %cst_39 : f32 to vector<2x128xf32>
    %113 = arith.addf %112, %111 : vector<2x128xf32>
    %114 = arith.divf %112, %113 : vector<2x128xf32>
    %115 = vector.extract_strided_slice %96 {offsets = [0, 256], sizes = [2, 128], strides = [1, 1]} : vector<2x384xf32> to vector<2x128xf32>
    %116 = vector.extract_strided_slice %98 {offsets = [0, 256], sizes = [2, 128], strides = [1, 1]} : vector<2x384xf32> to vector<2x128xf32>
    %117 = arith.addf %116, %31 : vector<2x128xf32>
    %118 = arith.mulf %106, %117 : vector<2x128xf32>
    %119 = arith.addf %115, %118 : vector<2x128xf32>
    %120 = math.tanh %119 : vector<2x128xf32>
    %cst_40 = arith.constant 1.000000e+00 : f32
    %121 = vector.broadcast %cst_40 : f32 to vector<2x128xf32>
    %122 = arith.subf %121, %114 : vector<2x128xf32>
    %123 = arith.mulf %122, %120 : vector<2x128xf32>
    %124 = arith.mulf %114, %94 : vector<2x128xf32>
    %125 = arith.addf %123, %124 : vector<2x128xf32>
    %c6 = arith.constant 6 : index
    %c0_41 = arith.constant 0 : index
    %126 = vector.load %arg15[%c6, %c0_41] : memref<42x512xf32, #tpu.memory_space<vmem>>, vector<2x512xf32>
    %127 = vector.extract_strided_slice %126 {offsets = [0, 0], sizes = [2, 384], strides = [1, 1]} : vector<2x512xf32> to vector<2x384xf32>
    %128 = arith.truncf %125 : vector<2x128xf32> to vector<2x128xbf16>
    %cst_42 = arith.constant dense<0.000000e+00> : vector<2x384xf32>
    %129 = tpu.matmul %128, %28, %cst_42 {dimension_numbers = #tpu.dot_dimension_numbers<[1], [0], [0], [1], [0, 0, 1, 1], [], []>} : vector<2x128xbf16>, vector<128x384xbf16>, vector<2x384xf32> -> vector<2x384xf32>
    %130 = vector.extract_strided_slice %127 {offsets = [0, 0], sizes = [2, 128], strides = [1, 1]} : vector<2x384xf32> to vector<2x128xf32>
    %131 = vector.extract_strided_slice %129 {offsets = [0, 0], sizes = [2, 128], strides = [1, 1]} : vector<2x384xf32> to vector<2x128xf32>
    %132 = arith.addf %130, %131 : vector<2x128xf32>
    %133 = arith.negf %132 : vector<2x128xf32>
    %134 = math.exp %133 : vector<2x128xf32>
    %cst_43 = arith.constant 1.000000e+00 : f32
    %135 = vector.broadcast %cst_43 : f32 to vector<2x128xf32>
    %136 = arith.addf %135, %134 : vector<2x128xf32>
    %137 = arith.divf %135, %136 : vector<2x128xf32>
    %138 = vector.extract_strided_slice %127 {offsets = [0, 128], sizes = [2, 128], strides = [1, 1]} : vector<2x384xf32> to vector<2x128xf32>
    %139 = vector.extract_strided_slice %129 {offsets = [0, 128], sizes = [2, 128], strides = [1, 1]} : vector<2x384xf32> to vector<2x128xf32>
    %140 = arith.addf %138, %139 : vector<2x128xf32>
    %141 = arith.negf %140 : vector<2x128xf32>
    %142 = math.exp %141 : vector<2x128xf32>
    %cst_44 = arith.constant 1.000000e+00 : f32
    %143 = vector.broadcast %cst_44 : f32 to vector<2x128xf32>
    %144 = arith.addf %143, %142 : vector<2x128xf32>
    %145 = arith.divf %143, %144 : vector<2x128xf32>
    %146 = vector.extract_strided_slice %127 {offsets = [0, 256], sizes = [2, 128], strides = [1, 1]} : vector<2x384xf32> to vector<2x128xf32>
    %147 = vector.extract_strided_slice %129 {offsets = [0, 256], sizes = [2, 128], strides = [1, 1]} : vector<2x384xf32> to vector<2x128xf32>
    %148 = arith.addf %147, %31 : vector<2x128xf32>
    %149 = arith.mulf %137, %148 : vector<2x128xf32>
    %150 = arith.addf %146, %149 : vector<2x128xf32>
    %151 = math.tanh %150 : vector<2x128xf32>
    %cst_45 = arith.constant 1.000000e+00 : f32
    %152 = vector.broadcast %cst_45 : f32 to vector<2x128xf32>
    %153 = arith.subf %152, %145 : vector<2x128xf32>
    %154 = arith.mulf %153, %151 : vector<2x128xf32>
    %155 = arith.mulf %145, %125 : vector<2x128xf32>
    %156 = arith.addf %154, %155 : vector<2x128xf32>
    %c8 = arith.constant 8 : index
    %c0_46 = arith.constant 0 : index
    %157 = vector.load %arg15[%c8, %c0_46] : memref<42x512xf32, #tpu.memory_space<vmem>>, vector<2x512xf32>
    %158 = vector.extract_strided_slice %157 {offsets = [0, 0], sizes = [2, 384], strides = [1, 1]} : vector<2x512xf32> to vector<2x384xf32>
    %159 = arith.truncf %156 : vector<2x128xf32> to vector<2x128xbf16>
    %cst_47 = arith.constant dense<0.000000e+00> : vector<2x384xf32>
    %160 = tpu.matmul %159, %28, %cst_47 {dimension_numbers = #tpu.dot_dimension_numbers<[1], [0], [0], [1], [0, 0, 1, 1], [], []>} : vector<2x128xbf16>, vector<128x384xbf16>, vector<2x384xf32> -> vector<2x384xf32>
    %161 = vector.extract_strided_slice %158 {offsets = [0, 0], sizes = [2, 128], strides = [1, 1]} : vector<2x384xf32> to vector<2x128xf32>
    %162 = vector.extract_strided_slice %160 {offsets = [0, 0], sizes = [2, 128], strides = [1, 1]} : vector<2x384xf32> to vector<2x128xf32>
    %163 = arith.addf %161, %162 : vector<2x128xf32>
    %164 = arith.negf %163 : vector<2x128xf32>
    %165 = math.exp %164 : vector<2x128xf32>
    %cst_48 = arith.constant 1.000000e+00 : f32
    %166 = vector.broadcast %cst_48 : f32 to vector<2x128xf32>
    %167 = arith.addf %166, %165 : vector<2x128xf32>
    %168 = arith.divf %166, %167 : vector<2x128xf32>
    %169 = vector.extract_strided_slice %158 {offsets = [0, 128], sizes = [2, 128], strides = [1, 1]} : vector<2x384xf32> to vector<2x128xf32>
    %170 = vector.extract_strided_slice %160 {offsets = [0, 128], sizes = [2, 128], strides = [1, 1]} : vector<2x384xf32> to vector<2x128xf32>
    %171 = arith.addf %169, %170 : vector<2x128xf32>
    %172 = arith.negf %171 : vector<2x128xf32>
    %173 = math.exp %172 : vector<2x128xf32>
    %cst_49 = arith.constant 1.000000e+00 : f32
    %174 = vector.broadcast %cst_49 : f32 to vector<2x128xf32>
    %175 = arith.addf %174, %173 : vector<2x128xf32>
    %176 = arith.divf %174, %175 : vector<2x128xf32>
    %177 = vector.extract_strided_slice %158 {offsets = [0, 256], sizes = [2, 128], strides = [1, 1]} : vector<2x384xf32> to vector<2x128xf32>
    %178 = vector.extract_strided_slice %160 {offsets = [0, 256], sizes = [2, 128], strides = [1, 1]} : vector<2x384xf32> to vector<2x128xf32>
    %179 = arith.addf %178, %31 : vector<2x128xf32>
    %180 = arith.mulf %168, %179 : vector<2x128xf32>
    %181 = arith.addf %177, %180 : vector<2x128xf32>
    %182 = math.tanh %181 : vector<2x128xf32>
    %cst_50 = arith.constant 1.000000e+00 : f32
    %183 = vector.broadcast %cst_50 : f32 to vector<2x128xf32>
    %184 = arith.subf %183, %176 : vector<2x128xf32>
    %185 = arith.mulf %184, %182 : vector<2x128xf32>
    %186 = arith.mulf %176, %156 : vector<2x128xf32>
    %187 = arith.addf %185, %186 : vector<2x128xf32>
    %c10 = arith.constant 10 : index
    %c0_51 = arith.constant 0 : index
    %188 = vector.load %arg15[%c10, %c0_51] : memref<42x512xf32, #tpu.memory_space<vmem>>, vector<2x512xf32>
    %189 = vector.extract_strided_slice %188 {offsets = [0, 0], sizes = [2, 384], strides = [1, 1]} : vector<2x512xf32> to vector<2x384xf32>
    %190 = arith.truncf %187 : vector<2x128xf32> to vector<2x128xbf16>
    %cst_52 = arith.constant dense<0.000000e+00> : vector<2x384xf32>
    %191 = tpu.matmul %190, %28, %cst_52 {dimension_numbers = #tpu.dot_dimension_numbers<[1], [0], [0], [1], [0, 0, 1, 1], [], []>} : vector<2x128xbf16>, vector<128x384xbf16>, vector<2x384xf32> -> vector<2x384xf32>
    %192 = vector.extract_strided_slice %189 {offsets = [0, 0], sizes = [2, 128], strides = [1, 1]} : vector<2x384xf32> to vector<2x128xf32>
    %193 = vector.extract_strided_slice %191 {offsets = [0, 0], sizes = [2, 128], strides = [1, 1]} : vector<2x384xf32> to vector<2x128xf32>
    %194 = arith.addf %192, %193 : vector<2x128xf32>
    %195 = arith.negf %194 : vector<2x128xf32>
    %196 = math.exp %195 : vector<2x128xf32>
    %cst_53 = arith.constant 1.000000e+00 : f32
    %197 = vector.broadcast %cst_53 : f32 to vector<2x128xf32>
    %198 = arith.addf %197, %196 : vector<2x128xf32>
    %199 = arith.divf %197, %198 : vector<2x128xf32>
    %200 = vector.extract_strided_slice %189 {offsets = [0, 128], sizes = [2, 128], strides = [1, 1]} : vector<2x384xf32> to vector<2x128xf32>
    %201 = vector.extract_strided_slice %191 {offsets = [0, 128], sizes = [2, 128], strides = [1, 1]} : vector<2x384xf32> to vector<2x128xf32>
    %202 = arith.addf %200, %201 : vector<2x128xf32>
    %203 = arith.negf %202 : vector<2x128xf32>
    %204 = math.exp %203 : vector<2x128xf32>
    %cst_54 = arith.constant 1.000000e+00 : f32
    %205 = vector.broadcast %cst_54 : f32 to vector<2x128xf32>
    %206 = arith.addf %205, %204 : vector<2x128xf32>
    %207 = arith.divf %205, %206 : vector<2x128xf32>
    %208 = vector.extract_strided_slice %189 {offsets = [0, 256], sizes = [2, 128], strides = [1, 1]} : vector<2x384xf32> to vector<2x128xf32>
    %209 = vector.extract_strided_slice %191 {offsets = [0, 256], sizes = [2, 128], strides = [1, 1]} : vector<2x384xf32> to vector<2x128xf32>
    %210 = arith.addf %209, %31 : vector<2x128xf32>
    %211 = arith.mulf %199, %210 : vector<2x128xf32>
    %212 = arith.addf %208, %211 : vector<2x128xf32>
    %213 = math.tanh %212 : vector<2x128xf32>
    %cst_55 = arith.constant 1.000000e+00 : f32
    %214 = vector.broadcast %cst_55 : f32 to vector<2x128xf32>
    %215 = arith.subf %214, %207 : vector<2x128xf32>
    %216 = arith.mulf %215, %213 : vector<2x128xf32>
    %217 = arith.mulf %207, %187 : vector<2x128xf32>
    %218 = arith.addf %216, %217 : vector<2x128xf32>
    %c12 = arith.constant 12 : index
    %c0_56 = arith.constant 0 : index
    %219 = vector.load %arg15[%c12, %c0_56] : memref<42x512xf32, #tpu.memory_space<vmem>>, vector<2x512xf32>
    %220 = vector.extract_strided_slice %219 {offsets = [0, 0], sizes = [2, 384], strides = [1, 1]} : vector<2x512xf32> to vector<2x384xf32>
    %221 = arith.truncf %218 : vector<2x128xf32> to vector<2x128xbf16>
    %cst_57 = arith.constant dense<0.000000e+00> : vector<2x384xf32>
    %222 = tpu.matmul %221, %28, %cst_57 {dimension_numbers = #tpu.dot_dimension_numbers<[1], [0], [0], [1], [0, 0, 1, 1], [], []>} : vector<2x128xbf16>, vector<128x384xbf16>, vector<2x384xf32> -> vector<2x384xf32>
    %223 = vector.extract_strided_slice %220 {offsets = [0, 0], sizes = [2, 128], strides = [1, 1]} : vector<2x384xf32> to vector<2x128xf32>
    %224 = vector.extract_strided_slice %222 {offsets = [0, 0], sizes = [2, 128], strides = [1, 1]} : vector<2x384xf32> to vector<2x128xf32>
    %225 = arith.addf %223, %224 : vector<2x128xf32>
    %226 = arith.negf %225 : vector<2x128xf32>
    %227 = math.exp %226 : vector<2x128xf32>
    %cst_58 = arith.constant 1.000000e+00 : f32
    %228 = vector.broadcast %cst_58 : f32 to vector<2x128xf32>
    %229 = arith.addf %228, %227 : vector<2x128xf32>
    %230 = arith.divf %228, %229 : vector<2x128xf32>
    %231 = vector.extract_strided_slice %220 {offsets = [0, 128], sizes = [2, 128], strides = [1, 1]} : vector<2x384xf32> to vector<2x128xf32>
    %232 = vector.extract_strided_slice %222 {offsets = [0, 128], sizes = [2, 128], strides = [1, 1]} : vector<2x384xf32> to vector<2x128xf32>
    %233 = arith.addf %231, %232 : vector<2x128xf32>
    %234 = arith.negf %233 : vector<2x128xf32>
    %235 = math.exp %234 : vector<2x128xf32>
    %cst_59 = arith.constant 1.000000e+00 : f32
    %236 = vector.broadcast %cst_59 : f32 to vector<2x128xf32>
    %237 = arith.addf %236, %235 : vector<2x128xf32>
    %238 = arith.divf %236, %237 : vector<2x128xf32>
    %239 = vector.extract_strided_slice %220 {offsets = [0, 256], sizes = [2, 128], strides = [1, 1]} : vector<2x384xf32> to vector<2x128xf32>
    %240 = vector.extract_strided_slice %222 {offsets = [0, 256], sizes = [2, 128], strides = [1, 1]} : vector<2x384xf32> to vector<2x128xf32>
    %241 = arith.addf %240, %31 : vector<2x128xf32>
    %242 = arith.mulf %230, %241 : vector<2x128xf32>
    %243 = arith.addf %239, %242 : vector<2x128xf32>
    %244 = math.tanh %243 : vector<2x128xf32>
    %cst_60 = arith.constant 1.000000e+00 : f32
    %245 = vector.broadcast %cst_60 : f32 to vector<2x128xf32>
    %246 = arith.subf %245, %238 : vector<2x128xf32>
    %247 = arith.mulf %246, %244 : vector<2x128xf32>
    %248 = arith.mulf %238, %218 : vector<2x128xf32>
    %249 = arith.addf %247, %248 : vector<2x128xf32>
    %c14 = arith.constant 14 : index
    %c0_61 = arith.constant 0 : index
    %250 = vector.load %arg15[%c14, %c0_61] : memref<42x512xf32, #tpu.memory_space<vmem>>, vector<2x512xf32>
    %251 = vector.extract_strided_slice %250 {offsets = [0, 0], sizes = [2, 384], strides = [1, 1]} : vector<2x512xf32> to vector<2x384xf32>
    %252 = arith.truncf %249 : vector<2x128xf32> to vector<2x128xbf16>
    %cst_62 = arith.constant dense<0.000000e+00> : vector<2x384xf32>
    %253 = tpu.matmul %252, %28, %cst_62 {dimension_numbers = #tpu.dot_dimension_numbers<[1], [0], [0], [1], [0, 0, 1, 1], [], []>} : vector<2x128xbf16>, vector<128x384xbf16>, vector<2x384xf32> -> vector<2x384xf32>
    %254 = vector.extract_strided_slice %251 {offsets = [0, 0], sizes = [2, 128], strides = [1, 1]} : vector<2x384xf32> to vector<2x128xf32>
    %255 = vector.extract_strided_slice %253 {offsets = [0, 0], sizes = [2, 128], strides = [1, 1]} : vector<2x384xf32> to vector<2x128xf32>
    %256 = arith.addf %254, %255 : vector<2x128xf32>
    %257 = arith.negf %256 : vector<2x128xf32>
    %258 = math.exp %257 : vector<2x128xf32>
    %cst_63 = arith.constant 1.000000e+00 : f32
    %259 = vector.broadcast %cst_63 : f32 to vector<2x128xf32>
    %260 = arith.addf %259, %258 : vector<2x128xf32>
    %261 = arith.divf %259, %260 : vector<2x128xf32>
    %262 = vector.extract_strided_slice %251 {offsets = [0, 128], sizes = [2, 128], strides = [1, 1]} : vector<2x384xf32> to vector<2x128xf32>
    %263 = vector.extract_strided_slice %253 {offsets = [0, 128], sizes = [2, 128], strides = [1, 1]} : vector<2x384xf32> to vector<2x128xf32>
    %264 = arith.addf %262, %263 : vector<2x128xf32>
    %265 = arith.negf %264 : vector<2x128xf32>
    %266 = math.exp %265 : vector<2x128xf32>
    %cst_64 = arith.constant 1.000000e+00 : f32
    %267 = vector.broadcast %cst_64 : f32 to vector<2x128xf32>
    %268 = arith.addf %267, %266 : vector<2x128xf32>
    %269 = arith.divf %267, %268 : vector<2x128xf32>
    %270 = vector.extract_strided_slice %251 {offsets = [0, 256], sizes = [2, 128], strides = [1, 1]} : vector<2x384xf32> to vector<2x128xf32>
    %271 = vector.extract_strided_slice %253 {offsets = [0, 256], sizes = [2, 128], strides = [1, 1]} : vector<2x384xf32> to vector<2x128xf32>
    %272 = arith.addf %271, %31 : vector<2x128xf32>
    %273 = arith.mulf %261, %272 : vector<2x128xf32>
    %274 = arith.addf %270, %273 : vector<2x128xf32>
    %275 = math.tanh %274 : vector<2x128xf32>
    %cst_65 = arith.constant 1.000000e+00 : f32
    %276 = vector.broadcast %cst_65 : f32 to vector<2x128xf32>
    %277 = arith.subf %276, %269 : vector<2x128xf32>
    %278 = arith.mulf %277, %275 : vector<2x128xf32>
    %279 = arith.mulf %269, %249 : vector<2x128xf32>
    %280 = arith.addf %278, %279 : vector<2x128xf32>
    %c16 = arith.constant 16 : index
    %c0_66 = arith.constant 0 : index
    %281 = vector.load %arg15[%c16, %c0_66] : memref<42x512xf32, #tpu.memory_space<vmem>>, vector<2x512xf32>
    %282 = vector.extract_strided_slice %281 {offsets = [0, 0], sizes = [2, 384], strides = [1, 1]} : vector<2x512xf32> to vector<2x384xf32>
    %283 = arith.truncf %280 : vector<2x128xf32> to vector<2x128xbf16>
    %cst_67 = arith.constant dense<0.000000e+00> : vector<2x384xf32>
    %284 = tpu.matmul %283, %28, %cst_67 {dimension_numbers = #tpu.dot_dimension_numbers<[1], [0], [0], [1], [0, 0, 1, 1], [], []>} : vector<2x128xbf16>, vector<128x384xbf16>, vector<2x384xf32> -> vector<2x384xf32>
    %285 = vector.extract_strided_slice %282 {offsets = [0, 0], sizes = [2, 128], strides = [1, 1]} : vector<2x384xf32> to vector<2x128xf32>
    %286 = vector.extract_strided_slice %284 {offsets = [0, 0], sizes = [2, 128], strides = [1, 1]} : vector<2x384xf32> to vector<2x128xf32>
    %287 = arith.addf %285, %286 : vector<2x128xf32>
    %288 = arith.negf %287 : vector<2x128xf32>
    %289 = math.exp %288 : vector<2x128xf32>
    %cst_68 = arith.constant 1.000000e+00 : f32
    %290 = vector.broadcast %cst_68 : f32 to vector<2x128xf32>
    %291 = arith.addf %290, %289 : vector<2x128xf32>
    %292 = arith.divf %290, %291 : vector<2x128xf32>
    %293 = vector.extract_strided_slice %282 {offsets = [0, 128], sizes = [2, 128], strides = [1, 1]} : vector<2x384xf32> to vector<2x128xf32>
    %294 = vector.extract_strided_slice %284 {offsets = [0, 128], sizes = [2, 128], strides = [1, 1]} : vector<2x384xf32> to vector<2x128xf32>
    %295 = arith.addf %293, %294 : vector<2x128xf32>
    %296 = arith.negf %295 : vector<2x128xf32>
    %297 = math.exp %296 : vector<2x128xf32>
    %cst_69 = arith.constant 1.000000e+00 : f32
    %298 = vector.broadcast %cst_69 : f32 to vector<2x128xf32>
    %299 = arith.addf %298, %297 : vector<2x128xf32>
    %300 = arith.divf %298, %299 : vector<2x128xf32>
    %301 = vector.extract_strided_slice %282 {offsets = [0, 256], sizes = [2, 128], strides = [1, 1]} : vector<2x384xf32> to vector<2x128xf32>
    %302 = vector.extract_strided_slice %284 {offsets = [0, 256], sizes = [2, 128], strides = [1, 1]} : vector<2x384xf32> to vector<2x128xf32>
    %303 = arith.addf %302, %31 : vector<2x128xf32>
    %304 = arith.mulf %292, %303 : vector<2x128xf32>
    %305 = arith.addf %301, %304 : vector<2x128xf32>
    %306 = math.tanh %305 : vector<2x128xf32>
    %cst_70 = arith.constant 1.000000e+00 : f32
    %307 = vector.broadcast %cst_70 : f32 to vector<2x128xf32>
    %308 = arith.subf %307, %300 : vector<2x128xf32>
    %309 = arith.mulf %308, %306 : vector<2x128xf32>
    %310 = arith.mulf %300, %280 : vector<2x128xf32>
    %311 = arith.addf %309, %310 : vector<2x128xf32>
    %c18 = arith.constant 18 : index
    %c0_71 = arith.constant 0 : index
    %312 = vector.load %arg15[%c18, %c0_71] : memref<42x512xf32, #tpu.memory_space<vmem>>, vector<2x512xf32>
    %313 = vector.extract_strided_slice %312 {offsets = [0, 0], sizes = [2, 384], strides = [1, 1]} : vector<2x512xf32> to vector<2x384xf32>
    %314 = arith.truncf %311 : vector<2x128xf32> to vector<2x128xbf16>
    %cst_72 = arith.constant dense<0.000000e+00> : vector<2x384xf32>
    %315 = tpu.matmul %314, %28, %cst_72 {dimension_numbers = #tpu.dot_dimension_numbers<[1], [0], [0], [1], [0, 0, 1, 1], [], []>} : vector<2x128xbf16>, vector<128x384xbf16>, vector<2x384xf32> -> vector<2x384xf32>
    %316 = vector.extract_strided_slice %313 {offsets = [0, 0], sizes = [2, 128], strides = [1, 1]} : vector<2x384xf32> to vector<2x128xf32>
    %317 = vector.extract_strided_slice %315 {offsets = [0, 0], sizes = [2, 128], strides = [1, 1]} : vector<2x384xf32> to vector<2x128xf32>
    %318 = arith.addf %316, %317 : vector<2x128xf32>
    %319 = arith.negf %318 : vector<2x128xf32>
    %320 = math.exp %319 : vector<2x128xf32>
    %cst_73 = arith.constant 1.000000e+00 : f32
    %321 = vector.broadcast %cst_73 : f32 to vector<2x128xf32>
    %322 = arith.addf %321, %320 : vector<2x128xf32>
    %323 = arith.divf %321, %322 : vector<2x128xf32>
    %324 = vector.extract_strided_slice %313 {offsets = [0, 128], sizes = [2, 128], strides = [1, 1]} : vector<2x384xf32> to vector<2x128xf32>
    %325 = vector.extract_strided_slice %315 {offsets = [0, 128], sizes = [2, 128], strides = [1, 1]} : vector<2x384xf32> to vector<2x128xf32>
    %326 = arith.addf %324, %325 : vector<2x128xf32>
    %327 = arith.negf %326 : vector<2x128xf32>
    %328 = math.exp %327 : vector<2x128xf32>
    %cst_74 = arith.constant 1.000000e+00 : f32
    %329 = vector.broadcast %cst_74 : f32 to vector<2x128xf32>
    %330 = arith.addf %329, %328 : vector<2x128xf32>
    %331 = arith.divf %329, %330 : vector<2x128xf32>
    %332 = vector.extract_strided_slice %313 {offsets = [0, 256], sizes = [2, 128], strides = [1, 1]} : vector<2x384xf32> to vector<2x128xf32>
    %333 = vector.extract_strided_slice %315 {offsets = [0, 256], sizes = [2, 128], strides = [1, 1]} : vector<2x384xf32> to vector<2x128xf32>
    %334 = arith.addf %333, %31 : vector<2x128xf32>
    %335 = arith.mulf %323, %334 : vector<2x128xf32>
    %336 = arith.addf %332, %335 : vector<2x128xf32>
    %337 = math.tanh %336 : vector<2x128xf32>
    %cst_75 = arith.constant 1.000000e+00 : f32
    %338 = vector.broadcast %cst_75 : f32 to vector<2x128xf32>
    %339 = arith.subf %338, %331 : vector<2x128xf32>
    %340 = arith.mulf %339, %337 : vector<2x128xf32>
    %341 = arith.mulf %331, %311 : vector<2x128xf32>
    %342 = arith.addf %340, %341 : vector<2x128xf32>
    %c20 = arith.constant 20 : index
    %c0_76 = arith.constant 0 : index
    %343 = vector.load %arg15[%c20, %c0_76] : memref<42x512xf32, #tpu.memory_space<vmem>>, vector<2x512xf32>
    %344 = vector.extract_strided_slice %343 {offsets = [0, 0], sizes = [2, 384], strides = [1, 1]} : vector<2x512xf32> to vector<2x384xf32>
    %345 = arith.truncf %342 : vector<2x128xf32> to vector<2x128xbf16>
    %cst_77 = arith.constant dense<0.000000e+00> : vector<2x384xf32>
    %346 = tpu.matmul %345, %28, %cst_77 {dimension_numbers = #tpu.dot_dimension_numbers<[1], [0], [0], [1], [0, 0, 1, 1], [], []>} : vector<2x128xbf16>, vector<128x384xbf16>, vector<2x384xf32> -> vector<2x384xf32>
    %347 = vector.extract_strided_slice %344 {offsets = [0, 0], sizes = [2, 128], strides = [1, 1]} : vector<2x384xf32> to vector<2x128xf32>
    %348 = vector.extract_strided_slice %346 {offsets = [0, 0], sizes = [2, 128], strides = [1, 1]} : vector<2x384xf32> to vector<2x128xf32>
    %349 = arith.addf %347, %348 : vector<2x128xf32>
    %350 = arith.negf %349 : vector<2x128xf32>
    %351 = math.exp %350 : vector<2x128xf32>
    %cst_78 = arith.constant 1.000000e+00 : f32
    %352 = vector.broadcast %cst_78 : f32 to vector<2x128xf32>
    %353 = arith.addf %352, %351 : vector<2x128xf32>
    %354 = arith.divf %352, %353 : vector<2x128xf32>
    %355 = vector.extract_strided_slice %344 {offsets = [0, 128], sizes = [2, 128], strides = [1, 1]} : vector<2x384xf32> to vector<2x128xf32>
    %356 = vector.extract_strided_slice %346 {offsets = [0, 128], sizes = [2, 128], strides = [1, 1]} : vector<2x384xf32> to vector<2x128xf32>
    %357 = arith.addf %355, %356 : vector<2x128xf32>
    %358 = arith.negf %357 : vector<2x128xf32>
    %359 = math.exp %358 : vector<2x128xf32>
    %cst_79 = arith.constant 1.000000e+00 : f32
    %360 = vector.broadcast %cst_79 : f32 to vector<2x128xf32>
    %361 = arith.addf %360, %359 : vector<2x128xf32>
    %362 = arith.divf %360, %361 : vector<2x128xf32>
    %363 = vector.extract_strided_slice %344 {offsets = [0, 256], sizes = [2, 128], strides = [1, 1]} : vector<2x384xf32> to vector<2x128xf32>
    %364 = vector.extract_strided_slice %346 {offsets = [0, 256], sizes = [2, 128], strides = [1, 1]} : vector<2x384xf32> to vector<2x128xf32>
    %365 = arith.addf %364, %31 : vector<2x128xf32>
    %366 = arith.mulf %354, %365 : vector<2x128xf32>
    %367 = arith.addf %363, %366 : vector<2x128xf32>
    %368 = math.tanh %367 : vector<2x128xf32>
    %cst_80 = arith.constant 1.000000e+00 : f32
    %369 = vector.broadcast %cst_80 : f32 to vector<2x128xf32>
    %370 = arith.subf %369, %362 : vector<2x128xf32>
    %371 = arith.mulf %370, %368 : vector<2x128xf32>
    %372 = arith.mulf %362, %342 : vector<2x128xf32>
    %373 = arith.addf %371, %372 : vector<2x128xf32>
    %c22 = arith.constant 22 : index
    %c0_81 = arith.constant 0 : index
    %374 = vector.load %arg15[%c22, %c0_81] : memref<42x512xf32, #tpu.memory_space<vmem>>, vector<2x512xf32>
    %375 = vector.extract_strided_slice %374 {offsets = [0, 0], sizes = [2, 384], strides = [1, 1]} : vector<2x512xf32> to vector<2x384xf32>
    %376 = arith.truncf %373 : vector<2x128xf32> to vector<2x128xbf16>
    %cst_82 = arith.constant dense<0.000000e+00> : vector<2x384xf32>
    %377 = tpu.matmul %376, %28, %cst_82 {dimension_numbers = #tpu.dot_dimension_numbers<[1], [0], [0], [1], [0, 0, 1, 1], [], []>} : vector<2x128xbf16>, vector<128x384xbf16>, vector<2x384xf32> -> vector<2x384xf32>
    %378 = vector.extract_strided_slice %375 {offsets = [0, 0], sizes = [2, 128], strides = [1, 1]} : vector<2x384xf32> to vector<2x128xf32>
    %379 = vector.extract_strided_slice %377 {offsets = [0, 0], sizes = [2, 128], strides = [1, 1]} : vector<2x384xf32> to vector<2x128xf32>
    %380 = arith.addf %378, %379 : vector<2x128xf32>
    %381 = arith.negf %380 : vector<2x128xf32>
    %382 = math.exp %381 : vector<2x128xf32>
    %cst_83 = arith.constant 1.000000e+00 : f32
    %383 = vector.broadcast %cst_83 : f32 to vector<2x128xf32>
    %384 = arith.addf %383, %382 : vector<2x128xf32>
    %385 = arith.divf %383, %384 : vector<2x128xf32>
    %386 = vector.extract_strided_slice %375 {offsets = [0, 128], sizes = [2, 128], strides = [1, 1]} : vector<2x384xf32> to vector<2x128xf32>
    %387 = vector.extract_strided_slice %377 {offsets = [0, 128], sizes = [2, 128], strides = [1, 1]} : vector<2x384xf32> to vector<2x128xf32>
    %388 = arith.addf %386, %387 : vector<2x128xf32>
    %389 = arith.negf %388 : vector<2x128xf32>
    %390 = math.exp %389 : vector<2x128xf32>
    %cst_84 = arith.constant 1.000000e+00 : f32
    %391 = vector.broadcast %cst_84 : f32 to vector<2x128xf32>
    %392 = arith.addf %391, %390 : vector<2x128xf32>
    %393 = arith.divf %391, %392 : vector<2x128xf32>
    %394 = vector.extract_strided_slice %375 {offsets = [0, 256], sizes = [2, 128], strides = [1, 1]} : vector<2x384xf32> to vector<2x128xf32>
    %395 = vector.extract_strided_slice %377 {offsets = [0, 256], sizes = [2, 128], strides = [1, 1]} : vector<2x384xf32> to vector<2x128xf32>
    %396 = arith.addf %395, %31 : vector<2x128xf32>
    %397 = arith.mulf %385, %396 : vector<2x128xf32>
    %398 = arith.addf %394, %397 : vector<2x128xf32>
    %399 = math.tanh %398 : vector<2x128xf32>
    %cst_85 = arith.constant 1.000000e+00 : f32
    %400 = vector.broadcast %cst_85 : f32 to vector<2x128xf32>
    %401 = arith.subf %400, %393 : vector<2x128xf32>
    %402 = arith.mulf %401, %399 : vector<2x128xf32>
    %403 = arith.mulf %393, %373 : vector<2x128xf32>
    %404 = arith.addf %402, %403 : vector<2x128xf32>
    %c24 = arith.constant 24 : index
    %c0_86 = arith.constant 0 : index
    %405 = vector.load %arg15[%c24, %c0_86] : memref<42x512xf32, #tpu.memory_space<vmem>>, vector<2x512xf32>
    %406 = vector.extract_strided_slice %405 {offsets = [0, 0], sizes = [2, 384], strides = [1, 1]} : vector<2x512xf32> to vector<2x384xf32>
    %407 = arith.truncf %404 : vector<2x128xf32> to vector<2x128xbf16>
    %cst_87 = arith.constant dense<0.000000e+00> : vector<2x384xf32>
    %408 = tpu.matmul %407, %28, %cst_87 {dimension_numbers = #tpu.dot_dimension_numbers<[1], [0], [0], [1], [0, 0, 1, 1], [], []>} : vector<2x128xbf16>, vector<128x384xbf16>, vector<2x384xf32> -> vector<2x384xf32>
    %409 = vector.extract_strided_slice %406 {offsets = [0, 0], sizes = [2, 128], strides = [1, 1]} : vector<2x384xf32> to vector<2x128xf32>
    %410 = vector.extract_strided_slice %408 {offsets = [0, 0], sizes = [2, 128], strides = [1, 1]} : vector<2x384xf32> to vector<2x128xf32>
    %411 = arith.addf %409, %410 : vector<2x128xf32>
    %412 = arith.negf %411 : vector<2x128xf32>
    %413 = math.exp %412 : vector<2x128xf32>
    %cst_88 = arith.constant 1.000000e+00 : f32
    %414 = vector.broadcast %cst_88 : f32 to vector<2x128xf32>
    %415 = arith.addf %414, %413 : vector<2x128xf32>
    %416 = arith.divf %414, %415 : vector<2x128xf32>
    %417 = vector.extract_strided_slice %406 {offsets = [0, 128], sizes = [2, 128], strides = [1, 1]} : vector<2x384xf32> to vector<2x128xf32>
    %418 = vector.extract_strided_slice %408 {offsets = [0, 128], sizes = [2, 128], strides = [1, 1]} : vector<2x384xf32> to vector<2x128xf32>
    %419 = arith.addf %417, %418 : vector<2x128xf32>
    %420 = arith.negf %419 : vector<2x128xf32>
    %421 = math.exp %420 : vector<2x128xf32>
    %cst_89 = arith.constant 1.000000e+00 : f32
    %422 = vector.broadcast %cst_89 : f32 to vector<2x128xf32>
    %423 = arith.addf %422, %421 : vector<2x128xf32>
    %424 = arith.divf %422, %423 : vector<2x128xf32>
    %425 = vector.extract_strided_slice %406 {offsets = [0, 256], sizes = [2, 128], strides = [1, 1]} : vector<2x384xf32> to vector<2x128xf32>
    %426 = vector.extract_strided_slice %408 {offsets = [0, 256], sizes = [2, 128], strides = [1, 1]} : vector<2x384xf32> to vector<2x128xf32>
    %427 = arith.addf %426, %31 : vector<2x128xf32>
    %428 = arith.mulf %416, %427 : vector<2x128xf32>
    %429 = arith.addf %425, %428 : vector<2x128xf32>
    %430 = math.tanh %429 : vector<2x128xf32>
    %cst_90 = arith.constant 1.000000e+00 : f32
    %431 = vector.broadcast %cst_90 : f32 to vector<2x128xf32>
    %432 = arith.subf %431, %424 : vector<2x128xf32>
    %433 = arith.mulf %432, %430 : vector<2x128xf32>
    %434 = arith.mulf %424, %404 : vector<2x128xf32>
    %435 = arith.addf %433, %434 : vector<2x128xf32>
    %c26 = arith.constant 26 : index
    %c0_91 = arith.constant 0 : index
    %436 = vector.load %arg15[%c26, %c0_91] : memref<42x512xf32, #tpu.memory_space<vmem>>, vector<2x512xf32>
    %437 = vector.extract_strided_slice %436 {offsets = [0, 0], sizes = [2, 384], strides = [1, 1]} : vector<2x512xf32> to vector<2x384xf32>
    %438 = arith.truncf %435 : vector<2x128xf32> to vector<2x128xbf16>
    %cst_92 = arith.constant dense<0.000000e+00> : vector<2x384xf32>
    %439 = tpu.matmul %438, %28, %cst_92 {dimension_numbers = #tpu.dot_dimension_numbers<[1], [0], [0], [1], [0, 0, 1, 1], [], []>} : vector<2x128xbf16>, vector<128x384xbf16>, vector<2x384xf32> -> vector<2x384xf32>
    %440 = vector.extract_strided_slice %437 {offsets = [0, 0], sizes = [2, 128], strides = [1, 1]} : vector<2x384xf32> to vector<2x128xf32>
    %441 = vector.extract_strided_slice %439 {offsets = [0, 0], sizes = [2, 128], strides = [1, 1]} : vector<2x384xf32> to vector<2x128xf32>
    %442 = arith.addf %440, %441 : vector<2x128xf32>
    %443 = arith.negf %442 : vector<2x128xf32>
    %444 = math.exp %443 : vector<2x128xf32>
    %cst_93 = arith.constant 1.000000e+00 : f32
    %445 = vector.broadcast %cst_93 : f32 to vector<2x128xf32>
    %446 = arith.addf %445, %444 : vector<2x128xf32>
    %447 = arith.divf %445, %446 : vector<2x128xf32>
    %448 = vector.extract_strided_slice %437 {offsets = [0, 128], sizes = [2, 128], strides = [1, 1]} : vector<2x384xf32> to vector<2x128xf32>
    %449 = vector.extract_strided_slice %439 {offsets = [0, 128], sizes = [2, 128], strides = [1, 1]} : vector<2x384xf32> to vector<2x128xf32>
    %450 = arith.addf %448, %449 : vector<2x128xf32>
    %451 = arith.negf %450 : vector<2x128xf32>
    %452 = math.exp %451 : vector<2x128xf32>
    %cst_94 = arith.constant 1.000000e+00 : f32
    %453 = vector.broadcast %cst_94 : f32 to vector<2x128xf32>
    %454 = arith.addf %453, %452 : vector<2x128xf32>
    %455 = arith.divf %453, %454 : vector<2x128xf32>
    %456 = vector.extract_strided_slice %437 {offsets = [0, 256], sizes = [2, 128], strides = [1, 1]} : vector<2x384xf32> to vector<2x128xf32>
    %457 = vector.extract_strided_slice %439 {offsets = [0, 256], sizes = [2, 128], strides = [1, 1]} : vector<2x384xf32> to vector<2x128xf32>
    %458 = arith.addf %457, %31 : vector<2x128xf32>
    %459 = arith.mulf %447, %458 : vector<2x128xf32>
    %460 = arith.addf %456, %459 : vector<2x128xf32>
    %461 = math.tanh %460 : vector<2x128xf32>
    %cst_95 = arith.constant 1.000000e+00 : f32
    %462 = vector.broadcast %cst_95 : f32 to vector<2x128xf32>
    %463 = arith.subf %462, %455 : vector<2x128xf32>
    %464 = arith.mulf %463, %461 : vector<2x128xf32>
    %465 = arith.mulf %455, %435 : vector<2x128xf32>
    %466 = arith.addf %464, %465 : vector<2x128xf32>
    %c28 = arith.constant 28 : index
    %c0_96 = arith.constant 0 : index
    %467 = vector.load %arg15[%c28, %c0_96] : memref<42x512xf32, #tpu.memory_space<vmem>>, vector<2x512xf32>
    %468 = vector.extract_strided_slice %467 {offsets = [0, 0], sizes = [2, 384], strides = [1, 1]} : vector<2x512xf32> to vector<2x384xf32>
    %469 = arith.truncf %466 : vector<2x128xf32> to vector<2x128xbf16>
    %cst_97 = arith.constant dense<0.000000e+00> : vector<2x384xf32>
    %470 = tpu.matmul %469, %28, %cst_97 {dimension_numbers = #tpu.dot_dimension_numbers<[1], [0], [0], [1], [0, 0, 1, 1], [], []>} : vector<2x128xbf16>, vector<128x384xbf16>, vector<2x384xf32> -> vector<2x384xf32>
    %471 = vector.extract_strided_slice %468 {offsets = [0, 0], sizes = [2, 128], strides = [1, 1]} : vector<2x384xf32> to vector<2x128xf32>
    %472 = vector.extract_strided_slice %470 {offsets = [0, 0], sizes = [2, 128], strides = [1, 1]} : vector<2x384xf32> to vector<2x128xf32>
    %473 = arith.addf %471, %472 : vector<2x128xf32>
    %474 = arith.negf %473 : vector<2x128xf32>
    %475 = math.exp %474 : vector<2x128xf32>
    %cst_98 = arith.constant 1.000000e+00 : f32
    %476 = vector.broadcast %cst_98 : f32 to vector<2x128xf32>
    %477 = arith.addf %476, %475 : vector<2x128xf32>
    %478 = arith.divf %476, %477 : vector<2x128xf32>
    %479 = vector.extract_strided_slice %468 {offsets = [0, 128], sizes = [2, 128], strides = [1, 1]} : vector<2x384xf32> to vector<2x128xf32>
    %480 = vector.extract_strided_slice %470 {offsets = [0, 128], sizes = [2, 128], strides = [1, 1]} : vector<2x384xf32> to vector<2x128xf32>
    %481 = arith.addf %479, %480 : vector<2x128xf32>
    %482 = arith.negf %481 : vector<2x128xf32>
    %483 = math.exp %482 : vector<2x128xf32>
    %cst_99 = arith.constant 1.000000e+00 : f32
    %484 = vector.broadcast %cst_99 : f32 to vector<2x128xf32>
    %485 = arith.addf %484, %483 : vector<2x128xf32>
    %486 = arith.divf %484, %485 : vector<2x128xf32>
    %487 = vector.extract_strided_slice %468 {offsets = [0, 256], sizes = [2, 128], strides = [1, 1]} : vector<2x384xf32> to vector<2x128xf32>
    %488 = vector.extract_strided_slice %470 {offsets = [0, 256], sizes = [2, 128], strides = [1, 1]} : vector<2x384xf32> to vector<2x128xf32>
    %489 = arith.addf %488, %31 : vector<2x128xf32>
    %490 = arith.mulf %478, %489 : vector<2x128xf32>
    %491 = arith.addf %487, %490 : vector<2x128xf32>
    %492 = math.tanh %491 : vector<2x128xf32>
    %cst_100 = arith.constant 1.000000e+00 : f32
    %493 = vector.broadcast %cst_100 : f32 to vector<2x128xf32>
    %494 = arith.subf %493, %486 : vector<2x128xf32>
    %495 = arith.mulf %494, %492 : vector<2x128xf32>
    %496 = arith.mulf %486, %466 : vector<2x128xf32>
    %497 = arith.addf %495, %496 : vector<2x128xf32>
    %c30 = arith.constant 30 : index
    %c0_101 = arith.constant 0 : index
    %498 = vector.load %arg15[%c30, %c0_101] : memref<42x512xf32, #tpu.memory_space<vmem>>, vector<2x512xf32>
    %499 = vector.extract_strided_slice %498 {offsets = [0, 0], sizes = [2, 384], strides = [1, 1]} : vector<2x512xf32> to vector<2x384xf32>
    %500 = arith.truncf %497 : vector<2x128xf32> to vector<2x128xbf16>
    %cst_102 = arith.constant dense<0.000000e+00> : vector<2x384xf32>
    %501 = tpu.matmul %500, %28, %cst_102 {dimension_numbers = #tpu.dot_dimension_numbers<[1], [0], [0], [1], [0, 0, 1, 1], [], []>} : vector<2x128xbf16>, vector<128x384xbf16>, vector<2x384xf32> -> vector<2x384xf32>
    %502 = vector.extract_strided_slice %499 {offsets = [0, 0], sizes = [2, 128], strides = [1, 1]} : vector<2x384xf32> to vector<2x128xf32>
    %503 = vector.extract_strided_slice %501 {offsets = [0, 0], sizes = [2, 128], strides = [1, 1]} : vector<2x384xf32> to vector<2x128xf32>
    %504 = arith.addf %502, %503 : vector<2x128xf32>
    %505 = arith.negf %504 : vector<2x128xf32>
    %506 = math.exp %505 : vector<2x128xf32>
    %cst_103 = arith.constant 1.000000e+00 : f32
    %507 = vector.broadcast %cst_103 : f32 to vector<2x128xf32>
    %508 = arith.addf %507, %506 : vector<2x128xf32>
    %509 = arith.divf %507, %508 : vector<2x128xf32>
    %510 = vector.extract_strided_slice %499 {offsets = [0, 128], sizes = [2, 128], strides = [1, 1]} : vector<2x384xf32> to vector<2x128xf32>
    %511 = vector.extract_strided_slice %501 {offsets = [0, 128], sizes = [2, 128], strides = [1, 1]} : vector<2x384xf32> to vector<2x128xf32>
    %512 = arith.addf %510, %511 : vector<2x128xf32>
    %513 = arith.negf %512 : vector<2x128xf32>
    %514 = math.exp %513 : vector<2x128xf32>
    %cst_104 = arith.constant 1.000000e+00 : f32
    %515 = vector.broadcast %cst_104 : f32 to vector<2x128xf32>
    %516 = arith.addf %515, %514 : vector<2x128xf32>
    %517 = arith.divf %515, %516 : vector<2x128xf32>
    %518 = vector.extract_strided_slice %499 {offsets = [0, 256], sizes = [2, 128], strides = [1, 1]} : vector<2x384xf32> to vector<2x128xf32>
    %519 = vector.extract_strided_slice %501 {offsets = [0, 256], sizes = [2, 128], strides = [1, 1]} : vector<2x384xf32> to vector<2x128xf32>
    %520 = arith.addf %519, %31 : vector<2x128xf32>
    %521 = arith.mulf %509, %520 : vector<2x128xf32>
    %522 = arith.addf %518, %521 : vector<2x128xf32>
    %523 = math.tanh %522 : vector<2x128xf32>
    %cst_105 = arith.constant 1.000000e+00 : f32
    %524 = vector.broadcast %cst_105 : f32 to vector<2x128xf32>
    %525 = arith.subf %524, %517 : vector<2x128xf32>
    %526 = arith.mulf %525, %523 : vector<2x128xf32>
    %527 = arith.mulf %517, %497 : vector<2x128xf32>
    %528 = arith.addf %526, %527 : vector<2x128xf32>
    %c32 = arith.constant 32 : index
    %c0_106 = arith.constant 0 : index
    %529 = vector.load %arg15[%c32, %c0_106] : memref<42x512xf32, #tpu.memory_space<vmem>>, vector<2x512xf32>
    %530 = vector.extract_strided_slice %529 {offsets = [0, 0], sizes = [2, 384], strides = [1, 1]} : vector<2x512xf32> to vector<2x384xf32>
    %531 = arith.truncf %528 : vector<2x128xf32> to vector<2x128xbf16>
    %cst_107 = arith.constant dense<0.000000e+00> : vector<2x384xf32>
    %532 = tpu.matmul %531, %28, %cst_107 {dimension_numbers = #tpu.dot_dimension_numbers<[1], [0], [0], [1], [0, 0, 1, 1], [], []>} : vector<2x128xbf16>, vector<128x384xbf16>, vector<2x384xf32> -> vector<2x384xf32>
    %533 = vector.extract_strided_slice %530 {offsets = [0, 0], sizes = [2, 128], strides = [1, 1]} : vector<2x384xf32> to vector<2x128xf32>
    %534 = vector.extract_strided_slice %532 {offsets = [0, 0], sizes = [2, 128], strides = [1, 1]} : vector<2x384xf32> to vector<2x128xf32>
    %535 = arith.addf %533, %534 : vector<2x128xf32>
    %536 = arith.negf %535 : vector<2x128xf32>
    %537 = math.exp %536 : vector<2x128xf32>
    %cst_108 = arith.constant 1.000000e+00 : f32
    %538 = vector.broadcast %cst_108 : f32 to vector<2x128xf32>
    %539 = arith.addf %538, %537 : vector<2x128xf32>
    %540 = arith.divf %538, %539 : vector<2x128xf32>
    %541 = vector.extract_strided_slice %530 {offsets = [0, 128], sizes = [2, 128], strides = [1, 1]} : vector<2x384xf32> to vector<2x128xf32>
    %542 = vector.extract_strided_slice %532 {offsets = [0, 128], sizes = [2, 128], strides = [1, 1]} : vector<2x384xf32> to vector<2x128xf32>
    %543 = arith.addf %541, %542 : vector<2x128xf32>
    %544 = arith.negf %543 : vector<2x128xf32>
    %545 = math.exp %544 : vector<2x128xf32>
    %cst_109 = arith.constant 1.000000e+00 : f32
    %546 = vector.broadcast %cst_109 : f32 to vector<2x128xf32>
    %547 = arith.addf %546, %545 : vector<2x128xf32>
    %548 = arith.divf %546, %547 : vector<2x128xf32>
    %549 = vector.extract_strided_slice %530 {offsets = [0, 256], sizes = [2, 128], strides = [1, 1]} : vector<2x384xf32> to vector<2x128xf32>
    %550 = vector.extract_strided_slice %532 {offsets = [0, 256], sizes = [2, 128], strides = [1, 1]} : vector<2x384xf32> to vector<2x128xf32>
    %551 = arith.addf %550, %31 : vector<2x128xf32>
    %552 = arith.mulf %540, %551 : vector<2x128xf32>
    %553 = arith.addf %549, %552 : vector<2x128xf32>
    %554 = math.tanh %553 : vector<2x128xf32>
    %cst_110 = arith.constant 1.000000e+00 : f32
    %555 = vector.broadcast %cst_110 : f32 to vector<2x128xf32>
    %556 = arith.subf %555, %548 : vector<2x128xf32>
    %557 = arith.mulf %556, %554 : vector<2x128xf32>
    %558 = arith.mulf %548, %528 : vector<2x128xf32>
    %559 = arith.addf %557, %558 : vector<2x128xf32>
    %c34 = arith.constant 34 : index
    %c0_111 = arith.constant 0 : index
    %560 = vector.load %arg15[%c34, %c0_111] : memref<42x512xf32, #tpu.memory_space<vmem>>, vector<2x512xf32>
    %561 = vector.extract_strided_slice %560 {offsets = [0, 0], sizes = [2, 384], strides = [1, 1]} : vector<2x512xf32> to vector<2x384xf32>
    %562 = arith.truncf %559 : vector<2x128xf32> to vector<2x128xbf16>
    %cst_112 = arith.constant dense<0.000000e+00> : vector<2x384xf32>
    %563 = tpu.matmul %562, %28, %cst_112 {dimension_numbers = #tpu.dot_dimension_numbers<[1], [0], [0], [1], [0, 0, 1, 1], [], []>} : vector<2x128xbf16>, vector<128x384xbf16>, vector<2x384xf32> -> vector<2x384xf32>
    %564 = vector.extract_strided_slice %561 {offsets = [0, 0], sizes = [2, 128], strides = [1, 1]} : vector<2x384xf32> to vector<2x128xf32>
    %565 = vector.extract_strided_slice %563 {offsets = [0, 0], sizes = [2, 128], strides = [1, 1]} : vector<2x384xf32> to vector<2x128xf32>
    %566 = arith.addf %564, %565 : vector<2x128xf32>
    %567 = arith.negf %566 : vector<2x128xf32>
    %568 = math.exp %567 : vector<2x128xf32>
    %cst_113 = arith.constant 1.000000e+00 : f32
    %569 = vector.broadcast %cst_113 : f32 to vector<2x128xf32>
    %570 = arith.addf %569, %568 : vector<2x128xf32>
    %571 = arith.divf %569, %570 : vector<2x128xf32>
    %572 = vector.extract_strided_slice %561 {offsets = [0, 128], sizes = [2, 128], strides = [1, 1]} : vector<2x384xf32> to vector<2x128xf32>
    %573 = vector.extract_strided_slice %563 {offsets = [0, 128], sizes = [2, 128], strides = [1, 1]} : vector<2x384xf32> to vector<2x128xf32>
    %574 = arith.addf %572, %573 : vector<2x128xf32>
    %575 = arith.negf %574 : vector<2x128xf32>
    %576 = math.exp %575 : vector<2x128xf32>
    %cst_114 = arith.constant 1.000000e+00 : f32
    %577 = vector.broadcast %cst_114 : f32 to vector<2x128xf32>
    %578 = arith.addf %577, %576 : vector<2x128xf32>
    %579 = arith.divf %577, %578 : vector<2x128xf32>
    %580 = vector.extract_strided_slice %561 {offsets = [0, 256], sizes = [2, 128], strides = [1, 1]} : vector<2x384xf32> to vector<2x128xf32>
    %581 = vector.extract_strided_slice %563 {offsets = [0, 256], sizes = [2, 128], strides = [1, 1]} : vector<2x384xf32> to vector<2x128xf32>
    %582 = arith.addf %581, %31 : vector<2x128xf32>
    %583 = arith.mulf %571, %582 : vector<2x128xf32>
    %584 = arith.addf %580, %583 : vector<2x128xf32>
    %585 = math.tanh %584 : vector<2x128xf32>
    %cst_115 = arith.constant 1.000000e+00 : f32
    %586 = vector.broadcast %cst_115 : f32 to vector<2x128xf32>
    %587 = arith.subf %586, %579 : vector<2x128xf32>
    %588 = arith.mulf %587, %585 : vector<2x128xf32>
    %589 = arith.mulf %579, %559 : vector<2x128xf32>
    %590 = arith.addf %588, %589 : vector<2x128xf32>
    %c36 = arith.constant 36 : index
    %c0_116 = arith.constant 0 : index
    %591 = vector.load %arg15[%c36, %c0_116] : memref<42x512xf32, #tpu.memory_space<vmem>>, vector<2x512xf32>
    %592 = vector.extract_strided_slice %591 {offsets = [0, 0], sizes = [2, 384], strides = [1, 1]} : vector<2x512xf32> to vector<2x384xf32>
    %593 = arith.truncf %590 : vector<2x128xf32> to vector<2x128xbf16>
    %cst_117 = arith.constant dense<0.000000e+00> : vector<2x384xf32>
    %594 = tpu.matmul %593, %28, %cst_117 {dimension_numbers = #tpu.dot_dimension_numbers<[1], [0], [0], [1], [0, 0, 1, 1], [], []>} : vector<2x128xbf16>, vector<128x384xbf16>, vector<2x384xf32> -> vector<2x384xf32>
    %595 = vector.extract_strided_slice %592 {offsets = [0, 0], sizes = [2, 128], strides = [1, 1]} : vector<2x384xf32> to vector<2x128xf32>
    %596 = vector.extract_strided_slice %594 {offsets = [0, 0], sizes = [2, 128], strides = [1, 1]} : vector<2x384xf32> to vector<2x128xf32>
    %597 = arith.addf %595, %596 : vector<2x128xf32>
    %598 = arith.negf %597 : vector<2x128xf32>
    %599 = math.exp %598 : vector<2x128xf32>
    %cst_118 = arith.constant 1.000000e+00 : f32
    %600 = vector.broadcast %cst_118 : f32 to vector<2x128xf32>
    %601 = arith.addf %600, %599 : vector<2x128xf32>
    %602 = arith.divf %600, %601 : vector<2x128xf32>
    %603 = vector.extract_strided_slice %592 {offsets = [0, 128], sizes = [2, 128], strides = [1, 1]} : vector<2x384xf32> to vector<2x128xf32>
    %604 = vector.extract_strided_slice %594 {offsets = [0, 128], sizes = [2, 128], strides = [1, 1]} : vector<2x384xf32> to vector<2x128xf32>
    %605 = arith.addf %603, %604 : vector<2x128xf32>
    %606 = arith.negf %605 : vector<2x128xf32>
    %607 = math.exp %606 : vector<2x128xf32>
    %cst_119 = arith.constant 1.000000e+00 : f32
    %608 = vector.broadcast %cst_119 : f32 to vector<2x128xf32>
    %609 = arith.addf %608, %607 : vector<2x128xf32>
    %610 = arith.divf %608, %609 : vector<2x128xf32>
    %611 = vector.extract_strided_slice %592 {offsets = [0, 256], sizes = [2, 128], strides = [1, 1]} : vector<2x384xf32> to vector<2x128xf32>
    %612 = vector.extract_strided_slice %594 {offsets = [0, 256], sizes = [2, 128], strides = [1, 1]} : vector<2x384xf32> to vector<2x128xf32>
    %613 = arith.addf %612, %31 : vector<2x128xf32>
    %614 = arith.mulf %602, %613 : vector<2x128xf32>
    %615 = arith.addf %611, %614 : vector<2x128xf32>
    %616 = math.tanh %615 : vector<2x128xf32>
    %cst_120 = arith.constant 1.000000e+00 : f32
    %617 = vector.broadcast %cst_120 : f32 to vector<2x128xf32>
    %618 = arith.subf %617, %610 : vector<2x128xf32>
    %619 = arith.mulf %618, %616 : vector<2x128xf32>
    %620 = arith.mulf %610, %590 : vector<2x128xf32>
    %621 = arith.addf %619, %620 : vector<2x128xf32>
    %c38 = arith.constant 38 : index
    %c0_121 = arith.constant 0 : index
    %622 = vector.load %arg15[%c38, %c0_121] : memref<42x512xf32, #tpu.memory_space<vmem>>, vector<2x512xf32>
    %623 = vector.extract_strided_slice %622 {offsets = [0, 0], sizes = [2, 384], strides = [1, 1]} : vector<2x512xf32> to vector<2x384xf32>
    %624 = arith.truncf %621 : vector<2x128xf32> to vector<2x128xbf16>
    %cst_122 = arith.constant dense<0.000000e+00> : vector<2x384xf32>
    %625 = tpu.matmul %624, %28, %cst_122 {dimension_numbers = #tpu.dot_dimension_numbers<[1], [0], [0], [1], [0, 0, 1, 1], [], []>} : vector<2x128xbf16>, vector<128x384xbf16>, vector<2x384xf32> -> vector<2x384xf32>
    %626 = vector.extract_strided_slice %623 {offsets = [0, 0], sizes = [2, 128], strides = [1, 1]} : vector<2x384xf32> to vector<2x128xf32>
    %627 = vector.extract_strided_slice %625 {offsets = [0, 0], sizes = [2, 128], strides = [1, 1]} : vector<2x384xf32> to vector<2x128xf32>
    %628 = arith.addf %626, %627 : vector<2x128xf32>
    %629 = arith.negf %628 : vector<2x128xf32>
    %630 = math.exp %629 : vector<2x128xf32>
    %cst_123 = arith.constant 1.000000e+00 : f32
    %631 = vector.broadcast %cst_123 : f32 to vector<2x128xf32>
    %632 = arith.addf %631, %630 : vector<2x128xf32>
    %633 = arith.divf %631, %632 : vector<2x128xf32>
    %634 = vector.extract_strided_slice %623 {offsets = [0, 128], sizes = [2, 128], strides = [1, 1]} : vector<2x384xf32> to vector<2x128xf32>
    %635 = vector.extract_strided_slice %625 {offsets = [0, 128], sizes = [2, 128], strides = [1, 1]} : vector<2x384xf32> to vector<2x128xf32>
    %636 = arith.addf %634, %635 : vector<2x128xf32>
    %637 = arith.negf %636 : vector<2x128xf32>
    %638 = math.exp %637 : vector<2x128xf32>
    %cst_124 = arith.constant 1.000000e+00 : f32
    %639 = vector.broadcast %cst_124 : f32 to vector<2x128xf32>
    %640 = arith.addf %639, %638 : vector<2x128xf32>
    %641 = arith.divf %639, %640 : vector<2x128xf32>
    %642 = vector.extract_strided_slice %623 {offsets = [0, 256], sizes = [2, 128], strides = [1, 1]} : vector<2x384xf32> to vector<2x128xf32>
    %643 = vector.extract_strided_slice %625 {offsets = [0, 256], sizes = [2, 128], strides = [1, 1]} : vector<2x384xf32> to vector<2x128xf32>
    %644 = arith.addf %643, %31 : vector<2x128xf32>
    %645 = arith.mulf %633, %644 : vector<2x128xf32>
    %646 = arith.addf %642, %645 : vector<2x128xf32>
    %647 = math.tanh %646 : vector<2x128xf32>
    %cst_125 = arith.constant 1.000000e+00 : f32
    %648 = vector.broadcast %cst_125 : f32 to vector<2x128xf32>
    %649 = arith.subf %648, %641 : vector<2x128xf32>
    %650 = arith.mulf %649, %647 : vector<2x128xf32>
    %651 = arith.mulf %641, %621 : vector<2x128xf32>
    %652 = arith.addf %650, %651 : vector<2x128xf32>
    %c40 = arith.constant 40 : index
    %c0_126 = arith.constant 0 : index
    %653 = vector.load %arg15[%c40, %c0_126] : memref<42x512xf32, #tpu.memory_space<vmem>>, vector<2x512xf32>
    %654 = vector.extract_strided_slice %653 {offsets = [0, 0], sizes = [2, 384], strides = [1, 1]} : vector<2x512xf32> to vector<2x384xf32>
    %655 = arith.truncf %652 : vector<2x128xf32> to vector<2x128xbf16>
    %cst_127 = arith.constant dense<0.000000e+00> : vector<2x384xf32>
    %656 = tpu.matmul %655, %28, %cst_127 {dimension_numbers = #tpu.dot_dimension_numbers<[1], [0], [0], [1], [0, 0, 1, 1], [], []>} : vector<2x128xbf16>, vector<128x384xbf16>, vector<2x384xf32> -> vector<2x384xf32>
    %657 = vector.extract_strided_slice %654 {offsets = [0, 0], sizes = [2, 128], strides = [1, 1]} : vector<2x384xf32> to vector<2x128xf32>
    %658 = vector.extract_strided_slice %656 {offsets = [0, 0], sizes = [2, 128], strides = [1, 1]} : vector<2x384xf32> to vector<2x128xf32>
    %659 = arith.addf %657, %658 : vector<2x128xf32>
    %660 = arith.negf %659 : vector<2x128xf32>
    %661 = math.exp %660 : vector<2x128xf32>
    %cst_128 = arith.constant 1.000000e+00 : f32
    %662 = vector.broadcast %cst_128 : f32 to vector<2x128xf32>
    %663 = arith.addf %662, %661 : vector<2x128xf32>
    %664 = arith.divf %662, %663 : vector<2x128xf32>
    %665 = vector.extract_strided_slice %654 {offsets = [0, 128], sizes = [2, 128], strides = [1, 1]} : vector<2x384xf32> to vector<2x128xf32>
    %666 = vector.extract_strided_slice %656 {offsets = [0, 128], sizes = [2, 128], strides = [1, 1]} : vector<2x384xf32> to vector<2x128xf32>
    %667 = arith.addf %665, %666 : vector<2x128xf32>
    %668 = arith.negf %667 : vector<2x128xf32>
    %669 = math.exp %668 : vector<2x128xf32>
    %cst_129 = arith.constant 1.000000e+00 : f32
    %670 = vector.broadcast %cst_129 : f32 to vector<2x128xf32>
    %671 = arith.addf %670, %669 : vector<2x128xf32>
    %672 = arith.divf %670, %671 : vector<2x128xf32>
    %673 = vector.extract_strided_slice %654 {offsets = [0, 256], sizes = [2, 128], strides = [1, 1]} : vector<2x384xf32> to vector<2x128xf32>
    %674 = vector.extract_strided_slice %656 {offsets = [0, 256], sizes = [2, 128], strides = [1, 1]} : vector<2x384xf32> to vector<2x128xf32>
    %675 = arith.addf %674, %31 : vector<2x128xf32>
    %676 = arith.mulf %664, %675 : vector<2x128xf32>
    %677 = arith.addf %673, %676 : vector<2x128xf32>
    %678 = math.tanh %677 : vector<2x128xf32>
    %cst_130 = arith.constant 1.000000e+00 : f32
    %679 = vector.broadcast %cst_130 : f32 to vector<2x128xf32>
    %680 = arith.subf %679, %672 : vector<2x128xf32>
    %681 = arith.mulf %680, %678 : vector<2x128xf32>
    %682 = arith.mulf %672, %652 : vector<2x128xf32>
    %683 = arith.addf %681, %682 : vector<2x128xf32>
    %c0_131 = arith.constant 0 : index
    %c0_132 = arith.constant 0 : index
    %684 = vector.load %arg8[%c0_131, %c0_132] : memref<4x12xbf16, #tpu.memory_space<vmem>>, vector<4x12xbf16>
    %c0_133 = arith.constant 0 : index
    %c0_134 = arith.constant 0 : index
    %685 = vector.load %arg9[%c0_133, %c0_134] : memref<1x4xf32, #tpu.memory_space<vmem>>, vector<1x4xf32>
    %686 = vector.shape_cast %685 : vector<1x4xf32> to vector<1x4xf32>
    %687 = vector.broadcast %686 : vector<1x4xf32> to vector<20x4xf32>
    %cst_135 = arith.constant 0.000000e+00 : f32
    %688 = vector.broadcast %cst_135 : f32 to vector<20x4xf32>
    %c2_136 = arith.constant 2 : index
    %c0_137 = arith.constant 0 : index
    %689 = vector.load %arg15[%c2_136, %c0_137] : memref<42x512xf32, #tpu.memory_space<vmem>>, vector<20x512xf32>
    %690 = vector.extract_strided_slice %689 {offsets = [0, 384], sizes = [20, 128], strides = [1, 1]} : vector<20x512xf32> to vector<20x128xf32>
    %691 = arith.truncf %688 : vector<20x4xf32> to vector<20x4xbf16>
    %cst_138 = arith.constant dense<0.000000e+00> : vector<20x12xf32>
    %692 = tpu.matmul %691, %684, %cst_138 {dimension_numbers = #tpu.dot_dimension_numbers<[1], [0], [0], [1], [0, 0, 1, 1], [], []>} : vector<20x4xbf16>, vector<4x12xbf16>, vector<20x12xf32> -> vector<20x12xf32>
    %693 = vector.extract_strided_slice %690 {offsets = [0, 0], sizes = [20, 4], strides = [1, 1]} : vector<20x128xf32> to vector<20x4xf32>
    %694 = vector.extract_strided_slice %692 {offsets = [0, 0], sizes = [20, 4], strides = [1, 1]} : vector<20x12xf32> to vector<20x4xf32>
    %695 = arith.addf %693, %694 : vector<20x4xf32>
    %696 = arith.negf %695 : vector<20x4xf32>
    %697 = math.exp %696 : vector<20x4xf32>
    %cst_139 = arith.constant 1.000000e+00 : f32
    %698 = vector.broadcast %cst_139 : f32 to vector<20x4xf32>
    %699 = arith.addf %698, %697 : vector<20x4xf32>
    %700 = arith.divf %698, %699 : vector<20x4xf32>
    %701 = vector.extract_strided_slice %690 {offsets = [0, 4], sizes = [20, 4], strides = [1, 1]} : vector<20x128xf32> to vector<20x4xf32>
    %702 = vector.extract_strided_slice %692 {offsets = [0, 4], sizes = [20, 4], strides = [1, 1]} : vector<20x12xf32> to vector<20x4xf32>
    %703 = arith.addf %701, %702 : vector<20x4xf32>
    %704 = arith.negf %703 : vector<20x4xf32>
    %705 = math.exp %704 : vector<20x4xf32>
    %cst_140 = arith.constant 1.000000e+00 : f32
    %706 = vector.broadcast %cst_140 : f32 to vector<20x4xf32>
    %707 = arith.addf %706, %705 : vector<20x4xf32>
    %708 = arith.divf %706, %707 : vector<20x4xf32>
    %709 = vector.extract_strided_slice %690 {offsets = [0, 8], sizes = [20, 4], strides = [1, 1]} : vector<20x128xf32> to vector<20x4xf32>
    %710 = vector.extract_strided_slice %692 {offsets = [0, 8], sizes = [20, 4], strides = [1, 1]} : vector<20x12xf32> to vector<20x4xf32>
    %711 = arith.addf %710, %687 : vector<20x4xf32>
    %712 = arith.mulf %700, %711 : vector<20x4xf32>
    %713 = arith.addf %709, %712 : vector<20x4xf32>
    %714 = math.tanh %713 : vector<20x4xf32>
    %cst_141 = arith.constant 1.000000e+00 : f32
    %715 = vector.broadcast %cst_141 : f32 to vector<20x4xf32>
    %716 = arith.subf %715, %708 : vector<20x4xf32>
    %717 = arith.mulf %716, %714 : vector<20x4xf32>
    %718 = arith.mulf %708, %688 : vector<20x4xf32>
    %719 = arith.addf %717, %718 : vector<20x4xf32>
    %c22_142 = arith.constant 22 : index
    %c0_143 = arith.constant 0 : index
    %720 = vector.load %arg15[%c22_142, %c0_143] : memref<42x512xf32, #tpu.memory_space<vmem>>, vector<20x512xf32>
    %721 = vector.extract_strided_slice %720 {offsets = [0, 384], sizes = [20, 128], strides = [1, 1]} : vector<20x512xf32> to vector<20x128xf32>
    %722 = arith.truncf %719 : vector<20x4xf32> to vector<20x4xbf16>
    %cst_144 = arith.constant dense<0.000000e+00> : vector<20x12xf32>
    %723 = tpu.matmul %722, %684, %cst_144 {dimension_numbers = #tpu.dot_dimension_numbers<[1], [0], [0], [1], [0, 0, 1, 1], [], []>} : vector<20x4xbf16>, vector<4x12xbf16>, vector<20x12xf32> -> vector<20x12xf32>
    %724 = vector.extract_strided_slice %721 {offsets = [0, 0], sizes = [20, 4], strides = [1, 1]} : vector<20x128xf32> to vector<20x4xf32>
    %725 = vector.extract_strided_slice %723 {offsets = [0, 0], sizes = [20, 4], strides = [1, 1]} : vector<20x12xf32> to vector<20x4xf32>
    %726 = arith.addf %724, %725 : vector<20x4xf32>
    %727 = arith.negf %726 : vector<20x4xf32>
    %728 = math.exp %727 : vector<20x4xf32>
    %cst_145 = arith.constant 1.000000e+00 : f32
    %729 = vector.broadcast %cst_145 : f32 to vector<20x4xf32>
    %730 = arith.addf %729, %728 : vector<20x4xf32>
    %731 = arith.divf %729, %730 : vector<20x4xf32>
    %732 = vector.extract_strided_slice %721 {offsets = [0, 4], sizes = [20, 4], strides = [1, 1]} : vector<20x128xf32> to vector<20x4xf32>
    %733 = vector.extract_strided_slice %723 {offsets = [0, 4], sizes = [20, 4], strides = [1, 1]} : vector<20x12xf32> to vector<20x4xf32>
    %734 = arith.addf %732, %733 : vector<20x4xf32>
    %735 = arith.negf %734 : vector<20x4xf32>
    %736 = math.exp %735 : vector<20x4xf32>
    %cst_146 = arith.constant 1.000000e+00 : f32
    %737 = vector.broadcast %cst_146 : f32 to vector<20x4xf32>
    %738 = arith.addf %737, %736 : vector<20x4xf32>
    %739 = arith.divf %737, %738 : vector<20x4xf32>
    %740 = vector.extract_strided_slice %721 {offsets = [0, 8], sizes = [20, 4], strides = [1, 1]} : vector<20x128xf32> to vector<20x4xf32>
    %741 = vector.extract_strided_slice %723 {offsets = [0, 8], sizes = [20, 4], strides = [1, 1]} : vector<20x12xf32> to vector<20x4xf32>
    %742 = arith.addf %741, %687 : vector<20x4xf32>
    %743 = arith.mulf %731, %742 : vector<20x4xf32>
    %744 = arith.addf %740, %743 : vector<20x4xf32>
    %745 = math.tanh %744 : vector<20x4xf32>
    %cst_147 = arith.constant 1.000000e+00 : f32
    %746 = vector.broadcast %cst_147 : f32 to vector<20x4xf32>
    %747 = arith.subf %746, %739 : vector<20x4xf32>
    %748 = arith.mulf %747, %745 : vector<20x4xf32>
    %749 = arith.mulf %739, %719 : vector<20x4xf32>
    %750 = arith.addf %748, %749 : vector<20x4xf32>
    %751 = vector.extract_strided_slice %750 {offsets = [0, 0], sizes = [2, 4], strides = [1, 1]} : vector<20x4xf32> to vector<2x4xf32>
    %752 = vector.extract_strided_slice %750 {offsets = [2, 0], sizes = [2, 4], strides = [1, 1]} : vector<20x4xf32> to vector<2x4xf32>
    %753 = vector.extract_strided_slice %750 {offsets = [4, 0], sizes = [2, 4], strides = [1, 1]} : vector<20x4xf32> to vector<2x4xf32>
    %754 = vector.extract_strided_slice %750 {offsets = [6, 0], sizes = [2, 4], strides = [1, 1]} : vector<20x4xf32> to vector<2x4xf32>
    %755 = vector.extract_strided_slice %750 {offsets = [8, 0], sizes = [2, 4], strides = [1, 1]} : vector<20x4xf32> to vector<2x4xf32>
    %756 = vector.extract_strided_slice %750 {offsets = [10, 0], sizes = [2, 4], strides = [1, 1]} : vector<20x4xf32> to vector<2x4xf32>
    %757 = vector.extract_strided_slice %750 {offsets = [12, 0], sizes = [2, 4], strides = [1, 1]} : vector<20x4xf32> to vector<2x4xf32>
    %758 = vector.extract_strided_slice %750 {offsets = [14, 0], sizes = [2, 4], strides = [1, 1]} : vector<20x4xf32> to vector<2x4xf32>
    %759 = vector.extract_strided_slice %750 {offsets = [16, 0], sizes = [2, 4], strides = [1, 1]} : vector<20x4xf32> to vector<2x4xf32>
    %760 = vector.extract_strided_slice %750 {offsets = [18, 0], sizes = [2, 4], strides = [1, 1]} : vector<20x4xf32> to vector<2x4xf32>
    %761 = tpu.concatenate %751, %752, %753, %754, %755, %756, %757, %758, %759, %760 in 1 : vector<2x4xf32>, vector<2x4xf32>, vector<2x4xf32>, vector<2x4xf32>, vector<2x4xf32>, vector<2x4xf32>, vector<2x4xf32>, vector<2x4xf32>, vector<2x4xf32>, vector<2x4xf32> -> vector<2x40xf32>
    %cst_148 = arith.constant 0.000000e+00 : f32
    %762 = vector.broadcast %cst_148 : f32 to vector<2x88xf32>
    %763 = tpu.concatenate %761, %762 in 1 : vector<2x40xf32>, vector<2x88xf32> -> vector<2x128xf32>
    %764 = tpu.concatenate %683, %763 in 1 : vector<2x128xf32>, vector<2x128xf32> -> vector<2x256xf32>
    %765 = arith.truncf %764 : vector<2x256xf32> to vector<2x256xbf16>
    %c0_149 = arith.constant 0 : index
    %c0_150 = arith.constant 0 : index
    %766 = vector.load %arg10[%c0_149, %c0_150] : memref<256x8xbf16, #tpu.memory_space<vmem>>, vector<256x8xbf16>
    %cst_151 = arith.constant dense<0.000000e+00> : vector<2x8xf32>
    %767 = tpu.matmul %765, %766, %cst_151 {dimension_numbers = #tpu.dot_dimension_numbers<[1], [0], [0], [1], [0, 0, 1, 1], [], []>} : vector<2x256xbf16>, vector<256x8xbf16>, vector<2x8xf32> -> vector<2x8xf32>
    %c0_152 = arith.constant 0 : index
    %c0_153 = arith.constant 0 : index
    %768 = vector.load %arg11[%c0_152, %c0_153] : memref<1x8xf32, #tpu.memory_space<vmem>>, vector<1x8xf32>
    %769 = vector.broadcast %768 : vector<1x8xf32> to vector<2x8xf32>
    %770 = arith.addf %767, %769 : vector<2x8xf32>
    %771 = arith.addf %770, %27 : vector<2x8xf32>
    %c0_154 = arith.constant 0 : index
    %c0_155 = arith.constant 0 : index
    %772 = vector.load %arg14[%c0_154, %c0_155] : memref<2x8xf32, #tpu.memory_space<vmem>>, vector<2x8xf32>
    tpu.vector_store %arg14[%c0_154, %c0_155], %771 {strides = array<i32>} : memref<2x8xf32, #tpu.memory_space<vmem>>, vector<2x8xf32>,
    return
  }
}

</mosaic_0001>

<bundles_post_ra>
// kernel: lstnet_forward.1
= control target key start
LH: loop header
LB: loop body
LE: loop exit
PB: predicated region body
PF: predicated region fallthrough
CT: control target
= control target key end

     0   :  { %s6848_s0 = inlined_call_operand.vmem [shape: f32[42,56], index: 0, kind: input, shape index: {}]   ;;  %s6849_s1 = inlined_call_operand.vmem [shape: f32[21,16], index: 1, kind: input, shape index: {}]   ;;  %s6850_s2 = inlined_call_operand.vmem [shape: bf16[56,128], index: 2, kind: input, shape index: {}]   ;;  %s6851_s3 = inlined_call_operand.vmem [shape: f32[1,128], index: 3, kind: input, shape index: {}]   ;;  %s6852_s4 = inlined_call_operand.vmem [shape: bf16[128,512], index: 4, kind: input, shape index: {}]   ;;  %s6853_s5 = inlined_call_operand.vmem [shape: f32[1,512], index: 5, kind: input, shape index: {}]   ;;  %s6854_s6 = inlined_call_operand.vmem [shape: bf16[128,384], index: 6, kind: input, shape index: {}]   ;;  %s6855_s7 = inlined_call_operand.vmem [shape: f32[1,128], index: 7, kind: input, shape index: {}]   ;;  %s6856_s8 = inlined_call_operand.vmem [shape: bf16[4,12], index: 8, kind: input, shape index: {}]   ;;  %s6857_s9 = inlined_call_operand.vmem [shape: f32[1,4], index: 9, kind: input, shape index: {}]   ;;  %s6858_s10 = inlined_call_operand.vmem [shape: bf16[256,8], index: 10, kind: input, shape index: {}]   ;;  %s6859_s11 = inlined_call_operand.vmem [shape: f32[1,8], index: 11, kind: input, shape index: {}]   ;;  %s6860_s12 = inlined_call_operand.vmem [shape: f32[21,1], index: 12, kind: input, shape index: {}]   ;;  %s6861_s13 = inlined_call_operand.<no memory space> [shape: f32[1,1], index: 13, kind: input, shape index: {}]   ;;  %s6862_s14 = inlined_call_operand.hbm [shape: f32[2,8], index: 14, kind: output, shape index: {}]  }
   0x1   :  { %v19_v0 = vstv %s6861_s13 }
   0x2   :  { %20 = vst [vmem:[#allocation3] sm:$0x1] %v19_v0 }
   0x3   :  { %v4701_v1 = vld [vmem:[%s6850_s2] sm:$0xff]   ;;  %v5140_v2 = vmov 0.0   ;;  %v4702_v3 = vld [vmem:[%s6850_s2 + $0x8] sm:$0xff]   ;;  %vm5141_vm0 = vmmov 0   ;;  %v4703_v4 = vld [vmem:[%s6850_s2 + $0x10] sm:$0xff]   ;;  %vm105_vm1 = vcmask 1043456  }
   0x4   :  { %4231 = vmatprep.subr.bf16.mxu1 %v5140_v2  ;;  %4239 = vmatprep.mubr.msk.bf16.mxu1 %vm5141_vm0, %v5140_v2  ;;  %v4704_v5 = vld [vmem:[%s6850_s2 + $0x18] ss:$0 sps:$4 sm:$0xff]   ;;  %v4708_v6 = vld [vmem:[%s6852_s4 + $0xc] ss:$16 sps:$4 sm:$0xff]   ;;  %v51_v8 = vld [vmem:[%s6848_s0] sm:$0xff]  ;;  %vm95_vm2 = vcmask 457728  }
   0x5   :  { %4232 = vmatpush3.bf16.msra.mxu1 %v4701_v1  ;;  %v4710_v7 = vld [vmem:[%s6852_s4 + $0x8] ss:$16 sps:$4 sm:$0xff]   ;;  %452 = vmatprep.subr.bf16.mxu0 %v4708_v6  ;;  %v4714_v10 = vld [vmem:[%s6852_s4 + $0x2c] ss:$16 sps:$4 sm:$0xff]   ;;  %v107_v12 = vsel %vm105_vm1, %v4704_v5, 0  ;;  %v53_v20 = vld [vmem:[%s6848_s0 + $0x10] sm:$0xff] }
   0x6   :  { %4233 = vmatprep.subr.bf16.mxu1 %v5140_v2  ;;  %v52_v9 = vld [vmem:[%s6848_s0 + $0x8] sm:$0xff]  ;;  %453 = vmatpush1.bf16.msra.mxu0 %v4710_v7  ;;  %v4707_v13 = vld [vmem:[%s6852_s4 + $0x4] ss:$16 sps:$4 sm:$0xff]   ;;  %v4705_v16 = vld [vmem:[%s6852_s4] ss:$16 sps:$4 sm:$0xff]  }
   0x7   :  { %v4716_v11 = vld [vmem:[%s6852_s4 + $0x28] ss:$16 sps:$4 sm:$0xff]   ;;  %454 = vmatprep.subr.bf16.mxu0 %v4714_v10  ;;  %v57_v14 = vpack.c.bf16 %v52_v9, %v51_v8  ;;  %v4720_v15 = vld [vmem:[%s6852_s4 + $0x4c] ss:$16 sps:$4 sm:$0xff]   ;;  %v4713_v17 = vld [vmem:[%s6852_s4 + $0x24] ss:$16 sps:$4 sm:$0xff]  }
   0x8   :  { %v4722_v18 = vld [vmem:[%s6852_s4 + $0x48] ss:$16 sps:$4 sm:$0xff]   ;;  %v4726_v19 = vld [vmem:[%s6852_s4 + $0x6c] ss:$16 sps:$4 sm:$0xff]   ;;  %v4711_v22 = vld [vmem:[%s6852_s4 + $0x20] ss:$16 sps:$4 sm:$0xff]  }
   0x9   :  { %4234 = vmatpush3.bf16.msra.mxu1 %v4702_v3  ;;  %v54_v21 = vld [vmem:[%s6848_s0 + $0x18] sm:$0xff]  ;;  %v4719_v23 = vld [vmem:[%s6852_s4 + $0x44] ss:$16 sps:$4 sm:$0xff]   ;;  %v4717_v27 = vld [vmem:[%s6852_s4 + $0x40] ss:$16 sps:$4 sm:$0xff]  }
   0xa   :  { %4235 = vmatprep.subr.bf16.mxu1 %v5140_v2  ;;  %455 = vmatpush1.bf16.msra.mxu0 %v4716_v11  ;;  %v4728_v24 = vld [vmem:[%s6852_s4 + $0x68] ss:$16 sps:$4 sm:$0xff]   ;;  %v4732_v25 = vld [vmem:[%s6852_s4 + $0x8c] ss:$16 sps:$4 sm:$0xff]   ;;  %v58_v26 = vpack.c.bf16 %v54_v21, %v53_v20  ;;  %v4725_v28 = vld [vmem:[%s6852_s4 + $0x64] ss:$16 sps:$4 sm:$0xff]  }
   0xb   :  { %456 = vmatprep.subr.bf16.mxu0 %v4720_v15  ;;  %v4734_v29 = vld [vmem:[%s6852_s4 + $0x88] ss:$16 sps:$4 sm:$0xff]   ;;  %v4738_v30 = vld [vmem:[%s6852_s4 + $0xac] ss:$16 sps:$4 sm:$0xff]   ;;  %v55_v31 = vld [vmem:[%s6848_s0 + $0x20] sm:$0xff] }
   0xc   :  { %v56_v32 = vld [vmem:[%s6848_s0 + $0x28] sm:$0x3]  ;;  %v4723_v33 = vld [vmem:[%s6852_s4 + $0x60] ss:$16 sps:$4 sm:$0xff]   ;;  %v4731_v34 = vld [vmem:[%s6852_s4 + $0x84] ss:$16 sps:$4 sm:$0xff]  }
   0xd   :  { %4236 = vmatpush3.bf16.msra.mxu1 %v4703_v4  ;;  %v4740_v35 = vld [vmem:[%s6852_s4 + $0xa8] ss:$16 sps:$4 sm:$0xff]   ;;  %v4729_v36 = vld [vmem:[%s6852_s4 + $0x80] ss:$16 sps:$4 sm:$0xff]   ;;  %v59_v37 = vpack.c.bf16 %v56_v32, %v55_v31  ;;  %v4737_v38 = vld [vmem:[%s6852_s4 + $0xa4] ss:$16 sps:$4 sm:$0xff]  }
   0xe   :  { %4237 = vmatprep.subr.bf16.mxu1 %v5140_v2  ;;  %457 = vmatpush1.bf16.msra.mxu0 %v4722_v18  ;;  %v4735_v39 = vld [vmem:[%s6852_s4 + $0xa0] ss:$16 sps:$4 sm:$0xff]  }
   0xf   :  { %458 = vmatprep.subr.bf16.mxu0 %v4726_v19 }
  0x11   :  { %4238 = vmatpush3.bf16.msra.mxu1 %v107_v12 }
  0x12   :  { %389 = vmatprep.subr.bf16.mxu1 %v4707_v13  ;;  %459 = vmatpush1.bf16.msra.mxu0 %v4728_v24 }
  0x13   :  { %460 = vmatprep.subr.bf16.mxu0 %v4732_v25 }
  0x14   :  { %4240 = vmatmul.mubr.msk.bf16.vlgmr.msra.gmra.mrb[0].mxu1 %vm95_vm2, %v57_v14 }
  0x15   :  { %4243 = vmatprep.mubr.msk.bf16.mxu1 %vm5141_vm0, %v5140_v2  ;;  %390 = vmatpush1.bf16.msra.mxu1 %v4705_v16 }
  0x16   :  { %391 = vmatprep.subr.bf16.mxu1 %v4713_v17  ;;  %461 = vmatpush1.bf16.msra.mxu0 %v4734_v29 }
  0x17   :  { %462 = vmatprep.subr.bf16.mxu0 %v4738_v30 }
  0x19   :  { %392 = vmatpush1.bf16.msra.mxu1 %v4711_v22 }
  0x1a   :  { %393 = vmatprep.subr.bf16.mxu1 %v4719_v23  ;;  %463 = vmatpush1.bf16.msra.mxu0 %v4740_v35 }
  0x1c   :  { %4244 = vmatmul.mubr.msk.bf16.gmra.mrb[4].mxu1 %vm95_vm2, %v58_v26 }
  0x1d   :  { %4247 = vmatprep.mubr.msk.bf16.mxu1 %vm5141_vm0, %v5140_v2  ;;  %394 = vmatpush1.bf16.msra.mxu1 %v4717_v27 }
  0x1e   :  { %395 = vmatprep.subr.bf16.mxu1 %v4725_v28 }
  0x21   :  { %396 = vmatpush1.bf16.msra.mxu1 %v4723_v33 }
  0x22   :  { %397 = vmatprep.subr.bf16.mxu1 %v4731_v34 }
  0x24   :  { %4248 = vmatmul.mubr.msk.bf16.gmra.mrb[8].mxu1 %vm95_vm2, %v59_v37 }
  0x25   :  { %398 = vmatpush1.bf16.msra.mxu1 %v4729_v36 }
  0x26   :  { %399 = vmatprep.subr.bf16.mxu1 %v4737_v38 }
  0x29   :  { %400 = vmatpush1.bf16.msra.mxu1 %v4735_v39 }
  0x2a   :  { %21 = vsyncpa [#allocation5], 0  ;;  %v4743_v40 = vld [vmem:[%s6852_s4 + $0xc4] ss:$16 sps:$4 sm:$0xff]   ;;  %v4741_v41 = vld [vmem:[%s6852_s4 + $0xc0] ss:$16 sps:$4 sm:$0xff]   ;;  %v209_v38 = vlaneseq }
  0x2b   :  { %v4744_v42 = vld [vmem:[%s6852_s4 + $0xcc] ss:$16 sps:$4 sm:$0xff]   ;;  %401 = vmatprep.subr.bf16.mxu1 %v4743_v40  ;;  %v4746_v43 = vld [vmem:[%s6852_s4 + $0xc8] ss:$16 sps:$4 sm:$0xff]   ;;  %v4749_v44 = vld [vmem:[%s6852_s4 + $0xe4] ss:$16 sps:$4 sm:$0xff]  }
  0x2c   :  { %464 = vmatprep.subr.bf16.mxu0 %v4744_v42  ;;  %v4747_v45 = vld [vmem:[%s6852_s4 + $0xe0] ss:$16 sps:$4 sm:$0xff]   ;;  %v4750_v46 = vld [vmem:[%s6852_s4 + $0xec] ss:$16 sps:$4 sm:$0xff]   ;;  %v4752_v47 = vld [vmem:[%s6852_s4 + $0xe8] ss:$16 sps:$4 sm:$0xff]  }
  0x2d   :  { %402 = vmatpush1.bf16.msra.mxu1 %v4741_v41  ;;  %465 = vmatpush1.bf16.msra.mxu0 %v4746_v43  ;;  %v5375_v48 = vld [vmem:[%s6854_s6 + $0x4] ss:$12 sps:$4 sm:$0xff]   ;;  %v5142_v49 = vmov 0   ;;  %v3872_v50 = vld [vmem:[%s6851_s3] ss:$0 sm:$0xff]  ;;  %v210_v39 = vshrl.u32 %v209_v38, 7 }
  0x2e   :  { %403 = vmatprep.subr.bf16.mxu1 %v4749_v44  ;;  %466 = vmatprep.subr.bf16.mxu0 %v4750_v46  ;;  %v5389_v59 = vld [vmem:[%s6854_s6] ss:$12 sps:$4 sm:$0xff]   ;;  %v5394_v61 = vld [vmem:[%s6854_s6 + $0x1c] ss:$12 sps:$4 sm:$0xff]   ;;  %v5405_v4 = vld [vmem:[%s6854_s6 + $0x18] ss:$12 sps:$4 sm:$0xff]  }
  0x2f   :  { %421 = vmatprep.mubr.bf16.mxu1 %v5142_v49  ;;  %484 = vmatprep.mubr.bf16.mxu0 %v5142_v49  ;;  %v5399_v63 = vld [vmem:[%s6854_s6 + $0x8] ss:$12 sps:$4 sm:$0xff]   ;;  %v5419_v9 = vld [vmem:[%s6854_s6 + $0x20] ss:$12 sps:$4 sm:$0xff]   ;;  %v5426_v11 = vld [vmem:[%s6854_s6 + $0x30] ss:$12 sps:$4 sm:$0xff]  }
  0x30   :  { %4699 = vset.pattern.permute.xlu1 %v5142_v49  ;;  %4700 = vset.pattern.permute.xlu0 %v5142_v49  ;;  %v5412_v8 = vld [vmem:[%s6854_s6 + $0x34] ss:$12 sps:$4 sm:$0xff]   ;;  %v5432_v13 = vld [vmem:[%s6854_s6 + $0x4c] ss:$12 sps:$4 sm:$0xff]   ;;  %v5451_v23 = vld [vmem:[%s6854_s6 + $0x64] ss:$12 sps:$4 sm:$0xff]  }
  0x31   :  { %404 = vmatpush1.bf16.msra.mxu1 %v4747_v45  ;;  %467 = vmatpush1.bf16.msra.mxu0 %v4752_v47  ;;  %v5438_v17 = vld [vmem:[%s6854_s6 + $0x38] ss:$12 sps:$4 sm:$0xff]   ;;  %v5444_v19 = vld [vmem:[%s6854_s6 + $0x48] ss:$12 sps:$4 sm:$0xff]   ;;  %v5460_v25 = vld [vmem:[%s6854_s6 + $0x60] ss:$12 sps:$4 sm:$0xff]  }
  0x32   :  { %4251 = vmatprep.subr.bf16.mxu0 %v5140_v2  ;;  %763 = vmatprep.subr.bf16.mxu1 %v5375_v48  ;;  %v5467_v27 = vld [vmem:[%s6854_s6 + $0x7c] ss:$12 sps:$4 sm:$0xff]   ;;  %v5478_v29 = vld [vmem:[%s6854_s6 + $0x78] ss:$12 sps:$4 sm:$0xff]   ;;  %v5485_v30 = vld [vmem:[%s6854_s6 + $0x94] ss:$12 sps:$4 sm:$0xff]  }
  0x33   :  { %v5472_v28 = vld [vmem:[%s6854_s6 + $0x50] ss:$12 sps:$4 sm:$0xff]   ;;  %v5491_v31 = vld [vmem:[%s6854_s6 + $0x68] ss:$12 sps:$4 sm:$0xff]   ;;  %v5506_v33 = vld [vmem:[%s6854_s6 + $0xac] ss:$12 sps:$4 sm:$0xff]  }
  0x34   :  { %v5500_v32 = vld [vmem:[%s6854_s6 + $0x90] ss:$12 sps:$4 sm:$0xff]   ;;  %v5512_v34 = vld [vmem:[%s6854_s6 + $0x80] ss:$12 sps:$4 sm:$0xff]   ;;  %v5519_v35 = vld [vmem:[%s6854_s6 + $0xa8] ss:$12 sps:$4 sm:$0xff]  }
  0x35   :  { %v5526_v36 = vld [vmem:[%s6854_s6 + $0x98] ss:$12 sps:$4 sm:$0xff]   ;;  %v5534_v37 = vld [vmem:[%s6854_s6 + $0xb0] ss:$12 sps:$4 sm:$0xff]   ;;  %v211_v40 = vsub.s32 0, %v210_v39  ;;  %v219_v41 = vsub.s32 2, %v210_v39 }
  0x36   :  { %v207_v42 = vld [vmem:[%s6853_s5] sm:$0xf]  ;;  %v215_v43 = vsub.s32 1, %v210_v39  ;;  %v223_v44 = vsub.s32 3, %v210_v39  ;;  %vm3260_vm3 = vcmask 1041408   ;;  %s5143_s2 = smov 8  }
  0x37   :  { %v5580_v45 = vrot.slane %v207_v42, %v211_v40  ;;  %v5582_v46 = vrot.slane %v207_v42, %v219_v41  ;;  %vm3420_vm4 = vcmask 1046528   ;;  %vm3256_vm5 = vcmask 31744   ;;  %s5146_s15 = smov 12   ;;  %s5148_s19 = smov 16  }
  0x38   :  { %v5584_v47 = vrot.slane %v207_v42, %v215_v43  ;;  %vm3485_vm6 = vcmask 1045504   ;;  %s5149_s21 = smov 20   ;;  %s5150_s0 = smov 24   ;;  %vm3658_vm7 = vcmask 64512   ;;  %vm3660_vm8 = vcmask 97280  }
  0x39   :  { %s5151_s22 = smov 28   ;;  %s5152_s25 = smov 32   ;;  %vm563_vm9 = vcmask 130048   ;;  %vm3663_vm10 = vcmask 162816   ;;  %vm3665_vm11 = vcmask 195584   ;;  %vm3667_vm12 = vcmask 228352  }
  0x3a   :  { %vm3669_vm13 = vcmask 261120   ;;  %vm3671_vm14 = vcmask 293888   ;;  %vm3673_vm15 = vcmask 326656   ;;  %s5153_s5 = smov [#allocation4]   ;;  %vm3856_vm2 = vcmask 58368  }
  0xe7   :  { %v143_v51 = vpop.f32.mrb[0].mxu1 }
  0xe8   :  { %v144_v52 = vadd.f32 %v3872_v50, %v143_v51  ;;  %v4241_v53 = vpop.f32.mrb[1].mxu1 }
  0xe9   :  { %v146_v54 = vpop.f32.mrb[2].mxu1 }
  0xea   :  { %v147_v55 = vadd.f32 %v3872_v50, %v146_v54  ;;  %v4242_v56 = vpop.f32.mrb[3].mxu1  ;;  %v166_v57 = vmax.f32 %v144_v52, 0.0 }
  0xec   :  { %v167_v58 = vmax.f32 %v147_v55, 0.0 }
  0xee   :  { %v172_v60 = vpack.c.bf16 %v167_v58, %v166_v57 }
  0xef   :  { %v151_v62 = vpop.f32.mrb[4].mxu1 }
  0xf0   :  { %422 = vmatmul.mubr.bf16.vlgmr.msra.gmra.mrb[12].mxu1 %v172_v60  ;;  %485 = vmatmul.mubr.bf16.vlgmr.msra.gmra.mrb[0].mxu0 %v172_v60  ;;  %v152_v0 = vadd.f32 %v3872_v50, %v151_v62  ;;  %v4245_v1 = vpop.f32.mrb[5].mxu1 }
  0xf1   :  { %764 = vmatpush1.bf16.msra.mxu1 %v5389_v59  ;;  %v154_v3 = vpop.f32.mrb[6].mxu1  ;;  %431 = vmatprep.mubr.bf16.mxu1 %v5142_v49 }
  0xf2   :  { %v168_v5 = vmax.f32 %v152_v0, 0.0  ;;  %v155_v6 = vadd.f32 %v3872_v50, %v154_v3  ;;  %765 = vmatprep.subr.bf16.mxu1 %v5394_v61  ;;  %v4246_v7 = vpop.f32.mrb[7].mxu1  ;;  %494 = vmatprep.mubr.bf16.mxu0 %v5142_v49 }
  0xf3   :  { %4252 = vmatpush3.bf16.msra.mxu0 %v5399_v63 }
  0xf4   :  { %v169_v10 = vmax.f32 %v155_v6, 0.0  ;;  %4253 = vmatprep.subr.bf16.mxu0 %v5140_v2 }
  0xf5   :  { %766 = vmatpush1.bf16.msra.mxu1 %v5405_v4 }
  0xf6   :  { %v173_v12 = vpack.c.bf16 %v169_v10, %v168_v5  ;;  %767 = vmatprep.subr.bf16.mxu1 %v5412_v8 }
  0xf7   :  { %v159_v14 = vpop.f32.mrb[8].mxu1  ;;  %4254 = vmatpush3.bf16.msra.mxu0 %v5419_v9 }
  0xf8   :  { %v160_v15 = vadd.f32 %v3872_v50, %v159_v14  ;;  %v4249_v16 = vpop.f32.mrb[9].mxu1  ;;  %432 = vmatmul.mubr.bf16.gmra.mrb[16].mxu1 %v173_v12  ;;  %495 = vmatmul.mubr.bf16.gmra.mrb[4].mxu0 %v173_v12 }
  0xf9   :  { %768 = vmatpush1.bf16.msra.mxu1 %v5426_v11  ;;  %v162_v18 = vpop.f32.mrb[10].mxu1  ;;  %441 = vmatprep.mubr.bf16.mxu1 %v5142_v49 }
  0xfa   :  { %v170_v20 = vmax.f32 %v160_v15, 0.0  ;;  %v163_v21 = vadd.f32 %v3872_v50, %v162_v18  ;;  %769 = vmatprep.subr.bf16.mxu1 %v5432_v13  ;;  %v4250_v22 = vpop.f32.mrb[11].mxu1  ;;  %504 = vmatprep.mubr.bf16.mxu0 %v5142_v49  ;;  %v5586_v50 = vrot.slane %v207_v42, %v223_v44 }
  0xfb   :  { %4255 = vmatprep.subr.bf16.mxu0 %v5140_v2 }
  0xfc   :  { %v171_v24 = vmax.f32 %v163_v21, 0.0  ;;  %4256 = vmatpush3.bf16.msra.mxu0 %v5438_v17 }
  0xfd   :  { %770 = vmatpush1.bf16.msra.mxu1 %v5444_v19  ;;  %4257 = vmatprep.subr.bf16.mxu0 %v5140_v2 }
  0xfe   :  { %v174_v26 = vpack.c.bf16 %v171_v24, %v170_v20  ;;  %771 = vmatprep.subr.bf16.mxu1 %v5451_v23 }
 0x100   :  { %442 = vmatmul.mubr.bf16.gmra.mrb[20].mxu1 %v174_v26  ;;  %505 = vmatmul.mubr.bf16.gmra.mrb[8].mxu0 %v174_v26 }
 0x101   :  { %772 = vmatpush1.bf16.msra.mxu1 %v5460_v25  ;;  %795 = vmatprep.mubr.bf16.mxu1 %v5142_v49 }
 0x102   :  { %773 = vmatprep.subr.bf16.mxu1 %v5467_v27  ;;  %4258 = vmatpush3.bf16.msra.mxu0 %v5472_v28 }
 0x103   :  { %4259 = vmatprep.subr.bf16.mxu0 %v5140_v2  ;;  %4267 = vmatprep.mubr.msk.bf16.mxu0 %vm5141_vm0, %v5140_v2 }
 0x105   :  { %774 = vmatpush1.bf16.msra.mxu1 %v5478_v29 }
 0x106   :  { %775 = vmatprep.subr.bf16.mxu1 %v5485_v30  ;;  %4260 = vmatpush3.bf16.msra.mxu0 %v5491_v31 }
 0x107   :  { %4261 = vmatprep.subr.bf16.mxu0 %v5140_v2 }
 0x109   :  { %776 = vmatpush1.bf16.msra.mxu1 %v5500_v32 }
 0x10a   :  { %777 = vmatprep.subr.bf16.mxu1 %v5506_v33  ;;  %4262 = vmatpush3.bf16.msra.mxu0 %v5512_v34 }
 0x10b   :  { %4263 = vmatprep.subr.bf16.mxu0 %v5140_v2 }
 0x10d   :  { %778 = vmatpush1.bf16.msra.mxu1 %v5519_v35 }
 0x10e   :  { %4264 = vmatpush3.bf16.msra.mxu0 %v5526_v36  ;;  %870 = vmatprep.subr.bf16.mxu1 %v5375_v48 }
 0x10f   :  { %4265 = vmatprep.subr.bf16.mxu0 %v5140_v2 }
 0x110   :  { %796 = vmatmul.mubr.bf16.vlgmr.msra.gmra.mrb[24].mxu1 %v5142_v49 }
 0x111   :  { %871 = vmatpush1.bf16.msra.mxu1 %v5389_v59  ;;  %902 = vmatprep.mubr.bf16.mxu1 %v5142_v49 }
 0x112   :  { %4266 = vmatpush3.bf16.msra.mxu0 %v5534_v37  ;;  %872 = vmatprep.subr.bf16.mxu1 %v5394_v61 }
 0x113   :  { %4271 = vmatprep.subr.bf16.mxu0 %v5140_v2 }
 0x115   :  { %4268 = vmatmul.mubr.bf16.vlgmr.msra.gmra.mrb[12].mxu0 %v5142_v49  ;;  %873 = vmatpush1.bf16.msra.mxu1 %v5405_v4 }
 0x116   :  { %4272 = vmatpush3.bf16.msra.mxu0 %v5399_v63  ;;  %874 = vmatprep.subr.bf16.mxu1 %v5412_v8 }
 0x117   :  { %4273 = vmatprep.subr.bf16.mxu0 %v5140_v2  ;;  %4287 = vmatprep.mubr.msk.bf16.mxu0 %vm5141_vm0, %v5140_v2 }
 0x119   :  { %875 = vmatpush1.bf16.msra.mxu1 %v5426_v11 }
 0x11a   :  { %4274 = vmatpush3.bf16.msra.mxu0 %v5419_v9  ;;  %876 = vmatprep.subr.bf16.mxu1 %v5432_v13 }
 0x11b   :  { %4275 = vmatprep.subr.bf16.mxu0 %v5140_v2 }
 0x11d   :  { %877 = vmatpush1.bf16.msra.mxu1 %v5444_v19 }
 0x11e   :  { %4276 = vmatpush3.bf16.msra.mxu0 %v5438_v17  ;;  %878 = vmatprep.subr.bf16.mxu1 %v5451_v23 }
 0x11f   :  { %4277 = vmatprep.subr.bf16.mxu0 %v5140_v2 }
 0x121   :  { %879 = vmatpush1.bf16.msra.mxu1 %v5460_v25 }
 0x122   :  { %4278 = vmatpush3.bf16.msra.mxu0 %v5472_v28  ;;  %880 = vmatprep.subr.bf16.mxu1 %v5467_v27 }
 0x123   :  { %4279 = vmatprep.subr.bf16.mxu0 %v5140_v2 }
 0x125   :  { %881 = vmatpush1.bf16.msra.mxu1 %v5478_v29 }
 0x126   :  { %4280 = vmatpush3.bf16.msra.mxu0 %v5491_v31  ;;  %882 = vmatprep.subr.bf16.mxu1 %v5485_v30 }
 0x127   :  { %4281 = vmatprep.subr.bf16.mxu0 %v5140_v2 }
 0x129   :  { %883 = vmatpush1.bf16.msra.mxu1 %v5500_v32 }
 0x12a   :  { %4282 = vmatpush3.bf16.msra.mxu0 %v5512_v34  ;;  %884 = vmatprep.subr.bf16.mxu1 %v5506_v33 }
 0x12b   :  { %4283 = vmatprep.subr.bf16.mxu0 %v5140_v2 }
 0x12d   :  { %885 = vmatpush1.bf16.msra.mxu1 %v5519_v35 }
 0x12e   :  { %4284 = vmatpush3.bf16.msra.mxu0 %v5526_v36  ;;  %992 = vmatprep.subr.bf16.mxu1 %v5375_v48 }
 0x12f   :  { %4285 = vmatprep.subr.bf16.mxu0 %v5140_v2 }
 0x132   :  { %4286 = vmatpush3.bf16.msra.mxu0 %v5534_v37 }
 0x133   :  { %4291 = vmatprep.subr.bf16.mxu0 %v5140_v2 }
 0x1c3   :  { %v423_v51 = vpop.f32.mrb[12].mxu1  ;;  %v486_v52 = vpop.f32.mrb[0].mxu0 }
 0x1c4   :  { %v424_v53 = vadd.f32 %v423_v51, %v5580_v45  ;;  %v487_v54 = vadd.f32 %v486_v52, %v5582_v46  ;;  %v425_v55 = vpop.f32.mrb[13].mxu1  ;;  %v488_v56 = vpop.f32.mrb[1].mxu0 }
 0x1c5   :  { %v426_v57 = vadd.f32 %v425_v55, %v5584_v47  ;;  %v489_v58 = vadd.f32 %v488_v56, %v5586_v50  ;;  %v427_v60 = vpop.f32.mrb[14].mxu1  ;;  %v490_v62 = vpop.f32.mrb[2].mxu0 }
 0x1c6   :  { %515 = vst [vmem:[#allocation2] sm:$0xff] %v424_v53  ;;  %517 = vst [vmem:[#allocation2 + $0x10] sm:$0xff] %v487_v54  ;;  %v428_v0 = vadd.f32 %v427_v60, %v5580_v45  ;;  %v491_v1 = vadd.f32 %v490_v62, %v5582_v46  ;;  %v429_v3 = vpop.f32.mrb[15].mxu1  ;;  %v492_v5 = vpop.f32.mrb[3].mxu0 }
 0x1c7   :  { %516 = vst [vmem:[#allocation2 + $0x8] sm:$0xff] %v426_v57  ;;  %518 = vst [vmem:[#allocation2 + $0x18] sm:$0xff] %v489_v58  ;;  %v430_v6 = vadd.f32 %v429_v3, %v5584_v47  ;;  %v493_v7 = vadd.f32 %v492_v5, %v5586_v50 }
 0x1c8   :  { %519 = vst [vmem:[#allocation2 + $0x20] sm:$0xff] %v428_v0  ;;  %521 = vst [vmem:[#allocation2 + $0x30] sm:$0xff] %v491_v1 }
 0x1c9   :  { %520 = vst [vmem:[#allocation2 + $0x28] sm:$0xff] %v430_v6  ;;  %522 = vst [vmem:[#allocation2 + $0x38] sm:$0xff] %v493_v7 }
 0x1cb   :  { %v433_v10 = vpop.f32.mrb[16].mxu1  ;;  %v496_v12 = vpop.f32.mrb[4].mxu0 }
 0x1cc   :  { %v434_v14 = vadd.f32 %v433_v10, %v5580_v45  ;;  %v497_v15 = vadd.f32 %v496_v12, %v5582_v46  ;;  %v435_v16 = vpop.f32.mrb[17].mxu1  ;;  %v498_v18 = vpop.f32.mrb[5].mxu0 }
 0x1cd   :  { %v436_v20 = vadd.f32 %v435_v16, %v5584_v47  ;;  %v499_v21 = vadd.f32 %v498_v18, %v5586_v50  ;;  %v437_v22 = vpop.f32.mrb[18].mxu1  ;;  %v500_v24 = vpop.f32.mrb[6].mxu0  ;;  %v632_v6 = vld [vmem:[#allocation2] sm:$0x3] }
 0x1ce   :  { %523 = vst [vmem:[#allocation2 + $0x40] sm:$0xff] %v434_v14  ;;  %525 = vst [vmem:[#allocation2 + $0x50] sm:$0xff] %v497_v15  ;;  %v438_v26 = vadd.f32 %v437_v22, %v5580_v45  ;;  %v501_v38 = vadd.f32 %v500_v24, %v5582_v46  ;;  %v439_v39 = vpop.f32.mrb[19].mxu1  ;;  %v502_v40 = vpop.f32.mrb[7].mxu0  ;;  %v633_v15 = vld [vmem:[#allocation2 + $0x8] sm:$0x3] }
 0x1cf   :  { %524 = vst [vmem:[#allocation2 + $0x48] sm:$0xff] %v436_v20  ;;  %526 = vst [vmem:[#allocation2 + $0x58] sm:$0xff] %v499_v21  ;;  %v440_v41 = vadd.f32 %v439_v39, %v5584_v47  ;;  %v503_v42 = vadd.f32 %v502_v40, %v5586_v50 }
 0x1d0   :  { %527 = vst [vmem:[#allocation2 + $0x60] sm:$0xff] %v438_v26  ;;  %529 = vst [vmem:[#allocation2 + $0x70] sm:$0xff] %v501_v38  ;;  %v5615_v38 = vld [vmem:[%s6855_s7] ss:$0 sm:$0xff] }
 0x1d1   :  { %528 = vst [vmem:[#allocation2 + $0x68] sm:$0xff] %v440_v41  ;;  %530 = vst [vmem:[#allocation2 + $0x78] sm:$0xff] %v503_v42 }
 0x1d3   :  { %v443_v43 = vpop.f32.mrb[20].mxu1  ;;  %v506_v44 = vpop.f32.mrb[8].mxu0 }
 0x1d4   :  { %v444_v51 = vadd.f32 %v443_v43, %v5580_v45  ;;  %v507_v52 = vadd.f32 %v506_v44, %v5582_v46  ;;  %v445_v53 = vpop.f32.mrb[21].mxu1  ;;  %v508_v54 = vpop.f32.mrb[9].mxu0  ;;  %v634_v43 = vld [vmem:[#allocation2 + $0x10] sm:$0x3] }
 0x1d5   :  { %v446_v55 = vadd.f32 %v445_v53, %v5584_v47  ;;  %v509_v56 = vadd.f32 %v508_v54, %v5586_v50  ;;  %v447_v57 = vpop.f32.mrb[22].mxu1  ;;  %v510_v58 = vpop.f32.mrb[10].mxu0 }
 0x1d6   :  { %531 = vst [vmem:[#allocation2 + $0x80] sm:$0xff] %v444_v51  ;;  %533 = vst [vmem:[#allocation2 + $0x90] sm:$0xff] %v507_v52  ;;  %v448_v60 = vadd.f32 %v447_v57, %v5580_v45  ;;  %v511_v62 = vadd.f32 %v510_v58, %v5582_v46  ;;  %v449_v0 = vpop.f32.mrb[23].mxu1  ;;  %v512_v1 = vpop.f32.mrb[11].mxu0 }
 0x1d7   :  { %532 = vst [vmem:[#allocation2 + $0x88] sm:$0xff] %v446_v55  ;;  %534 = vst [vmem:[#allocation2 + $0x98] sm:$0xff] %v509_v56  ;;  %v450_v3 = vadd.f32 %v449_v0, %v5584_v47  ;;  %v513_v5 = vadd.f32 %v512_v1, %v5586_v50 }
 0x1d8   :  { %535 = vst [vmem:[#allocation2 + $0xa0] sm:$0x3] %v448_v60  ;;  %537 = vst [vmem:[#allocation2 + $0xb0] sm:$0x3] %v511_v62 }
 0x1d9   :  { %536 = vst [vmem:[#allocation2 + $0xa8] sm:$0x3] %v450_v3  ;;  %538 = vst [vmem:[#allocation2 + $0xb8] sm:$0x3] %v513_v5  ;;  %v866_v3 = vld [vmem:[#allocation2] sm:$0xc] }
 0x1e3   :  { %v797_v7 = vpop.f32.mrb[24].mxu1 }
 0x1e4   :  { %v844_v10 = vadd.f32 %v797_v7, %v632_v6  ;;  %v799_v12 = vpop.f32.mrb[25].mxu1 }
 0x1e5   :  { %v801_v14 = vpop.f32.mrb[26].mxu1  ;;  %v851_v16 = vadd.f32 %v799_v12, %v633_v15  ;;  %v867_v12 = vld [vmem:[#allocation2 + $0x8] sm:$0xc] }
 0x1e6   :  { %v3938_v45 = vmul.f32 -1.442695, %v844_v10  ;;  %v802_v46 = vpop.f32.mrb[27].mxu1 }
 0x1e7   :  { %v3939_v47 = vmul.f32 -1.442695, %v851_v16 }
 0x1e8   :  { %4801 = vpow2.f32 %v3938_v45  ;;  %v838_v18 = vpop.f32.mrb[12].mxu0 }
 0x1e9   :  { %v4269_v20 = vpop.f32.mrb[13].mxu0  ;;  %4803 = vpow2.f32 %v3939_v47  ;;  %v858_v40 = vadd.f32 %v5615_v38, %v838_v18 }
 0x1ea   :  { %v841_v21 = vpop.f32.mrb[14].mxu0 }
 0x1eb   :  { %v4270_v22 = vpop.f32.mrb[15].mxu0 }
 0x1f2   :  { %v4802_v50 = vpop.eup %4801 }
 0x1f3   :  { %v848_v24 = vadd.f32 1.0, %v4802_v50  ;;  %v4804_v26 = vpop.eup %4803 }
 0x1f4   :  { %v855_v39 = vadd.f32 1.0, %v4804_v26 }
 0x1f5   :  { %4805 = vrcp.f32 %v848_v24 }
 0x1f6   :  { %4807 = vrcp.f32 %v855_v39 }
 0x1ff   :  { %v4806_v41 = vpop.eup %4805 }
 0x200   :  { %v859_v42 = vmul.f32 %v4806_v41, %v858_v40  ;;  %v4808_v51 = vpop.eup %4807  ;;  %v868_v41 = vld [vmem:[#allocation2 + $0x10] sm:$0xc] }
 0x201   :  { %v862_v52 = vsub.f32 1.0, %v4808_v51  ;;  %v864_v55 = vmul.f32 0.0, %v4808_v51 }
 0x202   :  { %v860_v44 = vadd.f32 %v859_v42, %v634_v43 }
 0x204   :  { %4809 = vtanh.f32 %v860_v44 }
 0x20e   :  { %v4810_v53 = vpop.eup %4809 }
 0x20f   :  { %v863_v54 = vmul.f32 %v4810_v53, %v862_v52 }
 0x211   :  { %v5618_v56 = vadd.f32 %v864_v55, %v863_v54 }
 0x213   :  { %v869_v57 = vpack.c.bf16 %v5618_v56, %v5618_v56  ;;  %v981_v26 = vrot.slane %v5618_v56, 6 }
 0x215   :  { %903 = vmatmul.mubr.bf16.vlgmr.msra.gmra.mrb[28].mxu1 %v869_v57  ;;  %4288 = vmatmul.mubr.bf16.vlgmr.msra.gmra.mrb[16].mxu0 %v869_v57 }
 0x216   :  { %993 = vmatpush1.bf16.msra.mxu1 %v5389_v59  ;;  %4292 = vmatpush3.bf16.msra.mxu0 %v5399_v63 }
 0x217   :  { %994 = vmatprep.subr.bf16.mxu1 %v5394_v61  ;;  %4293 = vmatprep.subr.bf16.mxu0 %v5140_v2 }
 0x218   :  { %1024 = vmatprep.mubr.bf16.mxu1 %v5142_v49  ;;  %4307 = vmatprep.mubr.msk.bf16.mxu0 %vm5141_vm0, %v5140_v2 }
 0x21a   :  { %995 = vmatpush1.bf16.msra.mxu1 %v5405_v4  ;;  %4294 = vmatpush3.bf16.msra.mxu0 %v5419_v9 }
 0x21b   :  { %996 = vmatprep.subr.bf16.mxu1 %v5412_v8  ;;  %4295 = vmatprep.subr.bf16.mxu0 %v5140_v2 }
 0x21e   :  { %997 = vmatpush1.bf16.msra.mxu1 %v5426_v11  ;;  %4296 = vmatpush3.bf16.msra.mxu0 %v5438_v17 }
 0x21f   :  { %998 = vmatprep.subr.bf16.mxu1 %v5432_v13  ;;  %4297 = vmatprep.subr.bf16.mxu0 %v5140_v2 }
 0x222   :  { %999 = vmatpush1.bf16.msra.mxu1 %v5444_v19  ;;  %4298 = vmatpush3.bf16.msra.mxu0 %v5472_v28 }
 0x223   :  { %1000 = vmatprep.subr.bf16.mxu1 %v5451_v23  ;;  %4299 = vmatprep.subr.bf16.mxu0 %v5140_v2 }
 0x226   :  { %1001 = vmatpush1.bf16.msra.mxu1 %v5460_v25  ;;  %4300 = vmatpush3.bf16.msra.mxu0 %v5491_v31 }
 0x227   :  { %1002 = vmatprep.subr.bf16.mxu1 %v5467_v27  ;;  %4301 = vmatprep.subr.bf16.mxu0 %v5140_v2 }
 0x22a   :  { %1003 = vmatpush1.bf16.msra.mxu1 %v5478_v29  ;;  %4302 = vmatpush3.bf16.msra.mxu0 %v5512_v34 }
 0x22b   :  { %1004 = vmatprep.subr.bf16.mxu1 %v5485_v30  ;;  %4303 = vmatprep.subr.bf16.mxu0 %v5140_v2 }
 0x22e   :  { %1005 = vmatpush1.bf16.msra.mxu1 %v5500_v32  ;;  %4304 = vmatpush3.bf16.msra.mxu0 %v5526_v36 }
 0x22f   :  { %1006 = vmatprep.subr.bf16.mxu1 %v5506_v33  ;;  %4305 = vmatprep.subr.bf16.mxu0 %v5140_v2 }
 0x232   :  { %1007 = vmatpush1.bf16.msra.mxu1 %v5519_v35  ;;  %4306 = vmatpush3.bf16.msra.mxu0 %v5534_v37 }
 0x233   :  { %1114 = vmatprep.subr.bf16.mxu1 %v5375_v48  ;;  %4311 = vmatprep.subr.bf16.mxu0 %v5140_v2 }
 0x2e8   :  { %v904_v58 = vpop.f32.mrb[28].mxu1  ;;  %v945_v60 = vpop.f32.mrb[16].mxu0 }
 0x2e9   :  { %v952_v62 = vrot.slane %v904_v58, 6  ;;  %v906_v0 = vpop.f32.mrb[29].mxu1  ;;  %v4289_v1 = vpop.f32.mrb[17].mxu0  ;;  %v971_v22 = vadd.f32 %v5615_v38, %v945_v60 }
 0x2ea   :  { %v962_v5 = vrot.slane %v906_v0, 6  ;;  %v908_v6 = vpop.f32.mrb[30].mxu1  ;;  %v948_v7 = vpop.f32.mrb[18].mxu0  ;;  %v985_v0 = vld [vmem:[#allocation2] sm:$0x30] }
 0x2eb   :  { %v954_v10 = vadd.f32 %v952_v62, %v866_v3  ;;  %v909_v14 = vpop.f32.mrb[31].mxu1  ;;  %v4290_v45 = vpop.f32.mrb[19].mxu0  ;;  %v973_v50 = vrot.slane %v971_v22, 6  ;;  %v986_v7 = vld [vmem:[#allocation2 + $0x8] sm:$0x30] }
 0x2ec   :  { %v964_v15 = vadd.f32 %v962_v5, %v867_v12 }
 0x2ed   :  { %v3940_v46 = vmul.f32 -1.442695, %v954_v10 }
 0x2ee   :  { %v3941_v16 = vmul.f32 -1.442695, %v964_v15 }
 0x2ef   :  { %4811 = vpow2.f32 %v3940_v46 }
 0x2f0   :  { %4813 = vpow2.f32 %v3941_v16 }
 0x2f9   :  { %v4812_v18 = vpop.eup %4811 }
 0x2fa   :  { %v4814_v20 = vpop.eup %4813  ;;  %v958_v21 = vadd.f32 1.0, %v4812_v18 }
 0x2fb   :  { %v968_v47 = vadd.f32 1.0, %v4814_v20 }
 0x2fc   :  { %4815 = vrcp.f32 %v958_v21 }
 0x2fd   :  { %4817 = vrcp.f32 %v968_v47 }
 0x306   :  { %v4816_v24 = vpop.eup %4815 }
 0x307   :  { %v4818_v39 = vpop.eup %4817  ;;  %v975_v40 = vmul.f32 %v4816_v24, %v973_v50 }
 0x308   :  { %v983_v42 = vmul.f32 %v4818_v39, %v981_v26  ;;  %v978_v44 = vsub.f32 1.0, %v4818_v39  ;;  %v987_v39 = vld [vmem:[#allocation2 + $0x10] sm:$0x30] }
 0x309   :  { %v976_v43 = vadd.f32 %v975_v40, %v868_v41 }
 0x30b   :  { %4819 = vtanh.f32 %v976_v43 }
 0x315   :  { %v4820_v51 = vpop.eup %4819 }
 0x316   :  { %v979_v52 = vmul.f32 %v4820_v51, %v978_v44 }
 0x318   :  { %v5659_v53 = vadd.f32 %v983_v42, %v979_v52 }
 0x31a   :  { %v988_v54 = vpack.c.bf16 %v5659_v53, %v5659_v53  ;;  %v1103_v50 = vrot.slane %v5659_v53, 6 }
 0x31c   :  { %v990_v55 = vrot.slane %v988_v54, 1 }
 0x31e   :  { %1025 = vmatmul.mubr.bf16.vlgmr.msra.gmra.mrb[32].mxu1 %v990_v55  ;;  %4308 = vmatmul.mubr.bf16.vlgmr.msra.gmra.mrb[20].mxu0 %v990_v55 }
 0x31f   :  { %1115 = vmatpush1.bf16.msra.mxu1 %v5389_v59  ;;  %4312 = vmatpush3.bf16.msra.mxu0 %v5399_v63 }
 0x320   :  { %1116 = vmatprep.subr.bf16.mxu1 %v5394_v61  ;;  %4313 = vmatprep.subr.bf16.mxu0 %v5140_v2 }
 0x321   :  { %1146 = vmatprep.mubr.bf16.mxu1 %v5142_v49  ;;  %4327 = vmatprep.mubr.msk.bf16.mxu0 %vm5141_vm0, %v5140_v2 }
 0x323   :  { %1117 = vmatpush1.bf16.msra.mxu1 %v5405_v4  ;;  %4314 = vmatpush3.bf16.msra.mxu0 %v5419_v9 }
 0x324   :  { %1118 = vmatprep.subr.bf16.mxu1 %v5412_v8  ;;  %4315 = vmatprep.subr.bf16.mxu0 %v5140_v2 }
 0x327   :  { %1119 = vmatpush1.bf16.msra.mxu1 %v5426_v11  ;;  %4316 = vmatpush3.bf16.msra.mxu0 %v5438_v17 }
 0x328   :  { %1120 = vmatprep.subr.bf16.mxu1 %v5432_v13  ;;  %4317 = vmatprep.subr.bf16.mxu0 %v5140_v2 }
 0x32b   :  { %1121 = vmatpush1.bf16.msra.mxu1 %v5444_v19  ;;  %4318 = vmatpush3.bf16.msra.mxu0 %v5472_v28 }
 0x32c   :  { %1122 = vmatprep.subr.bf16.mxu1 %v5451_v23  ;;  %4319 = vmatprep.subr.bf16.mxu0 %v5140_v2 }
 0x32f   :  { %1123 = vmatpush1.bf16.msra.mxu1 %v5460_v25  ;;  %4320 = vmatpush3.bf16.msra.mxu0 %v5491_v31 }
 0x330   :  { %1124 = vmatprep.subr.bf16.mxu1 %v5467_v27  ;;  %4321 = vmatprep.subr.bf16.mxu0 %v5140_v2 }
 0x333   :  { %1125 = vmatpush1.bf16.msra.mxu1 %v5478_v29  ;;  %4322 = vmatpush3.bf16.msra.mxu0 %v5512_v34 }
 0x334   :  { %1126 = vmatprep.subr.bf16.mxu1 %v5485_v30  ;;  %4323 = vmatprep.subr.bf16.mxu0 %v5140_v2 }
 0x337   :  { %1127 = vmatpush1.bf16.msra.mxu1 %v5500_v32  ;;  %4324 = vmatpush3.bf16.msra.mxu0 %v5526_v36 }
 0x338   :  { %1128 = vmatprep.subr.bf16.mxu1 %v5506_v33  ;;  %4325 = vmatprep.subr.bf16.mxu0 %v5140_v2 }
 0x33b   :  { %1129 = vmatpush1.bf16.msra.mxu1 %v5519_v35  ;;  %4326 = vmatpush3.bf16.msra.mxu0 %v5534_v37 }
 0x33c   :  { %1236 = vmatprep.subr.bf16.mxu1 %v5375_v48  ;;  %4331 = vmatprep.subr.bf16.mxu0 %v5140_v2 }
 0x3f1   :  { %v1026_v56 = vpop.f32.mrb[32].mxu1  ;;  %v1067_v57 = vpop.f32.mrb[20].mxu0 }
 0x3f2   :  { %v1074_v58 = vrot.slane %v1026_v56, 4  ;;  %v1028_v60 = vpop.f32.mrb[33].mxu1  ;;  %v4309_v62 = vpop.f32.mrb[21].mxu0  ;;  %v1093_v21 = vadd.f32 %v5615_v38, %v1067_v57 }
 0x3f3   :  { %v1084_v1 = vrot.slane %v1028_v60, 4  ;;  %v1030_v3 = vpop.f32.mrb[34].mxu1  ;;  %v1070_v5 = vpop.f32.mrb[22].mxu0  ;;  %v1107_v60 = vld [vmem:[#allocation2] sm:$0xc0] }
 0x3f4   :  { %v1076_v6 = vadd.f32 %v1074_v58, %v985_v0  ;;  %v1031_v10 = vpop.f32.mrb[35].mxu1  ;;  %v4310_v12 = vpop.f32.mrb[23].mxu0  ;;  %v1095_v47 = vrot.slane %v1093_v21, 4  ;;  %v1108_v5 = vld [vmem:[#allocation2 + $0x8] sm:$0xc0] }
 0x3f5   :  { %v1086_v14 = vadd.f32 %v1084_v1, %v986_v7 }
 0x3f6   :  { %v3942_v45 = vmul.f32 -1.442695, %v1076_v6 }
 0x3f7   :  { %v3943_v15 = vmul.f32 -1.442695, %v1086_v14 }
 0x3f8   :  { %4821 = vpow2.f32 %v3942_v45 }
 0x3f9   :  { %4823 = vpow2.f32 %v3943_v15 }
 0x402   :  { %v4822_v46 = vpop.eup %4821 }
 0x403   :  { %v4824_v16 = vpop.eup %4823  ;;  %v1080_v18 = vadd.f32 1.0, %v4822_v46 }
 0x404   :  { %v1090_v20 = vadd.f32 1.0, %v4824_v16 }
 0x405   :  { %4825 = vrcp.f32 %v1080_v18 }
 0x406   :  { %4827 = vrcp.f32 %v1090_v20 }
 0x40f   :  { %v4826_v22 = vpop.eup %4825 }
 0x410   :  { %v4828_v24 = vpop.eup %4827  ;;  %v1097_v26 = vmul.f32 %v4826_v22, %v1095_v47 }
 0x411   :  { %v1105_v40 = vmul.f32 %v4828_v24, %v1103_v50  ;;  %v1100_v42 = vsub.f32 1.0, %v4828_v24  ;;  %v1109_v50 = vld [vmem:[#allocation2 + $0x10] sm:$0xc0] }
 0x412   :  { %v1098_v41 = vadd.f32 %v1097_v26, %v987_v39 }
 0x414   :  { %4829 = vtanh.f32 %v1098_v41 }
 0x41e   :  { %v4830_v43 = vpop.eup %4829 }
 0x41f   :  { %v1101_v44 = vmul.f32 %v4830_v43, %v1100_v42 }
 0x421   :  { %v5700_v51 = vadd.f32 %v1105_v40, %v1101_v44 }
 0x423   :  { %v1110_v52 = vpack.c.bf16 %v5700_v51, %v5700_v51  ;;  %v1225_v21 = vrot.slane %v5700_v51, 6 }
 0x425   :  { %v1112_v54 = vrot.slane %v1110_v52, 2 }
 0x427   :  { %1147 = vmatmul.mubr.bf16.vlgmr.msra.gmra.mrb[36].mxu1 %v1112_v54  ;;  %4328 = vmatmul.mubr.bf16.vlgmr.msra.gmra.mrb[24].mxu0 %v1112_v54 }
 0x428   :  { %1237 = vmatpush1.bf16.msra.mxu1 %v5389_v59  ;;  %4332 = vmatpush3.bf16.msra.mxu0 %v5399_v63 }
 0x429   :  { %1238 = vmatprep.subr.bf16.mxu1 %v5394_v61  ;;  %4333 = vmatprep.subr.bf16.mxu0 %v5140_v2 }
 0x42a   :  { %1268 = vmatprep.mubr.bf16.mxu1 %v5142_v49  ;;  %4347 = vmatprep.mubr.msk.bf16.mxu0 %vm5141_vm0, %v5140_v2 }
 0x42c   :  { %1239 = vmatpush1.bf16.msra.mxu1 %v5405_v4  ;;  %4334 = vmatpush3.bf16.msra.mxu0 %v5419_v9 }
 0x42d   :  { %1240 = vmatprep.subr.bf16.mxu1 %v5412_v8  ;;  %4335 = vmatprep.subr.bf16.mxu0 %v5140_v2 }
 0x430   :  { %1241 = vmatpush1.bf16.msra.mxu1 %v5426_v11  ;;  %4336 = vmatpush3.bf16.msra.mxu0 %v5438_v17 }
 0x431   :  { %1242 = vmatprep.subr.bf16.mxu1 %v5432_v13  ;;  %4337 = vmatprep.subr.bf16.mxu0 %v5140_v2 }
 0x434   :  { %1243 = vmatpush1.bf16.msra.mxu1 %v5444_v19  ;;  %4338 = vmatpush3.bf16.msra.mxu0 %v5472_v28 }
 0x435   :  { %1244 = vmatprep.subr.bf16.mxu1 %v5451_v23  ;;  %4339 = vmatprep.subr.bf16.mxu0 %v5140_v2 }
 0x438   :  { %1245 = vmatpush1.bf16.msra.mxu1 %v5460_v25  ;;  %4340 = vmatpush3.bf16.msra.mxu0 %v5491_v31 }
 0x439   :  { %1246 = vmatprep.subr.bf16.mxu1 %v5467_v27  ;;  %4341 = vmatprep.subr.bf16.mxu0 %v5140_v2 }
 0x43c   :  { %1247 = vmatpush1.bf16.msra.mxu1 %v5478_v29  ;;  %4342 = vmatpush3.bf16.msra.mxu0 %v5512_v34 }
 0x43d   :  { %1248 = vmatprep.subr.bf16.mxu1 %v5485_v30  ;;  %4343 = vmatprep.subr.bf16.mxu0 %v5140_v2 }
 0x440   :  { %1249 = vmatpush1.bf16.msra.mxu1 %v5500_v32  ;;  %4344 = vmatpush3.bf16.msra.mxu0 %v5526_v36 }
 0x441   :  { %1250 = vmatprep.subr.bf16.mxu1 %v5506_v33  ;;  %4345 = vmatprep.subr.bf16.mxu0 %v5140_v2 }
 0x444   :  { %1251 = vmatpush1.bf16.msra.mxu1 %v5519_v35  ;;  %4346 = vmatpush3.bf16.msra.mxu0 %v5534_v37 }
 0x445   :  { %1346 = vmatprep.subr.bf16.mxu1 %v5375_v48  ;;  %4351 = vmatprep.subr.bf16.mxu0 %v5140_v2 }
 0x4fa   :  { %v1148_v53 = vpop.f32.mrb[36].mxu1  ;;  %v1189_v55 = vpop.f32.mrb[24].mxu0 }
 0x4fb   :  { %v1196_v56 = vrot.slane %v1148_v53, 2  ;;  %v1150_v57 = vpop.f32.mrb[37].mxu1  ;;  %v4329_v58 = vpop.f32.mrb[25].mxu0  ;;  %v1215_v16 = vadd.f32 %v5615_v38, %v1189_v55 }
 0x4fc   :  { %v1206_v62 = vrot.slane %v1150_v57, 2  ;;  %v1152_v0 = vpop.f32.mrb[38].mxu1  ;;  %v1192_v1 = vpop.f32.mrb[26].mxu0 }
 0x4fd   :  { %v1198_v3 = vadd.f32 %v1196_v56, %v1107_v60  ;;  %v1153_v6 = vpop.f32.mrb[39].mxu1  ;;  %v4330_v7 = vpop.f32.mrb[27].mxu0  ;;  %v1217_v18 = vrot.slane %v1215_v16, 2  ;;  %v5816_v16 = vld [vmem:[%s6854_s6 + $0x18] ss:$12 sps:$4 sm:$0xff]  }
 0x4fe   :  { %v1208_v10 = vadd.f32 %v1206_v62, %v1108_v5 }
 0x4ff   :  { %v3944_v12 = vmul.f32 -1.442695, %v1198_v3  ;;  %v1231_v3 = vld [vmem:[#allocation2 + $0x30] sm:$0x3] }
 0x500   :  { %v3945_v14 = vmul.f32 -1.442695, %v1208_v10 }
 0x501   :  { %4831 = vpow2.f32 %v3944_v12 }
 0x502   :  { %4833 = vpow2.f32 %v3945_v14 }
 0x50b   :  { %v4832_v48 = vpop.eup %4831 }
 0x50c   :  { %v4834_v45 = vpop.eup %4833  ;;  %v1202_v15 = vadd.f32 1.0, %v4832_v48 }
 0x50d   :  { %v1212_v46 = vadd.f32 1.0, %v4834_v45  ;;  %v5794_v45 = vld [vmem:[%s6854_s6] ss:$12 sps:$4 sm:$0xff]  }
 0x50e   :  { %4835 = vrcp.f32 %v1202_v15  ;;  %v5800_v15 = vld [vmem:[%s6854_s6 + $0x8] ss:$12 sps:$4 sm:$0xff]  }
 0x50f   :  { %4837 = vrcp.f32 %v1212_v46  ;;  %v5806_v46 = vld [vmem:[%s6854_s6 + $0x1c] ss:$12 sps:$4 sm:$0xff]  }
 0x518   :  { %v4836_v20 = vpop.eup %4835 }
 0x519   :  { %v4838_v47 = vpop.eup %4837  ;;  %v1219_v22 = vmul.f32 %v4836_v20, %v1217_v18  ;;  %v5822_v18 = vld [vmem:[%s6854_s6 + $0x20] ss:$12 sps:$4 sm:$0xff]  }
 0x51a   :  { %v1227_v24 = vmul.f32 %v4838_v47, %v1225_v21  ;;  %v1222_v39 = vsub.f32 1.0, %v4838_v47  ;;  %v5828_v20 = vld [vmem:[%s6854_s6 + $0x34] ss:$12 sps:$4 sm:$0xff]   ;;  %v5835_v21 = vld [vmem:[%s6854_s6 + $0x30] ss:$12 sps:$4 sm:$0xff]  }
 0x51b   :  { %v1220_v26 = vadd.f32 %v1219_v22, %v1109_v50  ;;  %v5841_v47 = vld [vmem:[%s6854_s6 + $0x38] ss:$12 sps:$4 sm:$0xff]   ;;  %v5854_v50 = vld [vmem:[%s6854_s6 + $0x48] ss:$12 sps:$4 sm:$0xff]  }
 0x51c   :  { %v5847_v22 = vld [vmem:[%s6854_s6 + $0x4c] ss:$12 sps:$4 sm:$0xff]  }
 0x51d   :  { %4839 = vtanh.f32 %v1220_v26  ;;  %v5868_v26 = vld [vmem:[%s6854_s6 + $0x60] ss:$12 sps:$4 sm:$0xff]  }
 0x527   :  { %v4840_v40 = vpop.eup %4839 }
 0x528   :  { %v1223_v41 = vmul.f32 %v4840_v40, %v1222_v39  ;;  %v1343_v40 = vld [vmem:[#allocation2 + $0x28] sm:$0xc] }
 0x52a   :  { %v5741_v42 = vadd.f32 %v1227_v24, %v1223_v41  ;;  %v5861_v24 = vld [vmem:[%s6854_s6 + $0x64] ss:$12 sps:$4 sm:$0xff]  }
 0x52c   :  { %v1232_v43 = vpack.c.bf16 %v5741_v42, %v5741_v42  ;;  %v1338_v62 = vrot.slane %v5741_v42, 6 }
 0x52e   :  { %v1234_v44 = vrot.slane %v1232_v43, 3 }
 0x530   :  { %1269 = vmatmul.mubr.bf16.vlgmr.msra.gmra.mrb[40].mxu1 %v1234_v44  ;;  %4348 = vmatmul.mubr.bf16.vlgmr.msra.gmra.mrb[28].mxu0 %v1234_v44 }
 0x531   :  { %1347 = vmatpush1.bf16.msra.mxu1 %v5389_v59  ;;  %4352 = vmatpush3.bf16.msra.mxu0 %v5399_v63  ;;  %v5781_v59 = vld [vmem:[%s6854_s6 + $0x4] ss:$12 sps:$4 sm:$0xff]  }
 0x532   :  { %1348 = vmatprep.subr.bf16.mxu1 %v5394_v61  ;;  %4353 = vmatprep.subr.bf16.mxu0 %v5140_v2  ;;  %v1229_v61 = vld [vmem:[#allocation2 + $0x20] sm:$0x3] }
 0x533   :  { %1378 = vmatprep.mubr.bf16.mxu1 %v5142_v49  ;;  %4367 = vmatprep.mubr.msk.bf16.mxu0 %vm5141_vm0, %v5140_v2 }
 0x535   :  { %1349 = vmatpush1.bf16.msra.mxu1 %v5405_v4  ;;  %4354 = vmatpush3.bf16.msra.mxu0 %v5419_v9  ;;  %v1230_v9 = vld [vmem:[#allocation2 + $0x28] sm:$0x3] }
 0x536   :  { %1350 = vmatprep.subr.bf16.mxu1 %v5412_v8  ;;  %4355 = vmatprep.subr.bf16.mxu0 %v5140_v2 }
 0x539   :  { %1351 = vmatpush1.bf16.msra.mxu1 %v5426_v11  ;;  %4356 = vmatpush3.bf16.msra.mxu0 %v5438_v17 }
 0x53a   :  { %1352 = vmatprep.subr.bf16.mxu1 %v5432_v13  ;;  %4357 = vmatprep.subr.bf16.mxu0 %v5140_v2 }
 0x53d   :  { %1353 = vmatpush1.bf16.msra.mxu1 %v5444_v19  ;;  %4358 = vmatpush3.bf16.msra.mxu0 %v5472_v28 }
 0x53e   :  { %1354 = vmatprep.subr.bf16.mxu1 %v5451_v23  ;;  %4359 = vmatprep.subr.bf16.mxu0 %v5140_v2 }
 0x541   :  { %1355 = vmatpush1.bf16.msra.mxu1 %v5460_v25  ;;  %4360 = vmatpush3.bf16.msra.mxu0 %v5491_v31 }
 0x542   :  { %1356 = vmatprep.subr.bf16.mxu1 %v5467_v27  ;;  %4361 = vmatprep.subr.bf16.mxu0 %v5140_v2 }
 0x545   :  { %1357 = vmatpush1.bf16.msra.mxu1 %v5478_v29  ;;  %4362 = vmatpush3.bf16.msra.mxu0 %v5512_v34 }
 0x546   :  { %1358 = vmatprep.subr.bf16.mxu1 %v5485_v30  ;;  %4363 = vmatprep.subr.bf16.mxu0 %v5140_v2 }
 0x549   :  { %1359 = vmatpush1.bf16.msra.mxu1 %v5500_v32  ;;  %4364 = vmatpush3.bf16.msra.mxu0 %v5526_v36 }
 0x54a   :  { %1360 = vmatprep.subr.bf16.mxu1 %v5506_v33  ;;  %4365 = vmatprep.subr.bf16.mxu0 %v5140_v2 }
 0x54d   :  { %1361 = vmatpush1.bf16.msra.mxu1 %v5519_v35  ;;  %4366 = vmatpush3.bf16.msra.mxu0 %v5534_v37 }
 0x54e   :  { %1468 = vmatprep.subr.bf16.mxu1 %v5781_v59  ;;  %4371 = vmatprep.subr.bf16.mxu0 %v5140_v2 }
 0x603   :  { %v1270_v63 = vpop.f32.mrb[40].mxu1  ;;  %v1311_v4 = vpop.f32.mrb[28].mxu0 }
 0x604   :  { %v1317_v8 = vadd.f32 %v1270_v63, %v1229_v61  ;;  %v1272_v11 = vpop.f32.mrb[41].mxu1  ;;  %v4349_v13 = vpop.f32.mrb[29].mxu0  ;;  %v1331_v58 = vadd.f32 %v5615_v38, %v1311_v4 }
 0x605   :  { %v1324_v17 = vadd.f32 %v1272_v11, %v1230_v9  ;;  %v1274_v19 = vpop.f32.mrb[42].mxu1  ;;  %v1314_v23 = vpop.f32.mrb[30].mxu0 }
 0x606   :  { %v3946_v25 = vmul.f32 -1.442695, %v1317_v8  ;;  %v1275_v51 = vpop.f32.mrb[43].mxu1  ;;  %v4350_v52 = vpop.f32.mrb[31].mxu0  ;;  %v1344_v23 = vld [vmem:[#allocation2 + $0x30] sm:$0xc] }
 0x607   :  { %v3947_v54 = vmul.f32 -1.442695, %v1324_v17 }
 0x608   :  { %4841 = vpow2.f32 %v3946_v25 }
 0x609   :  { %4843 = vpow2.f32 %v3947_v54 }
 0x612   :  { %v4842_v53 = vpop.eup %4841 }
 0x613   :  { %v4844_v55 = vpop.eup %4843  ;;  %v1321_v56 = vadd.f32 1.0, %v4842_v53 }
 0x614   :  { %v1328_v57 = vadd.f32 1.0, %v4844_v55 }
 0x615   :  { %4845 = vrcp.f32 %v1321_v56 }
 0x616   :  { %4847 = vrcp.f32 %v1328_v57 }
 0x61f   :  { %v4846_v60 = vpop.eup %4845 }
 0x620   :  { %v4848_v0 = vpop.eup %4847  ;;  %v1332_v1 = vmul.f32 %v4846_v60, %v1331_v58  ;;  %v5911_v58 = vld [vmem:[%s6854_s6 + $0x50] ss:$12 sps:$4 sm:$0xff]   ;;  %v5920_v60 = vld [vmem:[%s6854_s6 + $0x68] ss:$12 sps:$4 sm:$0xff]  }
 0x621   :  { %v1340_v5 = vmul.f32 %v4848_v0, %v1338_v62  ;;  %v1335_v7 = vsub.f32 1.0, %v4848_v0  ;;  %v5926_v62 = vld [vmem:[%s6854_s6 + $0x7c] ss:$12 sps:$4 sm:$0xff]   ;;  %v5933_v0 = vld [vmem:[%s6854_s6 + $0x78] ss:$12 sps:$4 sm:$0xff]  }
 0x622   :  { %v1333_v6 = vadd.f32 %v1332_v1, %v1231_v3  ;;  %v5939_v1 = vld [vmem:[%s6854_s6 + $0x80] ss:$12 sps:$4 sm:$0xff]  }
 0x623   :  { %v5945_v3 = vld [vmem:[%s6854_s6 + $0x94] ss:$12 sps:$4 sm:$0xff]  }
 0x624   :  { %4849 = vtanh.f32 %v1333_v6  ;;  %v5958_v6 = vld [vmem:[%s6854_s6 + $0x98] ss:$12 sps:$4 sm:$0xff]  }
 0x62e   :  { %v4850_v10 = vpop.eup %4849 }
 0x62f   :  { %v1336_v12 = vmul.f32 %v4850_v10, %v1335_v7  ;;  %v5964_v7 = vld [vmem:[%s6854_s6 + $0xac] ss:$12 sps:$4 sm:$0xff]   ;;  %v5971_v10 = vld [vmem:[%s6854_s6 + $0xa8] ss:$12 sps:$4 sm:$0xff]  }
 0x631   :  { %v5787_v14 = vadd.f32 %v1340_v5, %v1336_v12  ;;  %v5952_v5 = vld [vmem:[%s6854_s6 + $0x90] ss:$12 sps:$4 sm:$0xff]  }
 0x632   :  { %v5977_v12 = vld [vmem:[%s6854_s6 + $0xb0] ss:$12 sps:$4 sm:$0xff]  }
 0x633   :  { %v1345_v48 = vpack.c.bf16 %v5787_v14, %v5787_v14  ;;  %v1457_v13 = vrot.slane %v5787_v14, 6 }
 0x635   :  { %1379 = vmatmul.mubr.bf16.vlgmr.msra.gmra.mrb[44].mxu1 %v1345_v48  ;;  %4368 = vmatmul.mubr.bf16.vlgmr.msra.gmra.mrb[32].mxu0 %v1345_v48 }
 0x636   :  { %1469 = vmatpush1.bf16.msra.mxu1 %v5794_v45  ;;  %4372 = vmatpush3.bf16.msra.mxu0 %v5800_v15 }
 0x637   :  { %1470 = vmatprep.subr.bf16.mxu1 %v5806_v46  ;;  %4373 = vmatprep.subr.bf16.mxu0 %v5140_v2 }
 0x638   :  { %1500 = vmatprep.mubr.bf16.mxu1 %v5142_v49  ;;  %4387 = vmatprep.mubr.msk.bf16.mxu0 %vm5141_vm0, %v5140_v2 }
 0x63a   :  { %1471 = vmatpush1.bf16.msra.mxu1 %v5816_v16  ;;  %4374 = vmatpush3.bf16.msra.mxu0 %v5822_v18 }
 0x63b   :  { %1472 = vmatprep.subr.bf16.mxu1 %v5828_v20  ;;  %4375 = vmatprep.subr.bf16.mxu0 %v5140_v2 }
 0x63e   :  { %1473 = vmatpush1.bf16.msra.mxu1 %v5835_v21  ;;  %4376 = vmatpush3.bf16.msra.mxu0 %v5841_v47 }
 0x63f   :  { %1474 = vmatprep.subr.bf16.mxu1 %v5847_v22  ;;  %4377 = vmatprep.subr.bf16.mxu0 %v5140_v2 }
 0x642   :  { %1475 = vmatpush1.bf16.msra.mxu1 %v5854_v50  ;;  %4378 = vmatpush3.bf16.msra.mxu0 %v5472_v28 }
 0x643   :  { %1476 = vmatprep.subr.bf16.mxu1 %v5861_v24  ;;  %4379 = vmatprep.subr.bf16.mxu0 %v5140_v2 }
 0x646   :  { %1477 = vmatpush1.bf16.msra.mxu1 %v5868_v26  ;;  %4380 = vmatpush3.bf16.msra.mxu0 %v5491_v31 }
 0x647   :  { %1478 = vmatprep.subr.bf16.mxu1 %v5467_v27  ;;  %4381 = vmatprep.subr.bf16.mxu0 %v5140_v2 }
 0x64a   :  { %1479 = vmatpush1.bf16.msra.mxu1 %v5478_v29  ;;  %4382 = vmatpush3.bf16.msra.mxu0 %v5512_v34 }
 0x64b   :  { %1480 = vmatprep.subr.bf16.mxu1 %v5485_v30  ;;  %4383 = vmatprep.subr.bf16.mxu0 %v5140_v2 }
 0x64e   :  { %1481 = vmatpush1.bf16.msra.mxu1 %v5500_v32  ;;  %4384 = vmatpush3.bf16.msra.mxu0 %v5526_v36  ;;  %v1342_v32 = vld [vmem:[#allocation2 + $0x20] sm:$0xc] }
 0x64f   :  { %1482 = vmatprep.subr.bf16.mxu1 %v5506_v33  ;;  %4385 = vmatprep.subr.bf16.mxu0 %v5140_v2 }
 0x652   :  { %1483 = vmatpush1.bf16.msra.mxu1 %v5519_v35  ;;  %4386 = vmatpush3.bf16.msra.mxu0 %v5534_v37 }
 0x653   :  { %1590 = vmatprep.subr.bf16.mxu1 %v5781_v59  ;;  %4391 = vmatprep.subr.bf16.mxu0 %v5140_v2 }
 0x708   :  { %v1380_v27 = vpop.f32.mrb[44].mxu1  ;;  %v1421_v28 = vpop.f32.mrb[32].mxu0 }
 0x709   :  { %v1428_v29 = vrot.slane %v1380_v27, 6  ;;  %v1382_v30 = vpop.f32.mrb[45].mxu1  ;;  %v4369_v31 = vpop.f32.mrb[33].mxu0  ;;  %v1447_v8 = vadd.f32 %v5615_v38, %v1421_v28 }
 0x70a   :  { %v1438_v34 = vrot.slane %v1382_v30, 6  ;;  %v1384_v36 = vpop.f32.mrb[46].mxu1  ;;  %v1424_v39 = vpop.f32.mrb[34].mxu0  ;;  %v1461_v30 = vld [vmem:[#allocation2 + $0x20] sm:$0x30] }
 0x70b   :  { %v1430_v33 = vadd.f32 %v1428_v29, %v1342_v32  ;;  %v1385_v41 = vpop.f32.mrb[47].mxu1  ;;  %v4370_v42 = vpop.f32.mrb[35].mxu0  ;;  %v1449_v9 = vrot.slane %v1447_v8, 6  ;;  %v1462_v39 = vld [vmem:[#allocation2 + $0x28] sm:$0x30] }
 0x70c   :  { %v1440_v35 = vadd.f32 %v1438_v34, %v1343_v40 }
 0x70d   :  { %v3948_v43 = vmul.f32 -1.442695, %v1430_v33 }
 0x70e   :  { %v3949_v37 = vmul.f32 -1.442695, %v1440_v35 }
 0x70f   :  { %4851 = vpow2.f32 %v3948_v43 }
 0x710   :  { %4853 = vpow2.f32 %v3949_v37 }
 0x719   :  { %v4852_v44 = vpop.eup %4851 }
 0x71a   :  { %v4854_v61 = vpop.eup %4853  ;;  %v1434_v63 = vadd.f32 1.0, %v4852_v44 }
 0x71b   :  { %v1444_v4 = vadd.f32 1.0, %v4854_v61 }
 0x71c   :  { %4855 = vrcp.f32 %v1434_v63 }
 0x71d   :  { %4857 = vrcp.f32 %v1444_v4 }
 0x726   :  { %v4856_v11 = vpop.eup %4855 }
 0x727   :  { %v4858_v17 = vpop.eup %4857  ;;  %v1451_v19 = vmul.f32 %v4856_v11, %v1449_v9 }
 0x728   :  { %v1459_v25 = vmul.f32 %v4858_v17, %v1457_v13  ;;  %v1454_v52 = vsub.f32 1.0, %v4858_v17  ;;  %v1463_v17 = vld [vmem:[#allocation2 + $0x30] sm:$0x30] }
 0x729   :  { %v1452_v51 = vadd.f32 %v1451_v19, %v1344_v23 }
 0x72b   :  { %4859 = vtanh.f32 %v1452_v51 }
 0x735   :  { %v4860_v54 = vpop.eup %4859 }
 0x736   :  { %v1455_v53 = vmul.f32 %v4860_v54, %v1454_v52 }
 0x738   :  { %v5888_v55 = vadd.f32 %v1459_v25, %v1455_v53 }
 0x73a   :  { %v1464_v56 = vpack.c.bf16 %v5888_v55, %v5888_v55  ;;  %v1579_v9 = vrot.slane %v5888_v55, 6 }
 0x73c   :  { %v1466_v57 = vrot.slane %v1464_v56, 1 }
 0x73e   :  { %1501 = vmatmul.mubr.bf16.vlgmr.msra.gmra.mrb[48].mxu1 %v1466_v57  ;;  %4388 = vmatmul.mubr.bf16.vlgmr.msra.gmra.mrb[36].mxu0 %v1466_v57 }
 0x73f   :  { %1591 = vmatpush1.bf16.msra.mxu1 %v5794_v45  ;;  %4392 = vmatpush3.bf16.msra.mxu0 %v5800_v15 }
 0x740   :  { %1592 = vmatprep.subr.bf16.mxu1 %v5806_v46  ;;  %4393 = vmatprep.subr.bf16.mxu0 %v5140_v2 }
 0x741   :  { %1622 = vmatprep.mubr.bf16.mxu1 %v5142_v49  ;;  %4407 = vmatprep.mubr.msk.bf16.mxu0 %vm5141_vm0, %v5140_v2 }
 0x743   :  { %1593 = vmatpush1.bf16.msra.mxu1 %v5816_v16  ;;  %4394 = vmatpush3.bf16.msra.mxu0 %v5822_v18 }
 0x744   :  { %1594 = vmatprep.subr.bf16.mxu1 %v5828_v20  ;;  %4395 = vmatprep.subr.bf16.mxu0 %v5140_v2 }
 0x747   :  { %1595 = vmatpush1.bf16.msra.mxu1 %v5835_v21  ;;  %4396 = vmatpush3.bf16.msra.mxu0 %v5841_v47 }
 0x748   :  { %1596 = vmatprep.subr.bf16.mxu1 %v5847_v22  ;;  %4397 = vmatprep.subr.bf16.mxu0 %v5140_v2 }
 0x74b   :  { %1597 = vmatpush1.bf16.msra.mxu1 %v5854_v50  ;;  %4398 = vmatpush3.bf16.msra.mxu0 %v5911_v58 }
 0x74c   :  { %1598 = vmatprep.subr.bf16.mxu1 %v5861_v24  ;;  %4399 = vmatprep.subr.bf16.mxu0 %v5140_v2 }
 0x74f   :  { %1599 = vmatpush1.bf16.msra.mxu1 %v5868_v26  ;;  %4400 = vmatpush3.bf16.msra.mxu0 %v5920_v60 }
 0x750   :  { %1600 = vmatprep.subr.bf16.mxu1 %v5926_v62  ;;  %4401 = vmatprep.subr.bf16.mxu0 %v5140_v2 }
 0x753   :  { %1601 = vmatpush1.bf16.msra.mxu1 %v5933_v0  ;;  %4402 = vmatpush3.bf16.msra.mxu0 %v5939_v1 }
 0x754   :  { %1602 = vmatprep.subr.bf16.mxu1 %v5945_v3  ;;  %4403 = vmatprep.subr.bf16.mxu0 %v5140_v2 }
 0x757   :  { %1603 = vmatpush1.bf16.msra.mxu1 %v5952_v5  ;;  %4404 = vmatpush3.bf16.msra.mxu0 %v5958_v6 }
 0x758   :  { %1604 = vmatprep.subr.bf16.mxu1 %v5964_v7  ;;  %4405 = vmatprep.subr.bf16.mxu0 %v5140_v2 }
 0x75b   :  { %1605 = vmatpush1.bf16.msra.mxu1 %v5971_v10  ;;  %4406 = vmatpush3.bf16.msra.mxu0 %v5977_v12 }
 0x75c   :  { %1712 = vmatprep.subr.bf16.mxu1 %v5781_v59  ;;  %4411 = vmatprep.subr.bf16.mxu0 %v5140_v2 }
 0x811   :  { %v1502_v14 = vpop.f32.mrb[48].mxu1  ;;  %v1543_v48 = vpop.f32.mrb[36].mxu0 }
 0x812   :  { %v1550_v27 = vrot.slane %v1502_v14, 4  ;;  %v1504_v28 = vpop.f32.mrb[49].mxu1  ;;  %v4389_v29 = vpop.f32.mrb[37].mxu0  ;;  %v1569_v63 = vadd.f32 %v5615_v38, %v1543_v48 }
 0x813   :  { %v1560_v31 = vrot.slane %v1504_v28, 4  ;;  %v1506_v32 = vpop.f32.mrb[50].mxu1  ;;  %v1546_v34 = vpop.f32.mrb[38].mxu0 }
 0x814   :  { %v1552_v36 = vadd.f32 %v1550_v27, %v1461_v30  ;;  %v1507_v33 = vpop.f32.mrb[51].mxu1  ;;  %v4390_v40 = vpop.f32.mrb[39].mxu0  ;;  %v1571_v4 = vrot.slane %v1569_v63, 4  ;;  %v1583_v27 = vld [vmem:[#allocation2 + $0x20] sm:$0xc0] }
 0x815   :  { %v1562_v41 = vadd.f32 %v1560_v31, %v1462_v39  ;;  %v1584_v32 = vld [vmem:[#allocation2 + $0x28] sm:$0xc0] }
 0x816   :  { %v3950_v42 = vmul.f32 -1.442695, %v1552_v36 }
 0x817   :  { %v3951_v35 = vmul.f32 -1.442695, %v1562_v41 }
 0x818   :  { %4861 = vpow2.f32 %v3950_v42 }
 0x819   :  { %4863 = vpow2.f32 %v3951_v35 }
 0x822   :  { %v4862_v43 = vpop.eup %4861 }
 0x823   :  { %v4864_v37 = vpop.eup %4863  ;;  %v1556_v44 = vadd.f32 1.0, %v4862_v43 }
 0x824   :  { %v1566_v61 = vadd.f32 1.0, %v4864_v37  ;;  %v6026_v37 = vld [vmem:[%s6855_s7] ss:$0 sm:$0xff] }
 0x825   :  { %4865 = vrcp.f32 %v1556_v44 }
 0x826   :  { %4867 = vrcp.f32 %v1566_v61 }
 0x82f   :  { %v4866_v8 = vpop.eup %4865 }
 0x830   :  { %v4868_v11 = vpop.eup %4867  ;;  %v1573_v13 = vmul.f32 %v4866_v8, %v1571_v4 }
 0x831   :  { %v1581_v19 = vmul.f32 %v4868_v11, %v1579_v9  ;;  %v1576_v25 = vsub.f32 1.0, %v4868_v11  ;;  %v1585_v11 = vld [vmem:[#allocation2 + $0x30] sm:$0xc0] }
 0x832   :  { %v1574_v23 = vadd.f32 %v1573_v13, %v1463_v17 }
 0x834   :  { %4869 = vtanh.f32 %v1574_v23 }
 0x83e   :  { %v4870_v51 = vpop.eup %4869 }
 0x83f   :  { %v1577_v52 = vmul.f32 %v4870_v51, %v1576_v25 }
 0x841   :  { %v5984_v54 = vadd.f32 %v1581_v19, %v1577_v52 }
 0x843   :  { %v1586_v53 = vpack.c.bf16 %v5984_v54, %v5984_v54  ;;  %v1701_v4 = vrot.slane %v5984_v54, 6  ;;  %v1705_v54 = vld [vmem:[#allocation2 + $0x40] sm:$0x3] }
 0x845   :  { %v1588_v56 = vrot.slane %v1586_v53, 2 }
 0x847   :  { %1623 = vmatmul.mubr.bf16.vlgmr.msra.gmra.mrb[52].mxu1 %v1588_v56  ;;  %4408 = vmatmul.mubr.bf16.vlgmr.msra.gmra.mrb[40].mxu0 %v1588_v56 }
 0x848   :  { %1713 = vmatpush1.bf16.msra.mxu1 %v5794_v45  ;;  %4412 = vmatpush3.bf16.msra.mxu0 %v5800_v15 }
 0x849   :  { %1714 = vmatprep.subr.bf16.mxu1 %v5806_v46  ;;  %4413 = vmatprep.subr.bf16.mxu0 %v5140_v2 }
 0x84a   :  { %1744 = vmatprep.mubr.bf16.mxu1 %v5142_v49  ;;  %4427 = vmatprep.mubr.msk.bf16.mxu0 %vm5141_vm0, %v5140_v2 }
 0x84c   :  { %1715 = vmatpush1.bf16.msra.mxu1 %v5816_v16  ;;  %4414 = vmatpush3.bf16.msra.mxu0 %v5822_v18 }
 0x84d   :  { %1716 = vmatprep.subr.bf16.mxu1 %v5828_v20  ;;  %4415 = vmatprep.subr.bf16.mxu0 %v5140_v2 }
 0x850   :  { %1717 = vmatpush1.bf16.msra.mxu1 %v5835_v21  ;;  %4416 = vmatpush3.bf16.msra.mxu0 %v5841_v47 }
 0x851   :  { %1718 = vmatprep.subr.bf16.mxu1 %v5847_v22  ;;  %4417 = vmatprep.subr.bf16.mxu0 %v5140_v2 }
 0x854   :  { %1719 = vmatpush1.bf16.msra.mxu1 %v5854_v50  ;;  %4418 = vmatpush3.bf16.msra.mxu0 %v5911_v58 }
 0x855   :  { %1720 = vmatprep.subr.bf16.mxu1 %v5861_v24  ;;  %4419 = vmatprep.subr.bf16.mxu0 %v5140_v2 }
 0x858   :  { %1721 = vmatpush1.bf16.msra.mxu1 %v5868_v26  ;;  %4420 = vmatpush3.bf16.msra.mxu0 %v5920_v60 }
 0x859   :  { %1722 = vmatprep.subr.bf16.mxu1 %v5926_v62  ;;  %4421 = vmatprep.subr.bf16.mxu0 %v5140_v2 }
 0x85c   :  { %1723 = vmatpush1.bf16.msra.mxu1 %v5933_v0  ;;  %4422 = vmatpush3.bf16.msra.mxu0 %v5939_v1 }
 0x85d   :  { %1724 = vmatprep.subr.bf16.mxu1 %v5945_v3  ;;  %4423 = vmatprep.subr.bf16.mxu0 %v5140_v2 }
 0x860   :  { %1725 = vmatpush1.bf16.msra.mxu1 %v5952_v5  ;;  %4424 = vmatpush3.bf16.msra.mxu0 %v5958_v6 }
 0x861   :  { %1726 = vmatprep.subr.bf16.mxu1 %v5964_v7  ;;  %4425 = vmatprep.subr.bf16.mxu0 %v5140_v2 }
 0x864   :  { %1727 = vmatpush1.bf16.msra.mxu1 %v5971_v10  ;;  %4426 = vmatpush3.bf16.msra.mxu0 %v5977_v12 }
 0x865   :  { %1822 = vmatprep.subr.bf16.mxu1 %v5781_v59  ;;  %4431 = vmatprep.subr.bf16.mxu0 %v5140_v2 }
 0x91a   :  { %v1624_v38 = vpop.f32.mrb[52].mxu1  ;;  %v1665_v55 = vpop.f32.mrb[40].mxu0 }
 0x91b   :  { %v1672_v57 = vrot.slane %v1624_v38, 2  ;;  %v1626_v14 = vpop.f32.mrb[53].mxu1  ;;  %v4409_v48 = vpop.f32.mrb[41].mxu0  ;;  %v1691_v44 = vadd.f32 %v6026_v37, %v1665_v55 }
 0x91c   :  { %v1682_v28 = vrot.slane %v1626_v14, 2  ;;  %v1628_v29 = vpop.f32.mrb[54].mxu1  ;;  %v1668_v30 = vpop.f32.mrb[42].mxu0 }
 0x91d   :  { %v1674_v31 = vadd.f32 %v1672_v57, %v1583_v27  ;;  %v1629_v34 = vpop.f32.mrb[55].mxu1  ;;  %v4410_v36 = vpop.f32.mrb[43].mxu0  ;;  %v1693_v61 = vrot.slane %v1691_v44, 2  ;;  %v1706_v57 = vld [vmem:[#allocation2 + $0x48] sm:$0x3] }
 0x91e   :  { %v1684_v39 = vadd.f32 %v1682_v28, %v1584_v32 }
 0x91f   :  { %v3952_v33 = vmul.f32 -1.442695, %v1674_v31 }
 0x920   :  { %v3953_v40 = vmul.f32 -1.442695, %v1684_v39 }
 0x921   :  { %4871 = vpow2.f32 %v3952_v33 }
 0x922   :  { %4873 = vpow2.f32 %v3953_v40 }
 0x92b   :  { %v4872_v41 = vpop.eup %4871 }
 0x92c   :  { %v4874_v42 = vpop.eup %4873  ;;  %v1678_v35 = vadd.f32 1.0, %v4872_v41 }
 0x92d   :  { %v1688_v43 = vadd.f32 1.0, %v4874_v42 }
 0x92e   :  { %4875 = vrcp.f32 %v1678_v35 }
 0x92f   :  { %4877 = vrcp.f32 %v1688_v43 }
 0x938   :  { %v4876_v63 = vpop.eup %4875 }
 0x939   :  { %v4878_v8 = vpop.eup %4877  ;;  %v1695_v9 = vmul.f32 %v4876_v63, %v1693_v61  ;;  %v1707_v61 = vld [vmem:[#allocation2 + $0x50] sm:$0x3] }
 0x93a   :  { %v1703_v13 = vmul.f32 %v4878_v8, %v1701_v4  ;;  %v1698_v19 = vsub.f32 1.0, %v4878_v8 }
 0x93b   :  { %v1696_v17 = vadd.f32 %v1695_v9, %v1585_v11 }
 0x93d   :  { %4879 = vtanh.f32 %v1696_v17 }
 0x947   :  { %v4880_v23 = vpop.eup %4879 }
 0x948   :  { %v1699_v25 = vmul.f32 %v4880_v23, %v1698_v19 }
 0x94a   :  { %v6030_v51 = vadd.f32 %v1703_v13, %v1699_v25 }
 0x94c   :  { %v1708_v52 = vpack.c.bf16 %v6030_v51, %v6030_v51  ;;  %v1814_v35 = vrot.slane %v6030_v51, 6 }
 0x94e   :  { %v1710_v53 = vrot.slane %v1708_v52, 3 }
 0x950   :  { %1745 = vmatmul.mubr.bf16.vlgmr.msra.gmra.mrb[56].mxu1 %v1710_v53  ;;  %4428 = vmatmul.mubr.bf16.vlgmr.msra.gmra.mrb[44].mxu0 %v1710_v53  ;;  %v1818_v53 = vld [vmem:[#allocation2 + $0x40] sm:$0xc] }
 0x951   :  { %1823 = vmatpush1.bf16.msra.mxu1 %v5794_v45  ;;  %4432 = vmatpush3.bf16.msra.mxu0 %v5800_v15 }
 0x952   :  { %1824 = vmatprep.subr.bf16.mxu1 %v5806_v46  ;;  %4433 = vmatprep.subr.bf16.mxu0 %v5140_v2 }
 0x953   :  { %1854 = vmatprep.mubr.bf16.mxu1 %v5142_v49  ;;  %4447 = vmatprep.mubr.msk.bf16.mxu0 %vm5141_vm0, %v5140_v2 }
 0x955   :  { %1825 = vmatpush1.bf16.msra.mxu1 %v5816_v16  ;;  %4434 = vmatpush3.bf16.msra.mxu0 %v5822_v18 }
 0x956   :  { %1826 = vmatprep.subr.bf16.mxu1 %v5828_v20  ;;  %4435 = vmatprep.subr.bf16.mxu0 %v5140_v2 }
 0x959   :  { %1827 = vmatpush1.bf16.msra.mxu1 %v5835_v21  ;;  %4436 = vmatpush3.bf16.msra.mxu0 %v5841_v47 }
 0x95a   :  { %1828 = vmatprep.subr.bf16.mxu1 %v5847_v22  ;;  %4437 = vmatprep.subr.bf16.mxu0 %v5140_v2 }
 0x95d   :  { %1829 = vmatpush1.bf16.msra.mxu1 %v5854_v50  ;;  %4438 = vmatpush3.bf16.msra.mxu0 %v5911_v58 }
 0x95e   :  { %1830 = vmatprep.subr.bf16.mxu1 %v5861_v24  ;;  %4439 = vmatprep.subr.bf16.mxu0 %v5140_v2 }
 0x961   :  { %1831 = vmatpush1.bf16.msra.mxu1 %v5868_v26  ;;  %4440 = vmatpush3.bf16.msra.mxu0 %v5920_v60 }
 0x962   :  { %1832 = vmatprep.subr.bf16.mxu1 %v5926_v62  ;;  %4441 = vmatprep.subr.bf16.mxu0 %v5140_v2 }
 0x965   :  { %1833 = vmatpush1.bf16.msra.mxu1 %v5933_v0  ;;  %4442 = vmatpush3.bf16.msra.mxu0 %v5939_v1 }
 0x966   :  { %1834 = vmatprep.subr.bf16.mxu1 %v5945_v3  ;;  %4443 = vmatprep.subr.bf16.mxu0 %v5140_v2 }
 0x969   :  { %1835 = vmatpush1.bf16.msra.mxu1 %v5952_v5  ;;  %4444 = vmatpush3.bf16.msra.mxu0 %v5958_v6 }
 0x96a   :  { %1836 = vmatprep.subr.bf16.mxu1 %v5964_v7  ;;  %4445 = vmatprep.subr.bf16.mxu0 %v5140_v2 }
 0x96d   :  { %1837 = vmatpush1.bf16.msra.mxu1 %v5971_v10  ;;  %4446 = vmatpush3.bf16.msra.mxu0 %v5977_v12 }
 0x96e   :  { %1944 = vmatprep.subr.bf16.mxu1 %v5781_v59  ;;  %4451 = vmatprep.subr.bf16.mxu0 %v5140_v2 }
 0xa23   :  { %v1746_v56 = vpop.f32.mrb[56].mxu1  ;;  %v1787_v38 = vpop.f32.mrb[44].mxu0 }
 0xa24   :  { %v1793_v55 = vadd.f32 %v1746_v56, %v1705_v54  ;;  %v1748_v14 = vpop.f32.mrb[57].mxu1  ;;  %v4429_v48 = vpop.f32.mrb[45].mxu0  ;;  %v1807_v41 = vadd.f32 %v6026_v37, %v1787_v38 }
 0xa25   :  { %v1800_v27 = vadd.f32 %v1748_v14, %v1706_v57  ;;  %v1750_v28 = vpop.f32.mrb[58].mxu1  ;;  %v1790_v29 = vpop.f32.mrb[46].mxu0  ;;  %v1819_v57 = vld [vmem:[#allocation2 + $0x48] sm:$0xc] }
 0xa26   :  { %v3954_v30 = vmul.f32 -1.442695, %v1793_v55  ;;  %v1751_v31 = vpop.f32.mrb[59].mxu1  ;;  %v4430_v32 = vpop.f32.mrb[47].mxu0 }
 0xa27   :  { %v3955_v34 = vmul.f32 -1.442695, %v1800_v27 }
 0xa28   :  { %4881 = vpow2.f32 %v3954_v30 }
 0xa29   :  { %4883 = vpow2.f32 %v3955_v34 }
 0xa32   :  { %v4882_v36 = vpop.eup %4881 }
 0xa33   :  { %v4884_v39 = vpop.eup %4883  ;;  %v1797_v33 = vadd.f32 1.0, %v4882_v36 }
 0xa34   :  { %v1804_v40 = vadd.f32 1.0, %v4884_v39 }
 0xa35   :  { %4885 = vrcp.f32 %v1797_v33 }
 0xa36   :  { %4887 = vrcp.f32 %v1804_v40 }
 0xa3f   :  { %v4886_v42 = vpop.eup %4885 }
 0xa40   :  { %v4888_v43 = vpop.eup %4887  ;;  %v1808_v44 = vmul.f32 %v4886_v42, %v1807_v41 }
 0xa41   :  { %v1816_v63 = vmul.f32 %v4888_v43, %v1814_v35  ;;  %v1811_v8 = vsub.f32 1.0, %v4888_v43  ;;  %v1820_v35 = vld [vmem:[#allocation2 + $0x50] sm:$0xc] }
 0xa42   :  { %v1809_v4 = vadd.f32 %v1808_v44, %v1707_v61 }
 0xa44   :  { %4889 = vtanh.f32 %v1809_v4 }
 0xa4e   :  { %v4890_v9 = vpop.eup %4889 }
 0xa4f   :  { %v1812_v11 = vmul.f32 %v4890_v9, %v1811_v8 }
 0xa51   :  { %v6071_v13 = vadd.f32 %v1816_v63, %v1812_v11 }
 0xa53   :  { %v1821_v17 = vpack.c.bf16 %v6071_v13, %v6071_v13  ;;  %v1933_v40 = vrot.slane %v6071_v13, 6 }
 0xa55   :  { %1855 = vmatmul.mubr.bf16.vlgmr.msra.gmra.mrb[60].mxu1 %v1821_v17  ;;  %4448 = vmatmul.mubr.bf16.vlgmr.msra.gmra.mrb[48].mxu0 %v1821_v17 }
 0xa56   :  { %1945 = vmatpush1.bf16.msra.mxu1 %v5794_v45  ;;  %4452 = vmatpush3.bf16.msra.mxu0 %v5800_v15 }
 0xa57   :  { %1946 = vmatprep.subr.bf16.mxu1 %v5806_v46  ;;  %4453 = vmatprep.subr.bf16.mxu0 %v5140_v2 }
 0xa58   :  { %1976 = vmatprep.mubr.bf16.mxu1 %v5142_v49  ;;  %4467 = vmatprep.mubr.msk.bf16.mxu0 %vm5141_vm0, %v5140_v2 }
 0xa5a   :  { %1947 = vmatpush1.bf16.msra.mxu1 %v5816_v16  ;;  %4454 = vmatpush3.bf16.msra.mxu0 %v5822_v18 }
 0xa5b   :  { %1948 = vmatprep.subr.bf16.mxu1 %v5828_v20  ;;  %4455 = vmatprep.subr.bf16.mxu0 %v5140_v2 }
 0xa5e   :  { %1949 = vmatpush1.bf16.msra.mxu1 %v5835_v21  ;;  %4456 = vmatpush3.bf16.msra.mxu0 %v5841_v47 }
 0xa5f   :  { %1950 = vmatprep.subr.bf16.mxu1 %v5847_v22  ;;  %4457 = vmatprep.subr.bf16.mxu0 %v5140_v2 }
 0xa62   :  { %1951 = vmatpush1.bf16.msra.mxu1 %v5854_v50  ;;  %4458 = vmatpush3.bf16.msra.mxu0 %v5911_v58 }
 0xa63   :  { %1952 = vmatprep.subr.bf16.mxu1 %v5861_v24  ;;  %4459 = vmatprep.subr.bf16.mxu0 %v5140_v2 }
 0xa66   :  { %1953 = vmatpush1.bf16.msra.mxu1 %v5868_v26  ;;  %4460 = vmatpush3.bf16.msra.mxu0 %v5920_v60 }
 0xa67   :  { %1954 = vmatprep.subr.bf16.mxu1 %v5926_v62  ;;  %4461 = vmatprep.subr.bf16.mxu0 %v5140_v2 }
 0xa6a   :  { %1955 = vmatpush1.bf16.msra.mxu1 %v5933_v0  ;;  %4462 = vmatpush3.bf16.msra.mxu0 %v5939_v1 }
 0xa6b   :  { %1956 = vmatprep.subr.bf16.mxu1 %v5945_v3  ;;  %4463 = vmatprep.subr.bf16.mxu0 %v5140_v2 }
 0xa6e   :  { %1957 = vmatpush1.bf16.msra.mxu1 %v5952_v5  ;;  %4464 = vmatpush3.bf16.msra.mxu0 %v5958_v6 }
 0xa6f   :  { %1958 = vmatprep.subr.bf16.mxu1 %v5964_v7  ;;  %4465 = vmatprep.subr.bf16.mxu0 %v5140_v2 }
 0xa72   :  { %1959 = vmatpush1.bf16.msra.mxu1 %v5971_v10  ;;  %4466 = vmatpush3.bf16.msra.mxu0 %v5977_v12 }
 0xa73   :  { %2066 = vmatprep.subr.bf16.mxu1 %v5781_v59  ;;  %4471 = vmatprep.subr.bf16.mxu0 %v5140_v2 }
 0xb28   :  { %v1856_v19 = vpop.f32.mrb[60].mxu1  ;;  %v1897_v23 = vpop.f32.mrb[48].mxu0 }
 0xb29   :  { %v1904_v25 = vrot.slane %v1856_v19, 6  ;;  %v1858_v51 = vpop.f32.mrb[61].mxu1  ;;  %v4449_v52 = vpop.f32.mrb[49].mxu0  ;;  %v1923_v36 = vadd.f32 %v6026_v37, %v1897_v23 }
 0xb2a   :  { %v1914_v54 = vrot.slane %v1858_v51, 6  ;;  %v1860_v56 = vpop.f32.mrb[62].mxu1  ;;  %v1900_v38 = vpop.f32.mrb[50].mxu0  ;;  %v1937_v51 = vld [vmem:[#allocation2 + $0x40] sm:$0x30] }
 0xb2b   :  { %v1906_v55 = vadd.f32 %v1904_v25, %v1818_v53  ;;  %v1861_v14 = vpop.f32.mrb[63].mxu1  ;;  %v4450_v48 = vpop.f32.mrb[51].mxu0  ;;  %v1925_v39 = vrot.slane %v1923_v36, 6  ;;  %v1938_v38 = vld [vmem:[#allocation2 + $0x48] sm:$0x30] }
 0xb2c   :  { %v1916_v27 = vadd.f32 %v1914_v54, %v1819_v57 }
 0xb2d   :  { %v3956_v28 = vmul.f32 -1.442695, %v1906_v55 }
 0xb2e   :  { %v3957_v29 = vmul.f32 -1.442695, %v1916_v27 }
 0xb2f   :  { %4891 = vpow2.f32 %v3956_v28 }
 0xb30   :  { %4893 = vpow2.f32 %v3957_v29 }
 0xb39   :  { %v4892_v30 = vpop.eup %4891 }
 0xb3a   :  { %v4894_v31 = vpop.eup %4893  ;;  %v1910_v32 = vadd.f32 1.0, %v4892_v30 }
 0xb3b   :  { %v1920_v34 = vadd.f32 1.0, %v4894_v31 }
 0xb3c   :  { %4895 = vrcp.f32 %v1910_v32 }
 0xb3d   :  { %4897 = vrcp.f32 %v1920_v34 }
 0xb46   :  { %v4896_v33 = vpop.eup %4895 }
 0xb47   :  { %v4898_v41 = vpop.eup %4897  ;;  %v1927_v42 = vmul.f32 %v4896_v33, %v1925_v39 }
 0xb48   :  { %v1935_v43 = vmul.f32 %v4898_v41, %v1933_v40  ;;  %v1930_v61 = vsub.f32 1.0, %v4898_v41  ;;  %v1939_v40 = vld [vmem:[#allocation2 + $0x50] sm:$0x30] }
 0xb49   :  { %v1928_v44 = vadd.f32 %v1927_v42, %v1820_v35 }
 0xb4b   :  { %4899 = vtanh.f32 %v1928_v44 }
 0xb55   :  { %v4900_v63 = vpop.eup %4899 }
 0xb56   :  { %v1931_v4 = vmul.f32 %v4900_v63, %v1930_v61 }
 0xb58   :  { %v6112_v8 = vadd.f32 %v1935_v43, %v1931_v4 }
 0xb5a   :  { %v1940_v9 = vpack.c.bf16 %v6112_v8, %v6112_v8  ;;  %v2055_v36 = vrot.slane %v6112_v8, 6 }
 0xb5c   :  { %v1942_v11 = vrot.slane %v1940_v9, 1 }
 0xb5e   :  { %1977 = vmatmul.mubr.bf16.vlgmr.msra.gmra.mrb[64].mxu1 %v1942_v11  ;;  %4468 = vmatmul.mubr.bf16.vlgmr.msra.gmra.mrb[52].mxu0 %v1942_v11 }
 0xb5f   :  { %2067 = vmatpush1.bf16.msra.mxu1 %v5794_v45  ;;  %4472 = vmatpush3.bf16.msra.mxu0 %v5800_v15 }
 0xb60   :  { %2068 = vmatprep.subr.bf16.mxu1 %v5806_v46  ;;  %4473 = vmatprep.subr.bf16.mxu0 %v5140_v2 }
 0xb61   :  { %2098 = vmatprep.mubr.bf16.mxu1 %v5142_v49  ;;  %4487 = vmatprep.mubr.msk.bf16.mxu0 %vm5141_vm0, %v5140_v2 }
 0xb63   :  { %2069 = vmatpush1.bf16.msra.mxu1 %v5816_v16  ;;  %4474 = vmatpush3.bf16.msra.mxu0 %v5822_v18 }
 0xb64   :  { %2070 = vmatprep.subr.bf16.mxu1 %v5828_v20  ;;  %4475 = vmatprep.subr.bf16.mxu0 %v5140_v2 }
 0xb67   :  { %2071 = vmatpush1.bf16.msra.mxu1 %v5835_v21  ;;  %4476 = vmatpush3.bf16.msra.mxu0 %v5841_v47 }
 0xb68   :  { %2072 = vmatprep.subr.bf16.mxu1 %v5847_v22  ;;  %4477 = vmatprep.subr.bf16.mxu0 %v5140_v2 }
 0xb6b   :  { %2073 = vmatpush1.bf16.msra.mxu1 %v5854_v50  ;;  %4478 = vmatpush3.bf16.msra.mxu0 %v5911_v58 }
 0xb6c   :  { %2074 = vmatprep.subr.bf16.mxu1 %v5861_v24  ;;  %4479 = vmatprep.subr.bf16.mxu0 %v5140_v2 }
 0xb6f   :  { %2075 = vmatpush1.bf16.msra.mxu1 %v5868_v26  ;;  %4480 = vmatpush3.bf16.msra.mxu0 %v5920_v60 }
 0xb70   :  { %2076 = vmatprep.subr.bf16.mxu1 %v5926_v62  ;;  %4481 = vmatprep.subr.bf16.mxu0 %v5140_v2 }
 0xb73   :  { %2077 = vmatpush1.bf16.msra.mxu1 %v5933_v0  ;;  %4482 = vmatpush3.bf16.msra.mxu0 %v5939_v1 }
 0xb74   :  { %2078 = vmatprep.subr.bf16.mxu1 %v5945_v3  ;;  %4483 = vmatprep.subr.bf16.mxu0 %v5140_v2 }
 0xb77   :  { %2079 = vmatpush1.bf16.msra.mxu1 %v5952_v5  ;;  %4484 = vmatpush3.bf16.msra.mxu0 %v5958_v6 }
 0xb78   :  { %2080 = vmatprep.subr.bf16.mxu1 %v5964_v7  ;;  %4485 = vmatprep.subr.bf16.mxu0 %v5140_v2 }
 0xb7b   :  { %2081 = vmatpush1.bf16.msra.mxu1 %v5971_v10  ;;  %4486 = vmatpush3.bf16.msra.mxu0 %v5977_v12 }
 0xb7c   :  { %2188 = vmatprep.subr.bf16.mxu1 %v5781_v59  ;;  %4491 = vmatprep.subr.bf16.mxu0 %v5140_v2 }
 0xc31   :  { %v1978_v13 = vpop.f32.mrb[64].mxu1  ;;  %v2019_v17 = vpop.f32.mrb[52].mxu0 }
 0xc32   :  { %v2026_v19 = vrot.slane %v1978_v13, 4  ;;  %v1980_v23 = vpop.f32.mrb[65].mxu1  ;;  %v4469_v25 = vpop.f32.mrb[53].mxu0  ;;  %v2045_v31 = vadd.f32 %v6026_v37, %v2019_v17 }
 0xc33   :  { %v2036_v52 = vrot.slane %v1980_v23, 4  ;;  %v1982_v53 = vpop.f32.mrb[66].mxu1  ;;  %v2022_v54 = vpop.f32.mrb[54].mxu0 }
 0xc34   :  { %v2028_v56 = vadd.f32 %v2026_v19, %v1937_v51  ;;  %v1983_v55 = vpop.f32.mrb[67].mxu1  ;;  %v4470_v57 = vpop.f32.mrb[55].mxu0  ;;  %v2047_v32 = vrot.slane %v2045_v31, 4 }
 0xc35   :  { %v2038_v14 = vadd.f32 %v2036_v52, %v1938_v38  ;;  %v2061_v57 = vld [vmem:[#allocation2 + $0x50] sm:$0xc0] }
 0xc36   :  { %v3958_v48 = vmul.f32 -1.442695, %v2028_v56 }
 0xc37   :  { %v3959_v27 = vmul.f32 -1.442695, %v2038_v14 }
 0xc38   :  { %4901 = vpow2.f32 %v3958_v48 }
 0xc39   :  { %4903 = vpow2.f32 %v3959_v27 }
 0xc42   :  { %v4902_v59 = vpop.eup %4901 }
 0xc43   :  { %v4904_v28 = vpop.eup %4903  ;;  %v2032_v29 = vadd.f32 1.0, %v4902_v59 }
 0xc44   :  { %v2042_v30 = vadd.f32 1.0, %v4904_v28 }
 0xc45   :  { %4905 = vrcp.f32 %v2032_v29 }
 0xc46   :  { %4907 = vrcp.f32 %v2042_v30 }
 0xc4f   :  { %v4906_v34 = vpop.eup %4905 }
 0xc50   :  { %v4908_v39 = vpop.eup %4907  ;;  %v2049_v33 = vmul.f32 %v4906_v34, %v2047_v32  ;;  %v6206_v32 = vld [vmem:[%s6854_s6] ss:$12 sps:$4 sm:$0xff]   ;;  %v6212_v34 = vld [vmem:[%s6854_s6 + $0x8] ss:$12 sps:$4 sm:$0xff]  }
 0xc51   :  { %v2057_v41 = vmul.f32 %v4908_v39, %v2055_v36  ;;  %v2052_v35 = vsub.f32 1.0, %v4908_v39  ;;  %v6218_v36 = vld [vmem:[%s6854_s6 + $0x1c] ss:$12 sps:$4 sm:$0xff]   ;;  %v6228_v39 = vld [vmem:[%s6854_s6 + $0x18] ss:$12 sps:$4 sm:$0xff]  }
 0xc52   :  { %v2050_v42 = vadd.f32 %v2049_v33, %v1939_v40  ;;  %v6234_v33 = vld [vmem:[%s6854_s6 + $0x20] ss:$12 sps:$4 sm:$0xff]  }
 0xc53   :  { %v6240_v40 = vld [vmem:[%s6854_s6 + $0x34] ss:$12 sps:$4 sm:$0xff]  }
 0xc54   :  { %4909 = vtanh.f32 %v2050_v42  ;;  %v6253_v42 = vld [vmem:[%s6854_s6 + $0x38] ss:$12 sps:$4 sm:$0xff]  }
 0xc5e   :  { %v4910_v43 = vpop.eup %4909 }
 0xc5f   :  { %v2053_v44 = vmul.f32 %v4910_v43, %v2052_v35  ;;  %v6259_v35 = vld [vmem:[%s6854_s6 + $0x4c] ss:$12 sps:$4 sm:$0xff]   ;;  %v6266_v43 = vld [vmem:[%s6854_s6 + $0x48] ss:$12 sps:$4 sm:$0xff]  }
 0xc61   :  { %v6153_v61 = vadd.f32 %v2057_v41, %v2053_v44  ;;  %v6247_v41 = vld [vmem:[%s6854_s6 + $0x30] ss:$12 sps:$4 sm:$0xff]  }
 0xc62   :  { %v6273_v44 = vld [vmem:[%s6854_s6 + $0x64] ss:$12 sps:$4 sm:$0xff]  }
 0xc63   :  { %v2062_v63 = vpack.c.bf16 %v6153_v61, %v6153_v61  ;;  %v2177_v56 = vrot.slane %v6153_v61, 6  ;;  %v6280_v61 = vld [vmem:[%s6854_s6 + $0x60] ss:$12 sps:$4 sm:$0xff]  }
 0xc65   :  { %v2064_v4 = vrot.slane %v2062_v63, 2 }
 0xc67   :  { %2099 = vmatmul.mubr.bf16.vlgmr.msra.gmra.mrb[68].mxu1 %v2064_v4  ;;  %4488 = vmatmul.mubr.bf16.vlgmr.msra.gmra.mrb[56].mxu0 %v2064_v4 }
 0xc68   :  { %2189 = vmatpush1.bf16.msra.mxu1 %v5794_v45  ;;  %4492 = vmatpush3.bf16.msra.mxu0 %v5800_v15  ;;  %v6193_v45 = vld [vmem:[%s6854_s6 + $0x4] ss:$12 sps:$4 sm:$0xff]  }
 0xc69   :  { %2190 = vmatprep.subr.bf16.mxu1 %v5806_v46  ;;  %4493 = vmatprep.subr.bf16.mxu0 %v5140_v2 }
 0xc6a   :  { %2220 = vmatprep.mubr.bf16.mxu1 %v5142_v49  ;;  %4507 = vmatprep.mubr.msk.bf16.mxu0 %vm5141_vm0, %v5140_v2 }
 0xc6c   :  { %2191 = vmatpush1.bf16.msra.mxu1 %v5816_v16  ;;  %4494 = vmatpush3.bf16.msra.mxu0 %v5822_v18 }
 0xc6d   :  { %2192 = vmatprep.subr.bf16.mxu1 %v5828_v20  ;;  %4495 = vmatprep.subr.bf16.mxu0 %v5140_v2 }
 0xc70   :  { %2193 = vmatpush1.bf16.msra.mxu1 %v5835_v21  ;;  %4496 = vmatpush3.bf16.msra.mxu0 %v5841_v47  ;;  %v2059_v21 = vld [vmem:[#allocation2 + $0x40] sm:$0xc0] }
 0xc71   :  { %2194 = vmatprep.subr.bf16.mxu1 %v5847_v22  ;;  %4497 = vmatprep.subr.bf16.mxu0 %v5140_v2 }
 0xc74   :  { %2195 = vmatpush1.bf16.msra.mxu1 %v5854_v50  ;;  %4498 = vmatpush3.bf16.msra.mxu0 %v5911_v58 }
 0xc75   :  { %2196 = vmatprep.subr.bf16.mxu1 %v5861_v24  ;;  %4499 = vmatprep.subr.bf16.mxu0 %v5140_v2 }
 0xc78   :  { %2197 = vmatpush1.bf16.msra.mxu1 %v5868_v26  ;;  %4500 = vmatpush3.bf16.msra.mxu0 %v5920_v60  ;;  %v2060_v26 = vld [vmem:[#allocation2 + $0x48] sm:$0xc0] }
 0xc79   :  { %2198 = vmatprep.subr.bf16.mxu1 %v5926_v62  ;;  %4501 = vmatprep.subr.bf16.mxu0 %v5140_v2 }
 0xc7c   :  { %2199 = vmatpush1.bf16.msra.mxu1 %v5933_v0  ;;  %4502 = vmatpush3.bf16.msra.mxu0 %v5939_v1 }
 0xc7d   :  { %2200 = vmatprep.subr.bf16.mxu1 %v5945_v3  ;;  %4503 = vmatprep.subr.bf16.mxu0 %v5140_v2 }
 0xc80   :  { %2201 = vmatpush1.bf16.msra.mxu1 %v5952_v5  ;;  %4504 = vmatpush3.bf16.msra.mxu0 %v5958_v6 }
 0xc81   :  { %2202 = vmatprep.subr.bf16.mxu1 %v5964_v7  ;;  %4505 = vmatprep.subr.bf16.mxu0 %v5140_v2 }
 0xc84   :  { %2203 = vmatpush1.bf16.msra.mxu1 %v5971_v10  ;;  %4506 = vmatpush3.bf16.msra.mxu0 %v5977_v12 }
 0xc85   :  { %2298 = vmatprep.subr.bf16.mxu1 %v6193_v45  ;;  %4511 = vmatprep.subr.bf16.mxu0 %v5140_v2 }
 0xd3a   :  { %v2100_v15 = vpop.f32.mrb[68].mxu1  ;;  %v2141_v46 = vpop.f32.mrb[56].mxu0 }
 0xd3b   :  { %v2148_v16 = vrot.slane %v2100_v15, 2  ;;  %v2102_v18 = vpop.f32.mrb[69].mxu1  ;;  %v4489_v20 = vpop.f32.mrb[57].mxu0  ;;  %v2167_v52 = vadd.f32 %v6026_v37, %v2141_v46 }
 0xd3c   :  { %v2158_v47 = vrot.slane %v2102_v18, 2  ;;  %v2104_v22 = vpop.f32.mrb[70].mxu1  ;;  %v2144_v50 = vpop.f32.mrb[58].mxu0 }
 0xd3d   :  { %v2150_v24 = vadd.f32 %v2148_v16, %v2059_v21  ;;  %v2105_v8 = vpop.f32.mrb[71].mxu1  ;;  %v4490_v9 = vpop.f32.mrb[59].mxu0  ;;  %v2169_v53 = vrot.slane %v2167_v52, 2  ;;  %v6338_v52 = vld [vmem:[%s6854_s6 + $0x7c] ss:$12 sps:$4 sm:$0xff]  }
 0xd3e   :  { %v2160_v11 = vadd.f32 %v2158_v47, %v2060_v26  ;;  %v2183_v26 = vld [vmem:[#allocation2 + $0x70] sm:$0x3] }
 0xd3f   :  { %v3960_v13 = vmul.f32 -1.442695, %v2150_v24 }
 0xd40   :  { %v3961_v17 = vmul.f32 -1.442695, %v2160_v11 }
 0xd41   :  { %4911 = vpow2.f32 %v3960_v13 }
 0xd42   :  { %4913 = vpow2.f32 %v3961_v17 }
 0xd4b   :  { %v4912_v19 = vpop.eup %4911 }
 0xd4c   :  { %v4914_v23 = vpop.eup %4913  ;;  %v2154_v25 = vadd.f32 1.0, %v4912_v19 }
 0xd4d   :  { %v2164_v51 = vadd.f32 1.0, %v4914_v23 }
 0xd4e   :  { %4915 = vrcp.f32 %v2154_v25  ;;  %v6323_v25 = vld [vmem:[%s6854_s6 + $0x50] ss:$12 sps:$4 sm:$0xff]  }
 0xd4f   :  { %4917 = vrcp.f32 %v2164_v51  ;;  %v6332_v51 = vld [vmem:[%s6854_s6 + $0x68] ss:$12 sps:$4 sm:$0xff]  }
 0xd58   :  { %v4916_v54 = vpop.eup %4915 }
 0xd59   :  { %v4918_v38 = vpop.eup %4917  ;;  %v2171_v55 = vmul.f32 %v4916_v54, %v2169_v53  ;;  %v6345_v53 = vld [vmem:[%s6854_s6 + $0x78] ss:$12 sps:$4 sm:$0xff]   ;;  %v6351_v54 = vld [vmem:[%s6854_s6 + $0x80] ss:$12 sps:$4 sm:$0xff]  }
 0xd5a   :  { %v2179_v14 = vmul.f32 %v4918_v38, %v2177_v56  ;;  %v2174_v27 = vsub.f32 1.0, %v4918_v38  ;;  %v6357_v56 = vld [vmem:[%s6854_s6 + $0x94] ss:$12 sps:$4 sm:$0xff]   ;;  %v6364_v38 = vld [vmem:[%s6854_s6 + $0x90] ss:$12 sps:$4 sm:$0xff]  }
 0xd5b   :  { %v2172_v48 = vadd.f32 %v2171_v55, %v2061_v57  ;;  %v6370_v55 = vld [vmem:[%s6854_s6 + $0x98] ss:$12 sps:$4 sm:$0xff]  }
 0xd5c   :  { %v6376_v57 = vld [vmem:[%s6854_s6 + $0xac] ss:$12 sps:$4 sm:$0xff]  }
 0xd5d   :  { %4919 = vtanh.f32 %v2172_v48  ;;  %v6389_v48 = vld [vmem:[%s6854_s6 + $0xb0] ss:$12 sps:$4 sm:$0xff]  }
 0xd67   :  { %v4920_v59 = vpop.eup %4919 }
 0xd68   :  { %v2175_v28 = vmul.f32 %v4920_v59, %v2174_v27 }
 0xd6a   :  { %v6199_v29 = vadd.f32 %v2179_v14, %v2175_v28  ;;  %v6383_v14 = vld [vmem:[%s6854_s6 + $0xa8] ss:$12 sps:$4 sm:$0xff]  }
 0xd6c   :  { %v2184_v30 = vpack.c.bf16 %v6199_v29, %v6199_v29  ;;  %v2290_v22 = vrot.slane %v6199_v29, 6 }
 0xd6e   :  { %v2186_v31 = vrot.slane %v2184_v30, 3 }
 0xd70   :  { %2221 = vmatmul.mubr.bf16.vlgmr.msra.gmra.mrb[72].mxu1 %v2186_v31  ;;  %4508 = vmatmul.mubr.bf16.vlgmr.msra.gmra.mrb[60].mxu0 %v2186_v31  ;;  %v2294_v31 = vld [vmem:[#allocation2 + $0x60] sm:$0xc] }
 0xd71   :  { %2299 = vmatpush1.bf16.msra.mxu1 %v6206_v32  ;;  %4512 = vmatpush3.bf16.msra.mxu0 %v6212_v34 }
 0xd72   :  { %2300 = vmatprep.subr.bf16.mxu1 %v6218_v36  ;;  %4513 = vmatprep.subr.bf16.mxu0 %v5140_v2 }
 0xd73   :  { %2330 = vmatprep.mubr.bf16.mxu1 %v5142_v49  ;;  %4527 = vmatprep.mubr.msk.bf16.mxu0 %vm5141_vm0, %v5140_v2 }
 0xd75   :  { %2301 = vmatpush1.bf16.msra.mxu1 %v6228_v39  ;;  %4514 = vmatpush3.bf16.msra.mxu0 %v6234_v33 }
 0xd76   :  { %2302 = vmatprep.subr.bf16.mxu1 %v6240_v40  ;;  %4515 = vmatprep.subr.bf16.mxu0 %v5140_v2 }
 0xd79   :  { %2303 = vmatpush1.bf16.msra.mxu1 %v6247_v41  ;;  %4516 = vmatpush3.bf16.msra.mxu0 %v6253_v42 }
 0xd7a   :  { %2304 = vmatprep.subr.bf16.mxu1 %v6259_v35  ;;  %4517 = vmatprep.subr.bf16.mxu0 %v5140_v2 }
 0xd7d   :  { %2305 = vmatpush1.bf16.msra.mxu1 %v6266_v43  ;;  %4518 = vmatpush3.bf16.msra.mxu0 %v5911_v58  ;;  %v2181_v58 = vld [vmem:[#allocation2 + $0x60] sm:$0x3] }
 0xd7e   :  { %2306 = vmatprep.subr.bf16.mxu1 %v6273_v44  ;;  %4519 = vmatprep.subr.bf16.mxu0 %v5140_v2 }
 0xd81   :  { %2307 = vmatpush1.bf16.msra.mxu1 %v6280_v61  ;;  %4520 = vmatpush3.bf16.msra.mxu0 %v5920_v60 }
 0xd82   :  { %2308 = vmatprep.subr.bf16.mxu1 %v5926_v62  ;;  %4521 = vmatprep.subr.bf16.mxu0 %v5140_v2 }
 0xd85   :  { %2309 = vmatpush1.bf16.msra.mxu1 %v5933_v0  ;;  %4522 = vmatpush3.bf16.msra.mxu0 %v5939_v1  ;;  %v2182_v1 = vld [vmem:[#allocation2 + $0x68] sm:$0x3] }
 0xd86   :  { %2310 = vmatprep.subr.bf16.mxu1 %v5945_v3  ;;  %4523 = vmatprep.subr.bf16.mxu0 %v5140_v2 }
 0xd89   :  { %2311 = vmatpush1.bf16.msra.mxu1 %v5952_v5  ;;  %4524 = vmatpush3.bf16.msra.mxu0 %v5958_v6 }
 0xd8a   :  { %2312 = vmatprep.subr.bf16.mxu1 %v5964_v7  ;;  %4525 = vmatprep.subr.bf16.mxu0 %v5140_v2 }
 0xd8d   :  { %2313 = vmatpush1.bf16.msra.mxu1 %v5971_v10  ;;  %4526 = vmatpush3.bf16.msra.mxu0 %v5977_v12 }
 0xd8e   :  { %2420 = vmatprep.subr.bf16.mxu1 %v6193_v45  ;;  %4531 = vmatprep.subr.bf16.mxu0 %v5140_v2 }
 0xe43   :  { %v2222_v60 = vpop.f32.mrb[72].mxu1  ;;  %v2263_v62 = vpop.f32.mrb[60].mxu0 }
 0xe44   :  { %v2269_v0 = vadd.f32 %v2222_v60, %v2181_v58  ;;  %v2224_v3 = vpop.f32.mrb[73].mxu1  ;;  %v4509_v5 = vpop.f32.mrb[61].mxu0  ;;  %v2283_v21 = vadd.f32 %v6026_v37, %v2263_v62 }
 0xe45   :  { %v2276_v6 = vadd.f32 %v2224_v3, %v2182_v1  ;;  %v2226_v63 = vpop.f32.mrb[74].mxu1  ;;  %v2266_v7 = vpop.f32.mrb[62].mxu0  ;;  %v2295_v1 = vld [vmem:[#allocation2 + $0x68] sm:$0xc] }
 0xe46   :  { %v3962_v4 = vmul.f32 -1.442695, %v2269_v0  ;;  %v2227_v15 = vpop.f32.mrb[75].mxu1  ;;  %v4510_v46 = vpop.f32.mrb[63].mxu0 }
 0xe47   :  { %v3963_v10 = vmul.f32 -1.442695, %v2276_v6 }
 0xe48   :  { %4921 = vpow2.f32 %v3962_v4 }
 0xe49   :  { %4923 = vpow2.f32 %v3963_v10 }
 0xe52   :  { %v4922_v12 = vpop.eup %4921 }
 0xe53   :  { %v4924_v16 = vpop.eup %4923  ;;  %v2273_v18 = vadd.f32 1.0, %v4922_v12 }
 0xe54   :  { %v2280_v20 = vadd.f32 1.0, %v4924_v16 }
 0xe55   :  { %4925 = vrcp.f32 %v2273_v18 }
 0xe56   :  { %4927 = vrcp.f32 %v2280_v20 }
 0xe5f   :  { %v4926_v47 = vpop.eup %4925 }
 0xe60   :  { %v4928_v50 = vpop.eup %4927  ;;  %v2284_v24 = vmul.f32 %v4926_v47, %v2283_v21 }
 0xe61   :  { %v2292_v8 = vmul.f32 %v4928_v50, %v2290_v22  ;;  %v2287_v11 = vsub.f32 1.0, %v4928_v50  ;;  %v2296_v22 = vld [vmem:[#allocation2 + $0x70] sm:$0xc] }
 0xe62   :  { %v2285_v9 = vadd.f32 %v2284_v24, %v2183_v26 }
 0xe64   :  { %4929 = vtanh.f32 %v2285_v9 }
 0xe6e   :  { %v4930_v13 = vpop.eup %4929 }
 0xe6f   :  { %v2288_v17 = vmul.f32 %v4930_v13, %v2287_v11 }
 0xe71   :  { %v6300_v19 = vadd.f32 %v2292_v8, %v2288_v17 }
 0xe73   :  { %v2297_v23 = vpack.c.bf16 %v6300_v19, %v6300_v19  ;;  %v2409_v20 = vrot.slane %v6300_v19, 6 }
 0xe75   :  { %2331 = vmatmul.mubr.bf16.vlgmr.msra.gmra.mrb[76].mxu1 %v2297_v23  ;;  %4528 = vmatmul.mubr.bf16.vlgmr.msra.gmra.mrb[64].mxu0 %v2297_v23 }
 0xe76   :  { %2421 = vmatpush1.bf16.msra.mxu1 %v6206_v32  ;;  %4532 = vmatpush3.bf16.msra.mxu0 %v6212_v34 }
 0xe77   :  { %2422 = vmatprep.subr.bf16.mxu1 %v6218_v36  ;;  %4533 = vmatprep.subr.bf16.mxu0 %v5140_v2 }
 0xe78   :  { %2452 = vmatprep.mubr.bf16.mxu1 %v5142_v49  ;;  %4547 = vmatprep.mubr.msk.bf16.mxu0 %vm5141_vm0, %v5140_v2 }
 0xe7a   :  { %2423 = vmatpush1.bf16.msra.mxu1 %v6228_v39  ;;  %4534 = vmatpush3.bf16.msra.mxu0 %v6234_v33 }
 0xe7b   :  { %2424 = vmatprep.subr.bf16.mxu1 %v6240_v40  ;;  %4535 = vmatprep.subr.bf16.mxu0 %v5140_v2 }
 0xe7e   :  { %2425 = vmatpush1.bf16.msra.mxu1 %v6247_v41  ;;  %4536 = vmatpush3.bf16.msra.mxu0 %v6253_v42 }
 0xe7f   :  { %2426 = vmatprep.subr.bf16.mxu1 %v6259_v35  ;;  %4537 = vmatprep.subr.bf16.mxu0 %v5140_v2 }
 0xe82   :  { %2427 = vmatpush1.bf16.msra.mxu1 %v6266_v43  ;;  %4538 = vmatpush3.bf16.msra.mxu0 %v6323_v25 }
 0xe83   :  { %2428 = vmatprep.subr.bf16.mxu1 %v6273_v44  ;;  %4539 = vmatprep.subr.bf16.mxu0 %v5140_v2 }
 0xe86   :  { %2429 = vmatpush1.bf16.msra.mxu1 %v6280_v61  ;;  %4540 = vmatpush3.bf16.msra.mxu0 %v6332_v51 }
 0xe87   :  { %2430 = vmatprep.subr.bf16.mxu1 %v6338_v52  ;;  %4541 = vmatprep.subr.bf16.mxu0 %v5140_v2 }
 0xe8a   :  { %2431 = vmatpush1.bf16.msra.mxu1 %v6345_v53  ;;  %4542 = vmatpush3.bf16.msra.mxu0 %v6351_v54 }
 0xe8b   :  { %2432 = vmatprep.subr.bf16.mxu1 %v6357_v56  ;;  %4543 = vmatprep.subr.bf16.mxu0 %v5140_v2 }
 0xe8e   :  { %2433 = vmatpush1.bf16.msra.mxu1 %v6364_v38  ;;  %4544 = vmatpush3.bf16.msra.mxu0 %v6370_v55 }
 0xe8f   :  { %2434 = vmatprep.subr.bf16.mxu1 %v6376_v57  ;;  %4545 = vmatprep.subr.bf16.mxu0 %v5140_v2 }
 0xe92   :  { %2435 = vmatpush1.bf16.msra.mxu1 %v6383_v14  ;;  %4546 = vmatpush3.bf16.msra.mxu0 %v6389_v48 }
 0xe93   :  { %2542 = vmatprep.subr.bf16.mxu1 %v6193_v45  ;;  %4551 = vmatprep.subr.bf16.mxu0 %v5140_v2 }
 0xf48   :  { %v2332_v27 = vpop.f32.mrb[76].mxu1  ;;  %v2373_v59 = vpop.f32.mrb[64].mxu0 }
 0xf49   :  { %v2380_v28 = vrot.slane %v2332_v27, 6  ;;  %v2334_v29 = vpop.f32.mrb[77].mxu1  ;;  %v4529_v30 = vpop.f32.mrb[65].mxu0  ;;  %v2399_v12 = vadd.f32 %v6026_v37, %v2373_v59 }
 0xf4a   :  { %v2390_v58 = vrot.slane %v2334_v29, 6  ;;  %v2336_v60 = vpop.f32.mrb[78].mxu1  ;;  %v2376_v62 = vpop.f32.mrb[66].mxu0 }
 0xf4b   :  { %v2382_v0 = vadd.f32 %v2380_v28, %v2294_v31  ;;  %v2337_v3 = vpop.f32.mrb[79].mxu1  ;;  %v4530_v5 = vpop.f32.mrb[67].mxu0  ;;  %v2401_v16 = vrot.slane %v2399_v12, 6  ;;  %v2413_v28 = vld [vmem:[#allocation2 + $0x60] sm:$0x30] }
 0xf4c   :  { %v2392_v6 = vadd.f32 %v2390_v58, %v2295_v1  ;;  %v2414_v60 = vld [vmem:[#allocation2 + $0x68] sm:$0x30] }
 0xf4d   :  { %v3964_v63 = vmul.f32 -1.442695, %v2382_v0 }
 0xf4e   :  { %v3965_v7 = vmul.f32 -1.442695, %v2392_v6 }
 0xf4f   :  { %4931 = vpow2.f32 %v3964_v63 }
 0xf50   :  { %4933 = vpow2.f32 %v3965_v7 }
 0xf59   :  { %v4932_v4 = vpop.eup %4931 }
 0xf5a   :  { %v4934_v15 = vpop.eup %4933  ;;  %v2386_v46 = vadd.f32 1.0, %v4932_v4 }
 0xf5b   :  { %v2396_v10 = vadd.f32 1.0, %v4934_v15  ;;  %v6438_v15 = vld [vmem:[%s6855_s7] ss:$0 sm:$0xff] }
 0xf5c   :  { %4935 = vrcp.f32 %v2386_v46 }
 0xf5d   :  { %4937 = vrcp.f32 %v2396_v10 }
 0xf66   :  { %v4936_v18 = vpop.eup %4935 }
 0xf67   :  { %v4938_v21 = vpop.eup %4937  ;;  %v2403_v47 = vmul.f32 %v4936_v18, %v2401_v16 }
 0xf68   :  { %v2411_v50 = vmul.f32 %v4938_v21, %v2409_v20  ;;  %v2406_v26 = vsub.f32 1.0, %v4938_v21  ;;  %v2415_v21 = vld [vmem:[#allocation2 + $0x70] sm:$0x30] }
 0xf69   :  { %v2404_v24 = vadd.f32 %v2403_v47, %v2296_v22 }
 0xf6b   :  { %4939 = vtanh.f32 %v2404_v24 }
 0xf75   :  { %v4940_v8 = vpop.eup %4939 }
 0xf76   :  { %v2407_v9 = vmul.f32 %v4940_v8, %v2406_v26 }
 0xf78   :  { %v6396_v11 = vadd.f32 %v2411_v50, %v2407_v9 }
 0xf7a   :  { %v2416_v13 = vpack.c.bf16 %v6396_v11, %v6396_v11  ;;  %v2531_v16 = vrot.slane %v6396_v11, 6 }
 0xf7c   :  { %v2418_v17 = vrot.slane %v2416_v13, 1 }
 0xf7e   :  { %2453 = vmatmul.mubr.bf16.vlgmr.msra.gmra.mrb[80].mxu1 %v2418_v17  ;;  %4548 = vmatmul.mubr.bf16.vlgmr.msra.gmra.mrb[68].mxu0 %v2418_v17 }
 0xf7f   :  { %2543 = vmatpush1.bf16.msra.mxu1 %v6206_v32  ;;  %4552 = vmatpush3.bf16.msra.mxu0 %v6212_v34 }
 0xf80   :  { %2544 = vmatprep.subr.bf16.mxu1 %v6218_v36  ;;  %4553 = vmatprep.subr.bf16.mxu0 %v5140_v2 }
 0xf81   :  { %2574 = vmatprep.mubr.bf16.mxu1 %v5142_v49  ;;  %4567 = vmatprep.mubr.msk.bf16.mxu0 %vm5141_vm0, %v5140_v2 }
 0xf83   :  { %2545 = vmatpush1.bf16.msra.mxu1 %v6228_v39  ;;  %4554 = vmatpush3.bf16.msra.mxu0 %v6234_v33 }
 0xf84   :  { %2546 = vmatprep.subr.bf16.mxu1 %v6240_v40  ;;  %4555 = vmatprep.subr.bf16.mxu0 %v5140_v2 }
 0xf87   :  { %2547 = vmatpush1.bf16.msra.mxu1 %v6247_v41  ;;  %4556 = vmatpush3.bf16.msra.mxu0 %v6253_v42 }
 0xf88   :  { %2548 = vmatprep.subr.bf16.mxu1 %v6259_v35  ;;  %4557 = vmatprep.subr.bf16.mxu0 %v5140_v2 }
 0xf8b   :  { %2549 = vmatpush1.bf16.msra.mxu1 %v6266_v43  ;;  %4558 = vmatpush3.bf16.msra.mxu0 %v6323_v25 }
 0xf8c   :  { %2550 = vmatprep.subr.bf16.mxu1 %v6273_v44  ;;  %4559 = vmatprep.subr.bf16.mxu0 %v5140_v2 }
 0xf8f   :  { %2551 = vmatpush1.bf16.msra.mxu1 %v6280_v61  ;;  %4560 = vmatpush3.bf16.msra.mxu0 %v6332_v51 }
 0xf90   :  { %2552 = vmatprep.subr.bf16.mxu1 %v6338_v52  ;;  %4561 = vmatprep.subr.bf16.mxu0 %v5140_v2 }
 0xf93   :  { %2553 = vmatpush1.bf16.msra.mxu1 %v6345_v53  ;;  %4562 = vmatpush3.bf16.msra.mxu0 %v6351_v54 }
 0xf94   :  { %2554 = vmatprep.subr.bf16.mxu1 %v6357_v56  ;;  %4563 = vmatprep.subr.bf16.mxu0 %v5140_v2 }
 0xf97   :  { %2555 = vmatpush1.bf16.msra.mxu1 %v6364_v38  ;;  %4564 = vmatpush3.bf16.msra.mxu0 %v6370_v55 }
 0xf98   :  { %2556 = vmatprep.subr.bf16.mxu1 %v6376_v57  ;;  %4565 = vmatprep.subr.bf16.mxu0 %v5140_v2 }
 0xf9b   :  { %2557 = vmatpush1.bf16.msra.mxu1 %v6383_v14  ;;  %4566 = vmatpush3.bf16.msra.mxu0 %v6389_v48 }
 0xf9c   :  { %2664 = vmatprep.subr.bf16.mxu1 %v6193_v45  ;;  %4571 = vmatprep.subr.bf16.mxu0 %v5140_v2 }
0x1051   :  { %v2454_v37 = vpop.f32.mrb[80].mxu1  ;;  %v2495_v19 = vpop.f32.mrb[68].mxu0 }
0x1052   :  { %v2502_v23 = vrot.slane %v2454_v37, 4  ;;  %v2456_v27 = vpop.f32.mrb[81].mxu1  ;;  %v4549_v59 = vpop.f32.mrb[69].mxu0  ;;  %v2521_v46 = vadd.f32 %v6438_v15, %v2495_v19 }
0x1053   :  { %v2512_v29 = vrot.slane %v2456_v27, 4  ;;  %v2458_v30 = vpop.f32.mrb[82].mxu1  ;;  %v2498_v31 = vpop.f32.mrb[70].mxu0  ;;  %v2535_v27 = vld [vmem:[#allocation2 + $0x60] sm:$0xc0] }
0x1054   :  { %v2504_v58 = vadd.f32 %v2502_v23, %v2413_v28  ;;  %v2459_v62 = vpop.f32.mrb[83].mxu1  ;;  %v4550_v0 = vpop.f32.mrb[71].mxu0  ;;  %v2523_v10 = vrot.slane %v2521_v46, 4  ;;  %v2536_v31 = vld [vmem:[#allocation2 + $0x68] sm:$0xc0] }
0x1055   :  { %v2514_v1 = vadd.f32 %v2512_v29, %v2414_v60 }
0x1056   :  { %v3966_v3 = vmul.f32 -1.442695, %v2504_v58 }
0x1057   :  { %v3967_v5 = vmul.f32 -1.442695, %v2514_v1 }
0x1058   :  { %4941 = vpow2.f32 %v3966_v3 }
0x1059   :  { %4943 = vpow2.f32 %v3967_v5 }
0x1062   :  { %v4942_v6 = vpop.eup %4941 }
0x1063   :  { %v4944_v63 = vpop.eup %4943  ;;  %v2508_v7 = vadd.f32 1.0, %v4942_v6 }
0x1064   :  { %v2518_v4 = vadd.f32 1.0, %v4944_v63 }
0x1065   :  { %4945 = vrcp.f32 %v2508_v7 }
0x1066   :  { %4947 = vrcp.f32 %v2518_v4 }
0x106f   :  { %v4946_v12 = vpop.eup %4945 }
0x1070   :  { %v4948_v18 = vpop.eup %4947  ;;  %v2525_v20 = vmul.f32 %v4946_v12, %v2523_v10 }
0x1071   :  { %v2533_v47 = vmul.f32 %v4948_v18, %v2531_v16  ;;  %v2528_v50 = vsub.f32 1.0, %v4948_v18  ;;  %v2537_v18 = vld [vmem:[#allocation2 + $0x70] sm:$0xc0] }
0x1072   :  { %v2526_v22 = vadd.f32 %v2525_v20, %v2415_v21 }
0x1074   :  { %4949 = vtanh.f32 %v2526_v22 }
0x107e   :  { %v4950_v24 = vpop.eup %4949 }
0x107f   :  { %v2529_v26 = vmul.f32 %v4950_v24, %v2528_v50 }
0x1081   :  { %v6442_v8 = vadd.f32 %v2533_v47, %v2529_v26 }
0x1083   :  { %v2538_v9 = vpack.c.bf16 %v6442_v8, %v6442_v8  ;;  %v2653_v10 = vrot.slane %v6442_v8, 6  ;;  %v2657_v8 = vld [vmem:[#allocation2 + $0x80] sm:$0x3] }
0x1085   :  { %v2540_v13 = vrot.slane %v2538_v9, 2 }
0x1087   :  { %2575 = vmatmul.mubr.bf16.vlgmr.msra.gmra.mrb[84].mxu1 %v2540_v13  ;;  %4568 = vmatmul.mubr.bf16.vlgmr.msra.gmra.mrb[72].mxu0 %v2540_v13 }
0x1088   :  { %2665 = vmatpush1.bf16.msra.mxu1 %v6206_v32  ;;  %4572 = vmatpush3.bf16.msra.mxu0 %v6212_v34 }
0x1089   :  { %2666 = vmatprep.subr.bf16.mxu1 %v6218_v36  ;;  %4573 = vmatprep.subr.bf16.mxu0 %v5140_v2 }
0x108a   :  { %2696 = vmatprep.mubr.bf16.mxu1 %v5142_v49  ;;  %4587 = vmatprep.mubr.msk.bf16.mxu0 %vm5141_vm0, %v5140_v2 }
0x108c   :  { %2667 = vmatpush1.bf16.msra.mxu1 %v6228_v39  ;;  %4574 = vmatpush3.bf16.msra.mxu0 %v6234_v33 }
0x108d   :  { %2668 = vmatprep.subr.bf16.mxu1 %v6240_v40  ;;  %4575 = vmatprep.subr.bf16.mxu0 %v5140_v2 }
0x1090   :  { %2669 = vmatpush1.bf16.msra.mxu1 %v6247_v41  ;;  %4576 = vmatpush3.bf16.msra.mxu0 %v6253_v42 }
0x1091   :  { %2670 = vmatprep.subr.bf16.mxu1 %v6259_v35  ;;  %4577 = vmatprep.subr.bf16.mxu0 %v5140_v2 }
0x1094   :  { %2671 = vmatpush1.bf16.msra.mxu1 %v6266_v43  ;;  %4578 = vmatpush3.bf16.msra.mxu0 %v6323_v25 }
0x1095   :  { %2672 = vmatprep.subr.bf16.mxu1 %v6273_v44  ;;  %4579 = vmatprep.subr.bf16.mxu0 %v5140_v2 }
0x1098   :  { %2673 = vmatpush1.bf16.msra.mxu1 %v6280_v61  ;;  %4580 = vmatpush3.bf16.msra.mxu0 %v6332_v51 }
0x1099   :  { %2674 = vmatprep.subr.bf16.mxu1 %v6338_v52  ;;  %4581 = vmatprep.subr.bf16.mxu0 %v5140_v2 }
0x109c   :  { %2675 = vmatpush1.bf16.msra.mxu1 %v6345_v53  ;;  %4582 = vmatpush3.bf16.msra.mxu0 %v6351_v54 }
0x109d   :  { %2676 = vmatprep.subr.bf16.mxu1 %v6357_v56  ;;  %4583 = vmatprep.subr.bf16.mxu0 %v5140_v2 }
0x10a0   :  { %2677 = vmatpush1.bf16.msra.mxu1 %v6364_v38  ;;  %4584 = vmatpush3.bf16.msra.mxu0 %v6370_v55 }
0x10a1   :  { %2678 = vmatprep.subr.bf16.mxu1 %v6376_v57  ;;  %4585 = vmatprep.subr.bf16.mxu0 %v5140_v2 }
0x10a4   :  { %2679 = vmatpush1.bf16.msra.mxu1 %v6383_v14  ;;  %4586 = vmatpush3.bf16.msra.mxu0 %v6389_v48 }
0x10a5   :  { %2774 = vmatprep.subr.bf16.mxu1 %v6193_v45  ;;  %4591 = vmatprep.subr.bf16.mxu0 %v5140_v2 }
0x115a   :  { %v2576_v11 = vpop.f32.mrb[84].mxu1  ;;  %v2617_v17 = vpop.f32.mrb[72].mxu0 }
0x115b   :  { %v2624_v37 = vrot.slane %v2576_v11, 2  ;;  %v2578_v19 = vpop.f32.mrb[85].mxu1  ;;  %v4569_v23 = vpop.f32.mrb[73].mxu0  ;;  %v2643_v7 = vadd.f32 %v6438_v15, %v2617_v17 }
0x115c   :  { %v2634_v59 = vrot.slane %v2578_v19, 2  ;;  %v2580_v28 = vpop.f32.mrb[86].mxu1  ;;  %v2620_v29 = vpop.f32.mrb[74].mxu0 }
0x115d   :  { %v2626_v30 = vadd.f32 %v2624_v37, %v2535_v27  ;;  %v2581_v58 = vpop.f32.mrb[87].mxu1  ;;  %v4570_v60 = vpop.f32.mrb[75].mxu0  ;;  %v2645_v4 = vrot.slane %v2643_v7, 2  ;;  %v2658_v37 = vld [vmem:[#allocation2 + $0x88] sm:$0x3] }
0x115e   :  { %v2636_v62 = vadd.f32 %v2634_v59, %v2536_v31 }
0x115f   :  { %v3968_v0 = vmul.f32 -1.442695, %v2626_v30 }
0x1160   :  { %v3969_v1 = vmul.f32 -1.442695, %v2636_v62 }
0x1161   :  { %4951 = vpow2.f32 %v3968_v0 }
0x1162   :  { %4953 = vpow2.f32 %v3969_v1 }
0x116b   :  { %v4952_v3 = vpop.eup %4951 }
0x116c   :  { %v4954_v5 = vpop.eup %4953  ;;  %v2630_v6 = vadd.f32 1.0, %v4952_v3 }
0x116d   :  { %v2640_v63 = vadd.f32 1.0, %v4954_v5 }
0x116e   :  { %4955 = vrcp.f32 %v2630_v6 }
0x116f   :  { %4957 = vrcp.f32 %v2640_v63 }
0x1178   :  { %v4956_v46 = vpop.eup %4955 }
0x1179   :  { %v4958_v12 = vpop.eup %4957  ;;  %v2647_v16 = vmul.f32 %v4956_v46, %v2645_v4  ;;  %v2659_v4 = vld [vmem:[#allocation2 + $0x90] sm:$0x3] }
0x117a   :  { %v2655_v20 = vmul.f32 %v4958_v12, %v2653_v10  ;;  %v2650_v47 = vsub.f32 1.0, %v4958_v12 }
0x117b   :  { %v2648_v21 = vadd.f32 %v2647_v16, %v2537_v18 }
0x117d   :  { %4959 = vtanh.f32 %v2648_v21 }
0x1187   :  { %v4960_v22 = vpop.eup %4959 }
0x1188   :  { %v2651_v50 = vmul.f32 %v4960_v22, %v2650_v47 }
0x118a   :  { %v6483_v24 = vadd.f32 %v2655_v20, %v2651_v50 }
0x118c   :  { %v2660_v26 = vpack.c.bf16 %v6483_v24, %v6483_v24  ;;  %v2766_v6 = vrot.slane %v6483_v24, 6 }
0x118e   :  { %v2662_v9 = vrot.slane %v2660_v26, 3 }
0x1190   :  { %2697 = vmatmul.mubr.bf16.vlgmr.msra.gmra.mrb[88].mxu1 %v2662_v9  ;;  %4588 = vmatmul.mubr.bf16.vlgmr.msra.gmra.mrb[76].mxu0 %v2662_v9  ;;  %v2770_v9 = vld [vmem:[#allocation2 + $0x80] sm:$0xc] }
0x1191   :  { %2775 = vmatpush1.bf16.msra.mxu1 %v6206_v32  ;;  %4592 = vmatpush3.bf16.msra.mxu0 %v6212_v34 }
0x1192   :  { %2776 = vmatprep.subr.bf16.mxu1 %v6218_v36  ;;  %4593 = vmatprep.subr.bf16.mxu0 %v5140_v2 }
0x1193   :  { %2806 = vmatprep.mubr.bf16.mxu1 %v5142_v49  ;;  %4607 = vmatprep.mubr.msk.bf16.mxu0 %vm5141_vm0, %v5140_v2 }
0x1195   :  { %2777 = vmatpush1.bf16.msra.mxu1 %v6228_v39  ;;  %4594 = vmatpush3.bf16.msra.mxu0 %v6234_v33 }
0x1196   :  { %2778 = vmatprep.subr.bf16.mxu1 %v6240_v40  ;;  %4595 = vmatprep.subr.bf16.mxu0 %v5140_v2 }
0x1199   :  { %2779 = vmatpush1.bf16.msra.mxu1 %v6247_v41  ;;  %4596 = vmatpush3.bf16.msra.mxu0 %v6253_v42 }
0x119a   :  { %2780 = vmatprep.subr.bf16.mxu1 %v6259_v35  ;;  %4597 = vmatprep.subr.bf16.mxu0 %v5140_v2 }
0x119d   :  { %2781 = vmatpush1.bf16.msra.mxu1 %v6266_v43  ;;  %4598 = vmatpush3.bf16.msra.mxu0 %v6323_v25 }
0x119e   :  { %2782 = vmatprep.subr.bf16.mxu1 %v6273_v44  ;;  %4599 = vmatprep.subr.bf16.mxu0 %v5140_v2 }
0x11a1   :  { %2783 = vmatpush1.bf16.msra.mxu1 %v6280_v61  ;;  %4600 = vmatpush3.bf16.msra.mxu0 %v6332_v51 }
0x11a2   :  { %2784 = vmatprep.subr.bf16.mxu1 %v6338_v52  ;;  %4601 = vmatprep.subr.bf16.mxu0 %v5140_v2 }
0x11a5   :  { %2785 = vmatpush1.bf16.msra.mxu1 %v6345_v53  ;;  %4602 = vmatpush3.bf16.msra.mxu0 %v6351_v54 }
0x11a6   :  { %2786 = vmatprep.subr.bf16.mxu1 %v6357_v56  ;;  %4603 = vmatprep.subr.bf16.mxu0 %v5140_v2 }
0x11a9   :  { %2787 = vmatpush1.bf16.msra.mxu1 %v6364_v38  ;;  %4604 = vmatpush3.bf16.msra.mxu0 %v6370_v55 }
0x11aa   :  { %2788 = vmatprep.subr.bf16.mxu1 %v6376_v57  ;;  %4605 = vmatprep.subr.bf16.mxu0 %v5140_v2 }
0x11ad   :  { %2789 = vmatpush1.bf16.msra.mxu1 %v6383_v14  ;;  %4606 = vmatpush3.bf16.msra.mxu0 %v6389_v48 }
0x11ae   :  { %2896 = vmatprep.subr.bf16.mxu1 %v6193_v45  ;;  %4611 = vmatprep.subr.bf16.mxu0 %v5140_v2 }
0x1263   :  { %v2698_v13 = vpop.f32.mrb[88].mxu1  ;;  %v2739_v11 = vpop.f32.mrb[76].mxu0 }
0x1264   :  { %v2745_v17 = vadd.f32 %v2698_v13, %v2657_v8  ;;  %v2700_v19 = vpop.f32.mrb[89].mxu1  ;;  %v4589_v23 = vpop.f32.mrb[77].mxu0  ;;  %v2759_v3 = vadd.f32 %v6438_v15, %v2739_v11 }
0x1265   :  { %v2752_v27 = vadd.f32 %v2700_v19, %v2658_v37  ;;  %v2702_v59 = vpop.f32.mrb[90].mxu1  ;;  %v2742_v28 = vpop.f32.mrb[78].mxu0  ;;  %v2771_v37 = vld [vmem:[#allocation2 + $0x88] sm:$0xc] }
0x1266   :  { %v3970_v29 = vmul.f32 -1.442695, %v2745_v17  ;;  %v2703_v30 = vpop.f32.mrb[91].mxu1  ;;  %v4590_v31 = vpop.f32.mrb[79].mxu0 }
0x1267   :  { %v3971_v58 = vmul.f32 -1.442695, %v2752_v27 }
0x1268   :  { %4961 = vpow2.f32 %v3970_v29 }
0x1269   :  { %4963 = vpow2.f32 %v3971_v58 }
0x1272   :  { %v4962_v60 = vpop.eup %4961 }
0x1273   :  { %v4964_v62 = vpop.eup %4963  ;;  %v2749_v0 = vadd.f32 1.0, %v4962_v60 }
0x1274   :  { %v2756_v1 = vadd.f32 1.0, %v4964_v62 }
0x1275   :  { %4965 = vrcp.f32 %v2749_v0 }
0x1276   :  { %4967 = vrcp.f32 %v2756_v1 }
0x127f   :  { %v4966_v5 = vpop.eup %4965 }
0x1280   :  { %v4968_v63 = vpop.eup %4967  ;;  %v2760_v7 = vmul.f32 %v4966_v5, %v2759_v3  ;;  %v2772_v5 = vld [vmem:[#allocation2 + $0x90] sm:$0xc] }
0x1281   :  { %v2768_v46 = vmul.f32 %v4968_v63, %v2766_v6  ;;  %v2763_v12 = vsub.f32 1.0, %v4968_v63 }
0x1282   :  { %v2761_v10 = vadd.f32 %v2760_v7, %v2659_v4 }
0x1284   :  { %4969 = vtanh.f32 %v2761_v10 }
0x128e   :  { %v4970_v16 = vpop.eup %4969 }
0x128f   :  { %v2764_v18 = vmul.f32 %v4970_v16, %v2763_v12 }
0x1291   :  { %v6524_v20 = vadd.f32 %v2768_v46, %v2764_v18 }
0x1293   :  { %v2773_v21 = vpack.c.bf16 %v6524_v20, %v6524_v20  ;;  %v2885_v0 = vrot.slane %v6524_v20, 6 }
0x1295   :  { %2807 = vmatmul.mubr.bf16.vlgmr.msra.gmra.mrb[92].mxu1 %v2773_v21  ;;  %4608 = vmatmul.mubr.bf16.vlgmr.msra.gmra.mrb[80].mxu0 %v2773_v21 }
0x1296   :  { %2897 = vmatpush1.bf16.msra.mxu1 %v6206_v32  ;;  %4612 = vmatpush3.bf16.msra.mxu0 %v6212_v34 }
0x1297   :  { %2898 = vmatprep.subr.bf16.mxu1 %v6218_v36  ;;  %4613 = vmatprep.subr.bf16.mxu0 %v5140_v2 }
0x1298   :  { %2928 = vmatprep.mubr.bf16.mxu1 %v5142_v49  ;;  %4627 = vmatprep.mubr.msk.bf16.mxu0 %vm5141_vm0, %v5140_v2 }
0x129a   :  { %2899 = vmatpush1.bf16.msra.mxu1 %v6228_v39  ;;  %4614 = vmatpush3.bf16.msra.mxu0 %v6234_v33 }
0x129b   :  { %2900 = vmatprep.subr.bf16.mxu1 %v6240_v40  ;;  %4615 = vmatprep.subr.bf16.mxu0 %v5140_v2 }
0x129e   :  { %2901 = vmatpush1.bf16.msra.mxu1 %v6247_v41  ;;  %4616 = vmatpush3.bf16.msra.mxu0 %v6253_v42 }
0x129f   :  { %2902 = vmatprep.subr.bf16.mxu1 %v6259_v35  ;;  %4617 = vmatprep.subr.bf16.mxu0 %v5140_v2 }
0x12a2   :  { %2903 = vmatpush1.bf16.msra.mxu1 %v6266_v43  ;;  %4618 = vmatpush3.bf16.msra.mxu0 %v6323_v25 }
0x12a3   :  { %2904 = vmatprep.subr.bf16.mxu1 %v6273_v44  ;;  %4619 = vmatprep.subr.bf16.mxu0 %v5140_v2 }
0x12a6   :  { %2905 = vmatpush1.bf16.msra.mxu1 %v6280_v61  ;;  %4620 = vmatpush3.bf16.msra.mxu0 %v6332_v51 }
0x12a7   :  { %2906 = vmatprep.subr.bf16.mxu1 %v6338_v52  ;;  %4621 = vmatprep.subr.bf16.mxu0 %v5140_v2 }
0x12aa   :  { %2907 = vmatpush1.bf16.msra.mxu1 %v6345_v53  ;;  %4622 = vmatpush3.bf16.msra.mxu0 %v6351_v54 }
0x12ab   :  { %2908 = vmatprep.subr.bf16.mxu1 %v6357_v56  ;;  %4623 = vmatprep.subr.bf16.mxu0 %v5140_v2 }
0x12ae   :  { %2909 = vmatpush1.bf16.msra.mxu1 %v6364_v38  ;;  %4624 = vmatpush3.bf16.msra.mxu0 %v6370_v55 }
0x12af   :  { %2910 = vmatprep.subr.bf16.mxu1 %v6376_v57  ;;  %4625 = vmatprep.subr.bf16.mxu0 %v5140_v2 }
0x12b2   :  { %2911 = vmatpush1.bf16.msra.mxu1 %v6383_v14  ;;  %4626 = vmatpush3.bf16.msra.mxu0 %v6389_v48 }
0x12b3   :  { %3018 = vmatprep.subr.bf16.mxu1 %v6193_v45  ;;  %4631 = vmatprep.subr.bf16.mxu0 %v5140_v2 }
0x1368   :  { %v2808_v47 = vpop.f32.mrb[92].mxu1  ;;  %v2849_v22 = vpop.f32.mrb[80].mxu0 }
0x1369   :  { %v2856_v50 = vrot.slane %v2808_v47, 6  ;;  %v2810_v24 = vpop.f32.mrb[93].mxu1  ;;  %v4609_v26 = vpop.f32.mrb[81].mxu0  ;;  %v2875_v58 = vadd.f32 %v6438_v15, %v2849_v22 }
0x136a   :  { %v2866_v8 = vrot.slane %v2810_v24, 6  ;;  %v2812_v13 = vpop.f32.mrb[94].mxu1  ;;  %v2852_v11 = vpop.f32.mrb[82].mxu0 }
0x136b   :  { %v2858_v17 = vadd.f32 %v2856_v50, %v2770_v9  ;;  %v2813_v19 = vpop.f32.mrb[95].mxu1  ;;  %v4610_v23 = vpop.f32.mrb[83].mxu0  ;;  %v2877_v60 = vrot.slane %v2875_v58, 6 }
0x136c   :  { %v2868_v27 = vadd.f32 %v2866_v8, %v2771_v37  ;;  %v2891_v23 = vld [vmem:[#allocation2 + $0x90] sm:$0x30] }
0x136d   :  { %v3972_v59 = vmul.f32 -1.442695, %v2858_v17 }
0x136e   :  { %v3973_v28 = vmul.f32 -1.442695, %v2868_v27 }
0x136f   :  { %4971 = vpow2.f32 %v3972_v59 }
0x1370   :  { %4973 = vpow2.f32 %v3973_v28 }
0x1379   :  { %v4972_v45 = vpop.eup %4971 }
0x137a   :  { %v4974_v29 = vpop.eup %4973  ;;  %v2862_v30 = vadd.f32 1.0, %v4972_v45 }
0x137b   :  { %v2872_v31 = vadd.f32 1.0, %v4974_v29 }
0x137c   :  { %4975 = vrcp.f32 %v2862_v30 }
0x137d   :  { %4977 = vrcp.f32 %v2872_v31 }
0x1386   :  { %v4976_v62 = vpop.eup %4975 }
0x1387   :  { %v4978_v1 = vpop.eup %4977  ;;  %v2879_v3 = vmul.f32 %v4976_v62, %v2877_v60  ;;  %v5104_v60 = vld [vmem:[%s6854_s6] ss:$12 sps:$4 sm:$0xff]   ;;  %v5105_v62 = vld [vmem:[%s6854_s6 + $0x8] ss:$12 sps:$4 sm:$0xff]  }
0x1388   :  { %v2887_v6 = vmul.f32 %v4978_v1, %v2885_v0  ;;  %v2882_v7 = vsub.f32 1.0, %v4978_v1  ;;  %v5106_v0 = vld [vmem:[%s6854_s6 + $0x1c] ss:$12 sps:$4 sm:$0xff]   ;;  %v5107_v1 = vld [vmem:[%s6854_s6 + $0x18] ss:$12 sps:$4 sm:$0xff]  }
0x1389   :  { %v2880_v63 = vadd.f32 %v2879_v3, %v2772_v5  ;;  %v5108_v3 = vld [vmem:[%s6854_s6 + $0x20] ss:$12 sps:$4 sm:$0xff]  }
0x138a   :  { %v5109_v5 = vld [vmem:[%s6854_s6 + $0x34] ss:$12 sps:$4 sm:$0xff]  }
0x138b   :  { %4979 = vtanh.f32 %v2880_v63  ;;  %v5111_v63 = vld [vmem:[%s6854_s6 + $0x38] ss:$12 sps:$4 sm:$0xff]  }
0x1395   :  { %v4980_v4 = vpop.eup %4979 }
0x1396   :  { %v2883_v46 = vmul.f32 %v4980_v4, %v2882_v7  ;;  %v5112_v7 = vld [vmem:[%s6854_s6 + $0x4c] ss:$12 sps:$4 sm:$0xff]   ;;  %v5113_v4 = vld [vmem:[%s6854_s6 + $0x48] ss:$12 sps:$4 sm:$0xff]  }
0x1398   :  { %v6565_v10 = vadd.f32 %v2887_v6, %v2883_v46  ;;  %v5110_v6 = vld [vmem:[%s6854_s6 + $0x30] ss:$12 sps:$4 sm:$0xff]  }
0x1399   :  { %v5114_v46 = vld [vmem:[%s6854_s6 + $0x64] ss:$12 sps:$4 sm:$0xff]  }
0x139a   :  { %v2892_v12 = vpack.c.bf16 %v6565_v10, %v6565_v10  ;;  %v3007_v17 = vrot.slane %v6565_v10, 6  ;;  %v5115_v10 = vld [vmem:[%s6854_s6 + $0x60] ss:$12 sps:$4 sm:$0xff]  }
0x139c   :  { %v2894_v16 = vrot.slane %v2892_v12, 1  ;;  %v3012_v12 = vld [vmem:[#allocation2 + $0x88] sm:$0xc0] }
0x139e   :  { %2929 = vmatmul.mubr.bf16.vlgmr.msra.gmra.mrb[96].mxu1 %v2894_v16  ;;  %4628 = vmatmul.mubr.bf16.vlgmr.msra.gmra.mrb[84].mxu0 %v2894_v16 }
0x139f   :  { %3019 = vmatpush1.bf16.msra.mxu1 %v6206_v32  ;;  %4632 = vmatpush3.bf16.msra.mxu0 %v6212_v34  ;;  %v5103_v32 = vld [vmem:[%s6854_s6 + $0x4] ss:$12 sps:$4 sm:$0xff]  }
0x13a0   :  { %3020 = vmatprep.subr.bf16.mxu1 %v6218_v36  ;;  %4633 = vmatprep.subr.bf16.mxu0 %v5140_v2 }
0x13a1   :  { %3050 = vmatprep.mubr.bf16.mxu1 %v5142_v49  ;;  %4647 = vmatprep.mubr.msk.bf16.mxu0 %vm5141_vm0, %v5140_v2 }
0x13a3   :  { %3021 = vmatpush1.bf16.msra.mxu1 %v6228_v39  ;;  %4634 = vmatpush3.bf16.msra.mxu0 %v6234_v33 }
0x13a4   :  { %3022 = vmatprep.subr.bf16.mxu1 %v6240_v40  ;;  %4635 = vmatprep.subr.bf16.mxu0 %v5140_v2 }
0x13a7   :  { %3023 = vmatpush1.bf16.msra.mxu1 %v6247_v41  ;;  %4636 = vmatpush3.bf16.msra.mxu0 %v6253_v42  ;;  %v2889_v41 = vld [vmem:[#allocation2 + $0x80] sm:$0x30] }
0x13a8   :  { %3024 = vmatprep.subr.bf16.mxu1 %v6259_v35  ;;  %4637 = vmatprep.subr.bf16.mxu0 %v5140_v2 }
0x13ab   :  { %3025 = vmatpush1.bf16.msra.mxu1 %v6266_v43  ;;  %4638 = vmatpush3.bf16.msra.mxu0 %v6323_v25 }
0x13ac   :  { %3026 = vmatprep.subr.bf16.mxu1 %v6273_v44  ;;  %4639 = vmatprep.subr.bf16.mxu0 %v5140_v2 }
0x13af   :  { %3027 = vmatpush1.bf16.msra.mxu1 %v6280_v61  ;;  %4640 = vmatpush3.bf16.msra.mxu0 %v6332_v51  ;;  %v2890_v61 = vld [vmem:[#allocation2 + $0x88] sm:$0x30] }
0x13b0   :  { %3028 = vmatprep.subr.bf16.mxu1 %v6338_v52  ;;  %4641 = vmatprep.subr.bf16.mxu0 %v5140_v2 }
0x13b3   :  { %3029 = vmatpush1.bf16.msra.mxu1 %v6345_v53  ;;  %4642 = vmatpush3.bf16.msra.mxu0 %v6351_v54 }
0x13b4   :  { %3030 = vmatprep.subr.bf16.mxu1 %v6357_v56  ;;  %4643 = vmatprep.subr.bf16.mxu0 %v5140_v2 }
0x13b7   :  { %3031 = vmatpush1.bf16.msra.mxu1 %v6364_v38  ;;  %4644 = vmatpush3.bf16.msra.mxu0 %v6370_v55 }
0x13b8   :  { %3032 = vmatprep.subr.bf16.mxu1 %v6376_v57  ;;  %4645 = vmatprep.subr.bf16.mxu0 %v5140_v2 }
0x13bb   :  { %3033 = vmatpush1.bf16.msra.mxu1 %v6383_v14  ;;  %4646 = vmatpush3.bf16.msra.mxu0 %v6389_v48 }
0x13bc   :  { %3140 = vmatprep.subr.bf16.mxu1 %v5103_v32  ;;  %4651 = vmatprep.subr.bf16.mxu0 %v5140_v2 }
0x1471   :  { %v2930_v34 = vpop.f32.mrb[96].mxu1  ;;  %v2971_v36 = vpop.f32.mrb[84].mxu0 }
0x1472   :  { %v2978_v39 = vrot.slane %v2930_v34, 4  ;;  %v2932_v33 = vpop.f32.mrb[97].mxu1  ;;  %v4629_v40 = vpop.f32.mrb[85].mxu0  ;;  %v2997_v8 = vadd.f32 %v6438_v15, %v2971_v36 }
0x1473   :  { %v2988_v42 = vrot.slane %v2932_v33, 4  ;;  %v2934_v35 = vpop.f32.mrb[98].mxu1  ;;  %v2974_v43 = vpop.f32.mrb[86].mxu0 }
0x1474   :  { %v2980_v44 = vadd.f32 %v2978_v39, %v2889_v41  ;;  %v2935_v18 = vpop.f32.mrb[99].mxu1  ;;  %v4630_v20 = vpop.f32.mrb[87].mxu0  ;;  %v2999_v13 = vrot.slane %v2997_v8, 4 }
0x1475   :  { %v2990_v21 = vadd.f32 %v2988_v42, %v2890_v61 }
0x1476   :  { %v3974_v47 = vmul.f32 -1.442695, %v2980_v44 }
0x1477   :  { %v3975_v22 = vmul.f32 -1.442695, %v2990_v21  ;;  %v3013_v21 = vld [vmem:[#allocation2 + $0x90] sm:$0xc0] }
0x1478   :  { %4981 = vpow2.f32 %v3974_v47 }
0x1479   :  { %4983 = vpow2.f32 %v3975_v22 }
0x1482   :  { %v4982_v50 = vpop.eup %4981 }
0x1483   :  { %v4984_v24 = vpop.eup %4983  ;;  %v2984_v26 = vadd.f32 1.0, %v4982_v50 }
0x1484   :  { %v2994_v9 = vadd.f32 1.0, %v4984_v24 }
0x1485   :  { %4985 = vrcp.f32 %v2984_v26 }
0x1486   :  { %4987 = vrcp.f32 %v2994_v9 }
0x148f   :  { %v4986_v11 = vpop.eup %4985 }
0x1490   :  { %v4988_v37 = vpop.eup %4987  ;;  %v3001_v19 = vmul.f32 %v4986_v11, %v2999_v13 }
0x1491   :  { %v3009_v27 = vmul.f32 %v4988_v37, %v3007_v17  ;;  %v3004_v28 = vsub.f32 1.0, %v4988_v37  ;;  %v3133_v17 = vld [vmem:[#allocation2 + $0xa0] sm:$0x3] }
0x1492   :  { %v3002_v59 = vadd.f32 %v3001_v19, %v2891_v23 }
0x1494   :  { %4989 = vtanh.f32 %v3002_v59 }
0x149e   :  { %v4990_v45 = vpop.eup %4989 }
0x149f   :  { %v3005_v29 = vmul.f32 %v4990_v45, %v3004_v28 }
0x14a1   :  { %v6608_v30 = vadd.f32 %v3009_v27, %v3005_v29  ;;  %v3134_v27 = vld [vmem:[#allocation2 + $0xa8] sm:$0x3] }
0x14a3   :  { %v3014_v31 = vpack.c.bf16 %v6608_v30, %v6608_v30  ;;  %v3129_v61 = vrot.slane %v6608_v30, 6 }
0x14a5   :  { %v3016_v58 = vrot.slane %v3014_v31, 2 }
0x14a7   :  { %3051 = vmatmul.mubr.bf16.vlgmr.msra.gmra.mrb[100].mxu1 %v3016_v58  ;;  %4648 = vmatmul.mubr.bf16.vlgmr.msra.gmra.mrb[88].mxu0 %v3016_v58 }
0x14a8   :  { %3141 = vmatpush1.bf16.msra.mxu1 %v5104_v60  ;;  %4652 = vmatpush3.bf16.msra.mxu0 %v5105_v62 }
0x14a9   :  { %3142 = vmatprep.subr.bf16.mxu1 %v5106_v0  ;;  %4653 = vmatprep.subr.bf16.mxu0 %v5140_v2 }
0x14aa   :  { %3172 = vmatprep.mubr.bf16.mxu1 %v5142_v49  ;;  %4667 = vmatprep.mubr.msk.bf16.mxu0 %vm5141_vm0, %v5140_v2  ;;  %vm567_vm0 = vcmask 126976  }
0x14ac   :  { %3143 = vmatpush1.bf16.msra.mxu1 %v5107_v1  ;;  %4654 = vmatpush3.bf16.msra.mxu0 %v5108_v3 }
0x14ad   :  { %3144 = vmatprep.subr.bf16.mxu1 %v5109_v5  ;;  %4655 = vmatprep.subr.bf16.mxu0 %v5140_v2 }
0x14b0   :  { %3145 = vmatpush1.bf16.msra.mxu1 %v5110_v6  ;;  %4656 = vmatpush3.bf16.msra.mxu0 %v5111_v63 }
0x14b1   :  { %3146 = vmatprep.subr.bf16.mxu1 %v5112_v7  ;;  %4657 = vmatprep.subr.bf16.mxu0 %v5140_v2 }
0x14b4   :  { %3147 = vmatpush1.bf16.msra.mxu1 %v5113_v4  ;;  %4658 = vmatpush3.bf16.msra.mxu0 %v6323_v25  ;;  %v3246_v25 = vld [vmem:[%s6856_s8] sm:$0x3]  ;;  %s5144_s8 = smov 120  }
0x14b5   :  { %3148 = vmatprep.subr.bf16.mxu1 %v5114_v46  ;;  %4659 = vmatprep.subr.bf16.mxu0 %v5140_v2  ;;  %v3262_v11 = vsel %vm3260_vm3, %v3246_v25, 0 }
0x14b8   :  { %3149 = vmatpush1.bf16.msra.mxu1 %v5115_v10  ;;  %4660 = vmatpush3.bf16.msra.mxu0 %v6332_v51  ;;  %v3980_v51 = vld [vmem:[%s6857_s9] ss:$0 sm:$0xff]  ;;  %s5145_s9 = smov 124  }
0x14b9   :  { %3150 = vmatprep.subr.bf16.mxu1 %v6338_v52  ;;  %4661 = vmatprep.subr.bf16.mxu0 %v5140_v2 }
0x14ba   :  { %3344 = vrot.lane.b32.xlu0 %v3980_v51, %s5143_s2 }
0x14bc   :  { %3151 = vmatpush1.bf16.msra.mxu1 %v6345_v53  ;;  %4662 = vmatpush3.bf16.msra.mxu0 %v6351_v54 }
0x14bd   :  { %3152 = vmatprep.subr.bf16.mxu1 %v6357_v56  ;;  %4663 = vmatprep.subr.bf16.mxu0 %v5140_v2 }
0x14c0   :  { %3153 = vmatpush1.bf16.msra.mxu1 %v6364_v38  ;;  %4664 = vmatpush3.bf16.msra.mxu0 %v6370_v55  ;;  %v3011_v38 = vld [vmem:[#allocation2 + $0x80] sm:$0xc0] }
0x14c1   :  { %3154 = vmatprep.subr.bf16.mxu1 %v6376_v57  ;;  %4665 = vmatprep.subr.bf16.mxu0 %v5140_v2 }
0x14c4   :  { %3155 = vmatpush1.bf16.msra.mxu1 %v6383_v14  ;;  %4666 = vmatpush3.bf16.msra.mxu0 %v6389_v48 }
0x14c5   :  { %4683 = vmatprep.subr.msk.bf16.mxu1 %vm3260_vm3, %v3246_v25 }
0x152c   :  { %v6683_v0 = vpop.permute.xlu0 %3344 }
0x157a   :  { %v3052_v52 = vpop.f32.mrb[100].mxu1  ;;  %v3093_v2 = vpop.f32.mrb[88].mxu0 }
0x157b   :  { %v3100_v53 = vrot.slane %v3052_v52, 2  ;;  %v3054_v54 = vpop.f32.mrb[101].mxu1  ;;  %v4649_v56 = vpop.f32.mrb[89].mxu0  ;;  %v3119_v35 = vadd.f32 %v6438_v15, %v3093_v2 }
0x157c   :  { %v3110_v55 = vrot.slane %v3054_v54, 2  ;;  %v3056_v57 = vpop.f32.mrb[102].mxu1  ;;  %v3096_v14 = vpop.f32.mrb[90].mxu0 }
0x157d   :  { %v3102_v48 = vadd.f32 %v3100_v53, %v3011_v38  ;;  %v3057_v16 = vpop.f32.mrb[103].mxu1  ;;  %v4650_v32 = vpop.f32.mrb[91].mxu0  ;;  %v3121_v43 = vrot.slane %v3119_v35, 2 }
0x157e   :  { %v3112_v34 = vadd.f32 %v3110_v55, %v3012_v12 }
0x157f   :  { %v3976_v36 = vmul.f32 -1.442695, %v3102_v48 }
0x1580   :  { %v3977_v39 = vmul.f32 -1.442695, %v3112_v34 }
0x1581   :  { %4991 = vpow2.f32 %v3976_v36  ;;  %v3135_v36 = vld [vmem:[#allocation2 + $0xb0] sm:$0x3] }
0x1582   :  { %4993 = vpow2.f32 %v3977_v39 }
0x158b   :  { %v4992_v33 = vpop.eup %4991 }
0x158c   :  { %v4994_v40 = vpop.eup %4993  ;;  %v3106_v41 = vadd.f32 1.0, %v4992_v33 }
0x158d   :  { %v3116_v42 = vadd.f32 1.0, %v4994_v40 }
0x158e   :  { %4995 = vrcp.f32 %v3106_v41 }
0x158f   :  { %4997 = vrcp.f32 %v3116_v42 }
0x1598   :  { %v4996_v44 = vpop.eup %4995 }
0x1599   :  { %v4998_v18 = vpop.eup %4997  ;;  %v3123_v20 = vmul.f32 %v4996_v44, %v3121_v43  ;;  %v3253_v43 = vld [vmem:[#allocation2 + $0x18] sm:$0xfc] }
0x159a   :  { %v3131_v47 = vmul.f32 %v4998_v18, %v3129_v61  ;;  %v3126_v50 = vsub.f32 1.0, %v4998_v18  ;;  %v3254_v61 = vld [vmem:[#allocation2 + $0x38] sm:$0xff] }
0x159b   :  { %v3124_v22 = vadd.f32 %v3123_v20, %v3013_v21  ;;  %v3255_v21 = vld [vmem:[#allocation2 + $0x58] sm:$0x3f] }
0x159d   :  { %4999 = vtanh.f32 %v3124_v22 }
0x15a7   :  { %v5000_v24 = vpop.eup %4999 }
0x15a8   :  { %v3127_v26 = vmul.f32 %v5000_v24, %v3126_v50 }
0x15aa   :  { %v3132_v9 = vadd.f32 %v3131_v47, %v3127_v26 }
0x15ac   :  { %v3136_v8 = vpack.c.bf16 %v3132_v9, %v3132_v9  ;;  %v3242_v16 = vrot.slane %v3132_v9, 6 }
0x15ae   :  { %v3138_v13 = vrot.slane %v3136_v8, 3 }
0x15b0   :  { %3173 = vmatmul.mubr.bf16.vlgmr.msra.gmra.mrb[104].mxu1 %v3138_v13  ;;  %4668 = vmatmul.mubr.bf16.vlgmr.msra.gmra.mrb[92].mxu0 %v3138_v13 }
0x15b1   :  { %4672 = vmatpush3.bf16.msra.mxu1 %v3262_v11  ;;  %4673 = vmatprep.mubr.bf16.mxu1 %v5142_v49 }
0x15b2   :  { %4684 = vmatprep.subr.msk.bf16.mxu1 %vm3260_vm3, %v3246_v25 }
0x15b8   :  { %4674 = vmatmul.mubr.bf16.vlgmr.msra.gmra.mrb[108].mxu1 %v5142_v49 }
0x15b9   :  { %4678 = vmatpush3.bf16.msra.mxu1 %v3262_v11 }
0x1683   :  { %v3174_v37 = vpop.f32.mrb[104].mxu1  ;;  %v3215_v19 = vpop.f32.mrb[92].mxu0 }
0x1684   :  { %v3221_v23 = vadd.f32 %v3174_v37, %v3133_v17  ;;  %v3176_v59 = vpop.f32.mrb[105].mxu1  ;;  %v4669_v28 = vpop.f32.mrb[93].mxu0  ;;  %v3235_v48 = vadd.f32 %v6438_v15, %v3215_v19 }
0x1685   :  { %v3228_v45 = vadd.f32 %v3176_v59, %v3134_v27  ;;  %v3178_v29 = vpop.f32.mrb[106].mxu1  ;;  %v3218_v30 = vpop.f32.mrb[94].mxu0 }
0x1686   :  { %v3978_v31 = vmul.f32 -1.442695, %v3221_v23  ;;  %v3179_v58 = vpop.f32.mrb[107].mxu1  ;;  %v4670_v60 = vpop.f32.mrb[95].mxu0 }
0x1687   :  { %v3979_v62 = vmul.f32 -1.442695, %v3228_v45 }
0x1688   :  { %5001 = vpow2.f32 %v3978_v31 }
0x1689   :  { %5003 = vpow2.f32 %v3979_v62 }
0x168b   :  { %v4675_v49 = vpop.f32.mrb[108].mxu1 }
0x168c   :  { %v3298_v1 = vpop.f32.mrb[109].mxu1  ;;  %v3349_v3 = vadd.f32 %v4675_v49, %v6683_v0  ;;  %v3318_v63 = vrot.slane %v4675_v49, 6 }
0x168d   :  { %v3347_v5 = vadd.f32 %v6683_v0, %v3298_v1  ;;  %v4676_v6 = vpop.f32.mrb[110].mxu1  ;;  %v3315_v4 = vrot.slane %v3298_v1, 6 }
0x168e   :  { %v3301_v7 = vpop.f32.mrb[111].mxu1  ;;  %v3356_v51 = vrot.slane %v3349_v3, 6 }
0x168f   :  { %v3353_v46 = vrot.slane %v3347_v5, 6  ;;  %v3316_v10 = vrot.slane %v3301_v7, 6  ;;  %v3348_v25 = vadd.f32 %v6683_v0, %v3301_v7  ;;  %v3323_v44 = vadd.f32 %v3315_v4, %v3253_v43 }
0x1691   :  { %v3317_v52 = vsel %vm3260_vm3, %v3315_v4, %v3316_v10  ;;  %v3319_v2 = vsel %vm3260_vm3, %v3316_v10, %v3318_v63  ;;  %v3354_v53 = vrot.slane %v3348_v25, 6  ;;  %3358 = vrot.lane.b32.xlu0 %v3353_v46, %s5144_s8  ;;  %v3981_v20 = vmul.f32 -1.442695, %v3323_v44 }
0x1692   :  { %v5002_v54 = vpop.eup %5001  ;;  %v3324_v18 = vadd.f32 %v3317_v52, %v3254_v61  ;;  %v3325_v15 = vadd.f32 %v3319_v2, %v3255_v21 }
0x1693   :  { %v5004_v56 = vpop.eup %5003  ;;  %v3225_v38 = vadd.f32 1.0, %v5002_v54  ;;  %v3355_v55 = vsel %vm3260_vm3, %v3353_v46, %v3354_v53  ;;  %v3357_v57 = vsel %vm3260_vm3, %v3354_v53, %v3356_v51 }
0x1694   :  { %v3232_v14 = vadd.f32 1.0, %v5004_v56  ;;  %3360 = vrot.lane.b32.xlu1 %v3355_v55, %s5144_s8  ;;  %v3982_v47 = vmul.f32 -1.442695, %v3324_v18  ;;  %v3983_v22 = vmul.f32 -1.442695, %v3325_v15 }
0x1695   :  { %5005 = vrcp.f32 %v3225_v38 }
0x1696   :  { %5007 = vrcp.f32 %v3232_v14 }
0x1698   :  { %3362 = vrot.lane.b32.xlu1 %v3357_v57, %s5144_s8 }
0x169f   :  { %v5006_v12 = vpop.eup %5005 }
0x16a0   :  { %v5008_v32 = vpop.eup %5007  ;;  %v3236_v34 = vmul.f32 %v5006_v12, %v3235_v48 }
0x16a1   :  { %v3244_v39 = vmul.f32 %v5008_v32, %v3242_v16  ;;  %v3239_v40 = vsub.f32 1.0, %v5008_v32 }
0x16a2   :  { %v3237_v33 = vadd.f32 %v3236_v34, %v3135_v36 }
0x16a4   :  { %5009 = vtanh.f32 %v3237_v33 }
0x16a5   :  { %5011 = vpow2.f32 %v3981_v20 }
0x16a6   :  { %5013 = vpow2.f32 %v3982_v47 }
0x16a7   :  { %5015 = vpow2.f32 %v3983_v22 }
0x16ae   :  { %v5010_v41 = vpop.eup %5009 }
0x16af   :  { %v3240_v42 = vmul.f32 %v5010_v41, %v3239_v40  ;;  %v5012_v50 = vpop.eup %5011 }
0x16b0   :  { %v5014_v24 = vpop.eup %5013  ;;  %v3335_v26 = vadd.f32 1.0, %v5012_v50 }
0x16b1   :  { %v6696_v35 = vadd.f32 %v3244_v39, %v3240_v42  ;;  %v3336_v9 = vadd.f32 1.0, %v5014_v24  ;;  %v5016_v8 = vpop.eup %5015 }
0x16b2   :  { %5017 = vrcp.f32 %v3335_v26  ;;  %v3337_v13 = vadd.f32 1.0, %v5016_v8 }
0x16b3   :  { %5019 = vrcp.f32 %v3336_v9 }
0x16b4   :  { %5021 = vrcp.f32 %v3337_v13 }
0x16bc   :  { %v5018_v11 = vpop.eup %5017 }
0x16bd   :  { %v5020_v19 = vpop.eup %5019  ;;  %v3388_v5 = vsub.f32 1.0, %v5018_v11  ;;  %v3406_v7 = vmul.f32 0.0, %v5018_v11 }
0x16be   :  { %v5022_v59 = vpop.eup %5021  ;;  %v3389_v4 = vsub.f32 1.0, %v5020_v19  ;;  %v3407_v25 = vmul.f32 0.0, %v5020_v19 }
0x16bf   :  { %v3390_v2 = vsub.f32 1.0, %v5022_v59  ;;  %v3408_v38 = vmul.f32 0.0, %v5022_v59 }
0x1703   :  { %v3359_v17 = vpop.permute.xlu0 %3358 }
0x1704   :  { %v3367_v37 = vmul.f32 %v5018_v11, %v3359_v17  ;;  %v3412_v11 = vld [vmem:[#allocation2 + $0x58] sm:$0xc0] }
0x1706   :  { %3373 = vrot.lane.b32.xlu0 %v3367_v37, %s5143_s2  ;;  %v3361_v23 = vpop.permute.xlu1 %3360  ;;  %v3413_v37 = vld [vmem:[#allocation2 + $0x78] sm:$0xff] }
0x1707   :  { %v3368_v27 = vmul.f32 %v5020_v19, %v3361_v23  ;;  %v3415_v19 = vld [vmem:[#allocation2 + $0xb8] sm:$0x3] }
0x1709   :  { %3375 = vrot.lane.b32.xlu1 %v3368_v27, %s5143_s2 }
0x170a   :  { %v3363_v28 = vpop.permute.xlu1 %3362 }
0x170b   :  { %v3369_v45 = vmul.f32 %v5022_v59, %v3363_v28  ;;  %v3414_v59 = vld [vmem:[#allocation2 + $0x98] sm:$0xff] }
0x170d   :  { %3377 = vrot.lane.b32.xlu0 %v3369_v45, %s5143_s2 }
0x1778   :  { %v3374_v29 = vpop.permute.xlu0 %3373 }
0x1779   :  { %v3382_v30 = vadd.f32 %v3374_v29, %v3253_v43 }
0x177b   :  { %5023 = vtanh.f32 %v3382_v30  ;;  %v3376_v31 = vpop.permute.xlu1 %3375 }
0x177c   :  { %v3383_v58 = vadd.f32 %v3376_v31, %v3254_v61 }
0x177e   :  { %5025 = vtanh.f32 %v3383_v58 }
0x177f   :  { %v3378_v60 = vpop.permute.xlu0 %3377 }
0x1780   :  { %v3384_v62 = vadd.f32 %v3378_v60, %v3255_v21 }
0x1782   :  { %5027 = vtanh.f32 %v3384_v62 }
0x1785   :  { %v5024_v49 = vpop.eup %5023 }
0x1786   :  { %3394 = vrot.lane.b32.xlu1 %v5024_v49, %s5145_s9 }
0x1788   :  { %v5026_v1 = vpop.eup %5025 }
0x1789   :  { %3396 = vrot.lane.b32.xlu0 %v5026_v1, %s5145_s9 }
0x178c   :  { %v5028_v3 = vpop.eup %5027 }
0x178d   :  { %3398 = vrot.lane.b32.xlu1 %v5028_v3, %s5145_s9 }
0x17f8   :  { %v3395_v6 = vpop.permute.xlu1 %3394 }
0x17f9   :  { %v3403_v63 = vmul.f32 %v3395_v6, %v3388_v5 }
0x17fb   :  { %v3397_v46 = vpop.permute.xlu0 %3396  ;;  %v6704_v10 = vadd.f32 %v3406_v7, %v3403_v63 }
0x17fc   :  { %v3404_v51 = vmul.f32 %v3397_v46, %v3389_v4 }
0x17fd   :  { %v3601_v54 = vrot.slane %v6704_v10, 4 }
0x17fe   :  { %v3410_v52 = vadd.f32 %v3407_v25, %v3404_v51 }
0x17ff   :  { %v3399_v53 = vpop.permute.xlu1 %3398 }
0x1800   :  { %v3602_v56 = vrot.slane %v3410_v52, 4  ;;  %v3405_v55 = vmul.f32 %v3399_v53, %v3390_v2  ;;  %v3416_v57 = vpack.c.bf16 %v3410_v52, %v6704_v10  ;;  %v4796_v10 = vld [vmem:[%s6858_s10 + $0x28] sm:$0xff]  }
0x1802   :  { %v6708_v14 = vadd.f32 %v3408_v38, %v3405_v55  ;;  %v6713_v48 = vsel %vm105_vm1, %v3601_v54, %v3602_v56  ;;  %v3421_v32 = vrot.slane %v3416_v57, 1 }
0x1804   :  { %v3604_v12 = vrot.slane %v6708_v14, 4  ;;  %v3417_v16 = vpack.c.bf16 %v6708_v14, %v6708_v14  ;;  %v542_v14 = vld [vmem:[%s6860_s12] sm:$0xff] }
0x1806   :  { %v3422_v34 = vrot.slane %v3417_v16, 1  ;;  %v6721_v36 = vsel %vm105_vm1, %v3602_v56, %v3604_v12  ;;  %vm580_vm1 = vcmask 1040384  }
0x1808   :  { %3426 = vrot.lane.b32.xlu1 %v3422_v34, %s5145_s9  ;;  %v3423_v39 = vsel %vm3420_vm4, %v3421_v32, %v3422_v34 }
0x1809   :  { %3424 = vrot.lane.b32.xlu0 %v3423_v39, %s5145_s9 }
0x187a   :  { %v3427_v40 = vpop.permute.xlu1 %3426 }
0x187b   :  { %v3425_v33 = vpop.permute.xlu0 %3424 }
0x187c   :  { %4679 = vmatprep.mubr.msk.bf16.mxu1 %vm3256_vm5, %v3425_v33 }
0x187d   :  { %4680 = vmatmul.mubr.msk.bf16.vlgmr.msra.gmra.mrb[112].mxu1 %vm3256_vm5, %v3427_v40 }
0x1950   :  { %v4681_v41 = vpop.f32.mrb[112].mxu1 }
0x1951   :  { %v3468_v42 = vpop.f32.mrb[113].mxu1  ;;  %v3525_v43 = vadd.f32 %v4681_v41, %v6683_v0  ;;  %v3489_v18 = vrot.slane %v4681_v41, 2 }
0x1952   :  { %v3523_v44 = vadd.f32 %v3468_v42, %v6683_v0  ;;  %v4682_v61 = vpop.f32.mrb[114].mxu1  ;;  %v3486_v21 = vrot.slane %v3468_v42, 2 }
0x1953   :  { %v3471_v20 = vpop.f32.mrb[115].mxu1  ;;  %v3532_v50 = vrot.slane %v3525_v43, 2  ;;  %v4785_v61 = vld [vmem:[%s6858_s10 + $0x40] sm:$0xff]  }
0x1954   :  { %v3529_v15 = vrot.slane %v3523_v44, 2  ;;  %v3487_v47 = vrot.slane %v3471_v20, 2  ;;  %v3524_v22 = vadd.f32 %v3471_v20, %v6683_v0  ;;  %v3495_v17 = vadd.f32 %v3486_v21, %v3412_v11  ;;  %v4787_v20 = vld [vmem:[%s6858_s10 + $0x48] sm:$0xff]   ;;  %4209 = vmatprep.subr.bf16.mxu0 %v4785_v61 }
0x1955   :  { %v3498_v0 = vadd.f32 %v3489_v18, %v3415_v19 }
0x1956   :  { %v3488_v24 = vsel %vm3485_vm6, %v3486_v21, %v3487_v47  ;;  %v3490_v26 = vsel %vm3485_vm6, %v3487_v47, %v3489_v18  ;;  %v3530_v9 = vrot.slane %v3524_v22, 2  ;;  %3534 = vrot.lane.b32.xlu1 %v3529_v15, %s5144_s8  ;;  %v3986_v27 = vmul.f32 -1.442695, %v3495_v17  ;;  %v4786_v18 = vld [vmem:[%s6858_s10] sm:$0xff]   ;;  %v4788_v21 = vld [vmem:[%s6858_s10 + $0x8] sm:$0xff]   ;;  %v4790_v47 = vld [vmem:[%s6858_s10 + $0x10] sm:$0xff]  }
0x1957   :  { %v3496_v23 = vadd.f32 %v3488_v24, %v3413_v37  ;;  %v3497_v28 = vadd.f32 %v3490_v26, %v3414_v59  ;;  %v3989_v29 = vmul.f32 -1.442695, %v3498_v0  ;;  %4210 = vmatpush3.bf16.msra.mxu0 %v4786_v18  ;;  %v4791_v22 = vld [vmem:[%s6858_s10 + $0x58] sm:$0xff]   ;;  %v4794_v17 = vld [vmem:[%s6858_s10 + $0x20] sm:$0xff]  }
0x1958   :  { %v3531_v8 = vsel %vm3485_vm6, %v3529_v15, %v3530_v9  ;;  %v3533_v13 = vsel %vm3485_vm6, %v3530_v9, %v3532_v50  ;;  %5029 = vpow2.f32 %v3986_v27  ;;  %4211 = vmatprep.subr.bf16.mxu0 %v4787_v20  ;;  %v4789_v15 = vld [vmem:[%s6858_s10 + $0x50] sm:$0xff]   ;;  %v4793_v9 = vld [vmem:[%s6858_s10 + $0x60] sm:$0xff]  }
0x1959   :  { %3536 = vrot.lane.b32.xlu0 %v3531_v8, %s5144_s8  ;;  %v3987_v45 = vmul.f32 -1.442695, %v3496_v23  ;;  %v3988_v30 = vmul.f32 -1.442695, %v3497_v28  ;;  %v4795_v23 = vld [vmem:[%s6858_s10 + $0x68] sm:$0xff]  }
0x195a   :  { %3540 = vrot.lane.b32.xlu1 %v3532_v50, %s5144_s8  ;;  %v4792_v50 = vld [vmem:[%s6858_s10 + $0x18] sm:$0xff]  }
0x195b   :  { %5031 = vpow2.f32 %v3987_v45  ;;  %4212 = vmatpush3.bf16.msra.mxu0 %v4788_v21  ;;  %v4797_v45 = vld [vmem:[%s6858_s10 + $0x70] sm:$0xff]  }
0x195c   :  { %5033 = vpow2.f32 %v3989_v29  ;;  %4213 = vmatprep.subr.bf16.mxu0 %v4789_v15 }
0x195d   :  { %3538 = vrot.lane.b32.xlu0 %v3533_v13, %s5144_s8  ;;  %5035 = vpow2.f32 %v3988_v30 }
0x195f   :  { %4214 = vmatpush3.bf16.msra.mxu0 %v4790_v47  ;;  %v3678_v47 = vpack.c.bf16 %v6696_v35, %v6696_v35 }
0x1960   :  { %4215 = vmatprep.subr.bf16.mxu0 %v4791_v22  ;;  %v539_v22 = vld [vmem:[%s6849_s1] sm:$0xff] }
0x1962   :  { %v5030_v31 = vpop.eup %5029 }
0x1963   :  { %v3511_v60 = vadd.f32 1.0, %v5030_v31  ;;  %4216 = vmatpush3.bf16.msra.mxu0 %v4792_v50 }
0x1964   :  { %4217 = vmatprep.subr.bf16.mxu0 %v4793_v9 }
0x1965   :  { %v5032_v58 = vpop.eup %5031  ;;  %5037 = vrcp.f32 %v3511_v60 }
0x1966   :  { %v5034_v62 = vpop.eup %5033  ;;  %v3512_v49 = vadd.f32 1.0, %v5032_v58 }
0x1967   :  { %v5036_v1 = vpop.eup %5035  ;;  %v3514_v3 = vadd.f32 1.0, %v5034_v62  ;;  %4218 = vmatpush3.bf16.msra.mxu0 %v4794_v17 }
0x1968   :  { %v3513_v5 = vadd.f32 1.0, %v5036_v1  ;;  %5039 = vrcp.f32 %v3512_v49  ;;  %4219 = vmatprep.subr.bf16.mxu0 %v4795_v23 }
0x1969   :  { %5041 = vrcp.f32 %v3514_v3  ;;  %v4799_v3 = vld [vmem:[%s6858_s10 + $0x78] sm:$0xff]  }
0x196a   :  { %5043 = vrcp.f32 %v3513_v5 }
0x196b   :  { %4220 = vmatpush3.bf16.msra.mxu0 %v4796_v10 }
0x196c   :  { %4221 = vmatprep.subr.bf16.mxu0 %v4797_v45 }
0x196f   :  { %v5038_v6 = vpop.eup %5037 }
0x1970   :  { %v3574_v24 = vsub.f32 1.0, %v5038_v6  ;;  %v3610_v8 = vmul.f32 %v5038_v6, %v3601_v54 }
0x1972   :  { %v5040_v4 = vpop.eup %5039 }
0x1973   :  { %v6735_v25 = vpop.eup %5041  ;;  %v3611_v0 = vmul.f32 %v5040_v4, %v6713_v48 }
0x1974   :  { %v6739_v53 = vpop.eup %5043  ;;  %v3577_v58 = vsub.f32 1.0, %v6735_v25  ;;  %v3613_v5 = vmul.f32 %v6735_v25, %v3604_v12  ;;  %v543_v12 = vld [vmem:[%s6860_s12 + $0x8] sm:$0xff] }
0x1975   :  { %v3612_v48 = vmul.f32 %v6739_v53, %v6721_v36  ;;  %v4798_v36 = vld [vmem:[%s6858_s10 + $0x30] sm:$0xff]  }
0x1976   :  { %4222 = vmatpush3.bf16.msra.mxu0 %v4798_v36 }
0x1977   :  { %4223 = vmatprep.subr.bf16.mxu0 %v4799_v3 }
0x19c8   :  { %v3535_v63 = vpop.permute.xlu1 %3534 }
0x19c9   :  { %v3546_v7 = vmul.f32 %v5038_v6, %v3535_v63  ;;  %v4800_v63 = vld [vmem:[%s6858_s10 + $0x38] sm:$0xff]  }
0x19ca   :  { %4224 = vmatpush3.bf16.msra.mxu0 %v4800_v63 }
0x19cb   :  { %3554 = vrot.lane.b32.xlu1 %v3546_v7, %s5143_s2  ;;  %v3537_v46 = vpop.permute.xlu0 %3536 }
0x19cc   :  { %v3547_v51 = vmul.f32 %v5040_v4, %v3537_v46  ;;  %v3541_v52 = vpop.permute.xlu1 %3540 }
0x19cd   :  { %v3549_v2 = vmul.f32 %v6735_v25, %v3541_v52  ;;  %v544_v25 = vld [vmem:[%s6860_s12 + $0x10] sm:$0x1f] }
0x19ce   :  { %3556 = vrot.lane.b32.xlu0 %v3547_v51, %s5143_s2  ;;  %v3912_v51 = vld [vmem:[#allocation3] ss:$0 sm:$0xff] }
0x19cf   :  { %3560 = vrot.lane.b32.xlu1 %v3549_v2, %s5143_s2  ;;  %v3539_v56 = vpop.permute.xlu0 %3538 }
0x19d0   :  { %v3548_v38 = vmul.f32 %v6739_v53, %v3539_v56 }
0x19d2   :  { %3558 = vrot.lane.b32.xlu0 %v3548_v38, %s5143_s2 }
0x1a3d   :  { %v3555_v55 = vpop.permute.xlu1 %3554 }
0x1a3e   :  { %v3566_v57 = vadd.f32 %v3555_v55, %v3412_v11  ;;  %v3575_v11 = vsub.f32 1.0, %v5040_v4 }
0x1a40   :  { %5045 = vtanh.f32 %v3566_v57  ;;  %v3557_v16 = vpop.permute.xlu0 %3556 }
0x1a41   :  { %v3567_v32 = vadd.f32 %v3557_v16, %v3413_v37  ;;  %v3561_v34 = vpop.permute.xlu1 %3560 }
0x1a42   :  { %v3569_v39 = vadd.f32 %v3561_v34, %v3415_v19 }
0x1a43   :  { %5047 = vtanh.f32 %v3567_v32 }
0x1a44   :  { %5049 = vtanh.f32 %v3569_v39  ;;  %v3559_v33 = vpop.permute.xlu0 %3558 }
0x1a45   :  { %v3568_v40 = vadd.f32 %v3559_v33, %v3414_v59  ;;  %v3576_v59 = vsub.f32 1.0, %v6739_v53 }
0x1a47   :  { %5051 = vtanh.f32 %v3568_v40 }
0x1a4a   :  { %v5046_v41 = vpop.eup %5045 }
0x1a4b   :  { %3582 = vrot.lane.b32.xlu1 %v5046_v41, %s5145_s9 }
0x1a4d   :  { %v5048_v42 = vpop.eup %5047 }
0x1a4e   :  { %v5050_v43 = vpop.eup %5049  ;;  %3584 = vrot.lane.b32.xlu0 %v5048_v42, %s5145_s9 }
0x1a4f   :  { %3588 = vrot.lane.b32.xlu1 %v5050_v43, %s5145_s9 }
0x1a51   :  { %v5052_v44 = vpop.eup %5051 }
0x1a52   :  { %3586 = vrot.lane.b32.xlu0 %v5052_v44, %s5145_s9 }
0x1abd   :  { %v3583_v26 = vpop.permute.xlu1 %3582 }
0x1abe   :  { %v3594_v13 = vmul.f32 %v3583_v26, %v3574_v24  ;;  %v540_v24 = vld [vmem:[%s6849_s1 + $0x8] sm:$0xff] }
0x1ac0   :  { %v3614_v37 = vadd.f32 %v3610_v8, %v3594_v13  ;;  %v3585_v19 = vpop.permute.xlu0 %3584  ;;  %v541_v8 = vld [vmem:[%s6849_s1 + $0x10] sm:$0x1f] }
0x1ac1   :  { %v3595_v27 = vmul.f32 %v3585_v19, %v3575_v11  ;;  %v3589_v31 = vpop.permute.xlu1 %3588 }
0x1ac2   :  { %3619 = vrot.lane.b32.xlu0 %v3614_v37, %s5145_s9  ;;  %v3597_v49 = vmul.f32 %v3589_v31, %v3577_v58  ;;  %s5147_s9 = smov 4   ;;  %v3990_v31 = vld [vmem:[%s6859_s11] ss:$0 sm:$0xff] }
0x1ac3   :  { %v3615_v54 = vadd.f32 %v3611_v0, %v3595_v27 }
0x1ac4   :  { %v3587_v28 = vpop.permute.xlu0 %3586  ;;  %v3617_v7 = vadd.f32 %v3613_v5, %v3597_v49 }
0x1ac5   :  { %v3596_v29 = vmul.f32 %v3587_v28, %v3576_v59  ;;  %3633 = vrot.lane.b32.xlu1 %v3615_v54, %s5146_s15  ;;  %v3629_v30 = vrot.slane %v3615_v54, 6  ;;  %v3625_v62 = vrot.slane %v3615_v54, 4  ;;  %v3623_v53 = vrot.slane %v3615_v54, 2  ;;  %s3864_s15 = sshll.u32 %s5153_s5, 4  ;;  %s3865_s15 = int_to_ptr.vmem [resolvable:$true] %s3864_s15 }
0x1ac6   :  { %v3653_v46 = vrot.slane %v3617_v7, 2  ;;  %p5121_p1 = scmp.lt.s32.totalorder %s3865_s15, %s3865_s15 }
0x1ac7   :  { %v3616_v60 = vadd.f32 %v3612_v48, %v3596_v29  ;;  %3630 = vrot.lane.b32.xlu0 %v3629_v30, %s5143_s2 }
0x1ac9   :  { %3626 = vrot.lane.b32.xlu1 %v3625_v62, %s5147_s9  ;;  %v3637_v1 = vrot.slane %v3616_v60, 2  ;;  %v3641_v6 = vrot.slane %v3616_v60, 4  ;;  %v3645_v4 = vrot.slane %v3616_v60, 6 }
0x1acb   :  { %3638 = vrot.lane.b32.xlu0 %v3637_v1, %s5148_s19 }
0x1acd   :  { %3642 = vrot.lane.b32.xlu1 %v3641_v6, %s5149_s21 }
0x1acf   :  { %3646 = vrot.lane.b32.xlu0 %v3645_v4, %s5150_s0 }
0x1ad1   :  { %3649 = vrot.lane.b32.xlu1 %v3616_v60, %s5151_s22 }
0x1ad3   :  { %3654 = vrot.lane.b32.xlu0 %v3653_v46, %s5152_s25 }
0x1ad5   :  { %547 = vperm.xlu1 %4699, %v542_v14  }
0x1ad7   :  { %552 = vperm.xlu0 %4700, %v543_v12  }
0x1ad9   :  { %557 = vperm.xlu1 %4699, %v544_v25  }
0x1add   :  { %589 = vperm.xlu1 %4699, %v3912_v51  }
0x1b34   :  { %v3620_v52 = vpop.permute.xlu0 %3619 }
0x1b35   :  { %v3657_v38 = vsel %vm3256_vm5, %v3620_v52, %v3623_v53 }
0x1b37   :  { %v3634_v2 = vpop.permute.xlu1 %3633 }
0x1b39   :  { %v3631_v56 = vpop.permute.xlu0 %3630 }
0x1b3b   :  { %v3627_v55 = vpop.permute.xlu1 %3626 }
0x1b3c   :  { %v3659_v57 = vsel %vm3658_vm7, %v3657_v38, %v3627_v55 }
0x1b3d   :  { %v3661_v16 = vsel %vm3660_vm8, %v3659_v57, %v3631_v56  ;;  %v3639_v32 = vpop.permute.xlu0 %3638 }
0x1b3e   :  { %v3662_v34 = vsel %vm563_vm9, %v3661_v16, %v3634_v2 }
0x1b3f   :  { %v3664_v39 = vsel %vm3663_vm10, %v3662_v34, %v3639_v32  ;;  %v3643_v33 = vpop.permute.xlu1 %3642 }
0x1b40   :  { %v3666_v40 = vsel %vm3665_vm11, %v3664_v39, %v3643_v33 }
0x1b41   :  { %v3647_v41 = vpop.permute.xlu0 %3646 }
0x1b42   :  { %v3668_v42 = vsel %vm3667_vm12, %v3666_v40, %v3647_v41 }
0x1b43   :  { %v3650_v43 = vpop.permute.xlu1 %3649 }
0x1b44   :  { %v3670_v44 = vsel %vm3669_vm13, %v3668_v42, %v3650_v43 }
0x1b45   :  { %v3655_v61 = vpop.permute.xlu0 %3654 }
0x1b46   :  { %v3672_v18 = vsel %vm3671_vm14, %v3670_v44, %v3655_v61 }
0x1b47   :  { %v3674_v20 = vsel %vm3673_vm15, %v3672_v18, 0.0 }
0x1b48   :  { %v3676_v21 = vrot.slane %v3674_v20, 6 }
0x1b4a   :  { %v3679_v15 = vpack.c.bf16 %v3676_v21, %v3676_v21 }
0x1b4c   :  { %3847 = vmatprep.mubr.bf16.mxu0 %v3679_v15 }
0x1b4d   :  { %3848 = vmatmul.mubr.bf16.vlgmr.msra.gmra.mrb[96].mxu0 %v3678_v47 }
0x1b54   :  { %v548_v50 = vpop.permute.xlu1 %547 }
0x1b55   :  { %v560_v26 = vmul.f32 %v548_v50, %v539_v22 }
0x1b56   :  { %v553_v9 = vpop.permute.xlu0 %552 }
0x1b57   :  { %v564_v13 = vsel %vm563_vm9, %v560_v26, 0.0  ;;  %v561_v35 = vmul.f32 %v553_v9, %v540_v24 }
0x1b58   :  { %v558_v11 = vpop.permute.xlu1 %557 }
0x1b59   :  { %v565_v17 = vsel %vm563_vm9, %v561_v35, 0.0  ;;  %v562_v37 = vmul.f32 %v558_v11, %v541_v8 }
0x1b5a   :  { %v566_v19 = vadd.f32 %v565_v17, %v564_v13 }
0x1b5b   :  { %v568_v23 = vsel %vm567_vm0, %v562_v37, 0.0 }
0x1b5c   :  { %v569_v0 = vadd.f32 %v568_v23, %v566_v19  ;;  %v590_v49 = vpop.permute.xlu1 %589 }
0x1b5e   :  { %v570_v27 = vrot.slane %v569_v0, 4 }
0x1b60   :  { %v571_v10 = vadd.f32 %v570_v27, %v569_v0 }
0x1b62   :  { %v572_v54 = vrot.slane %v571_v10, 2 }
0x1b64   :  { %v573_v59 = vadd.f32 %v572_v54, %v571_v10 }
0x1b66   :  { %v574_v28 = vrot.slane %v573_v59, 1 }
0x1b68   :  { %v575_v45 = vadd.f32 %v574_v28, %v573_v59 }
0x1b6a   :  { %577 = vrot.lane.b32.xlu0 %v575_v45, %s5144_s8  ;;  %s5116_s8 = scalar_lea.vmem %s3865_s15, 32 }
0x1b6b   :  { %p5117_p0 = scmp.ne.s32.totalorder %s3865_s15, %s5116_s8  ;;  %p5122_p2 = scmp.lt.s32.totalorder %s5116_s8, %s5116_s8 }
0x1b6d   :  { %p5123_p3 = por %p5122_p2, %p5121_p1 }
0x1b6f   :  { %p5124_p4 = pnand %p5123_p3, %p5117_p0 }
0x1bdc   :  { %v578_v48 = vpop.permute.xlu0 %577 }
0x1bdd   :  { %v581_v30 = vsel %vm580_vm1, %v575_v45, %v578_v48 }
0x1bde   :  { %v592_v36 = vadd.f32 %v590_v49, %v581_v30 }
0x1c20   :  { %v4225_v29 = vpop.f32.mrb[96].mxu0 }
0x1c21   :  { %v4226_v58 = vpop.f32.mrb[97].mxu0 }
0x1c22   :  { %v4227_v60 = vadd.f32 %v4226_v58, %v4225_v29  ;;  %v4228_v62 = vpop.f32.mrb[98].mxu0 }
0x1c23   :  { %v4229_v1 = vpop.f32.mrb[99].mxu0 }
0x1c24   :  { %v3850_v3 = vadd.f32 %v4227_v60, %v3990_v31 }
0x1c26   :  { %v3855_v5 = vadd.f32 %v3850_v3, %v592_v36 }
0x1c28   :  { %3857 = vst.msk [vmem:[#allocation4] sm:$0x3] %vm3856_vm2, %v3855_v5 }
0x1c29   :  { %5127 = shalt.err (!%p5124_p4)
}
0x1c2a   :  { %s5128_s16 = scalar_lea.hbm %s6862_s14, 32 }
0x1c2b   :  { %p5129_p5 = scmp.ne.s32.totalorder %s6862_s14, %s5128_s16  ;;  %p5132_p6 = scmp.lt.u32.totalorder %s5128_s16, %s6862_s14 }
0x1c2d   :  { %p5134_p7 = pnand %p5132_p6, %p5129_p5 }
0x1c2f   :  { %5137 = shalt.err (!%p5134_p7)
}
0x1c30   :  { %3867 = dma.vmem_to_hbm [thread:$0]  %s3865_s15, 32, %s6862_s14, [#allocation5]  }
0x1c31   :  { %5138 = dma.done.wait [#allocation5], 32  }
0x1c32   :  { %5139 = vsyncadd [#allocation5], 4294967264 }
0x1c33   :  { %3871 = vsyncpa [#allocation5], 1 }

</bundles_post_ra>
